<compile_context>
chip_gen: v7x
topology: tpu7x:2x2x1
jax: 0.10.0
libtpu: 0.0.40
codegen_flags: <defaults>
</compile_context>

<pallas_src>
import functools

import jax
import jax.numpy as jnp
from jax import lax
from jax.experimental import pallas as pl
from jax.experimental.pallas import tpu as pltpu

_VMEM_LIMIT = 32 * 1024 * 1024  # explicit scoped-VMEM request, safe on v5e/v6e/v7x


# ---------------------------------------------------------------------------
# Fused conv(3x3, pad=1) + bias + ReLU + maxpool(2x2) kernel (one image/step)
# ---------------------------------------------------------------------------
def _conv_relu_pool_kernel(x_ref, w_ref, b_ref, o_ref, *, wq):
    """x_ref : (1, 4, C_in, Lp)  phase-split, zero-padded input planes.
               plane 2*q+p holds padded pixel (2r+q, 2c+p) at lane r*wq + c,
               plus (wq+1) trailing zero lanes so every shifted window fits.
       w_ref : (9, C_out, C_in)  tap t = ky*3 + kx (PyTorch OIHW reordered).
       b_ref : (C_out, 1)
       o_ref : (1, C_out, Lv)    pooled output, lane = h*wq + w  (h, w < H/2).
    """
    c_in = x_ref.shape[2]
    lp = x_ref.shape[3]
    lv = lp - (wq + 1)          # output lane count (== Hq*Wq of the input planes)
    use_mxu = c_in > 1

    # ---- in-kernel im2col: 4 aligned plane loads + 16 shifted lane windows --
    planes = [x_ref[0, qp] for qp in range(4)]          # each (C_in, Lp)
    views = {}
    for qp in range(4):
        for r0 in range(2):
            for c0 in range(2):
                s = r0 * wq + c0
                v = planes[qp][:, s:s + lv]             # (C_in, Lv)
                if not use_mxu:
                    v = v.astype(jnp.float32)
                views[(qp, s)] = v

    # ---- 4 pool-phase accumulators, 9 taps each (lane-dense, f32 accum) -----
    accs = []
    for dy in range(2):
        for dx in range(2):
            acc = None
            for ky in range(3):
                for kx in range(3):
                    qy, ry = (dy + ky) & 1, (dy + ky) >> 1
                    qx, rx = (dx + kx) & 1, (dx + kx) >> 1
                    xs = views[(2 * qy + qx, ry * wq + rx)]
                    wk = w_ref[ky * 3 + kx]             # (C_out, C_in)
                    if use_mxu:                         # bf16 MXU, f32 accumulate
                        t = jnp.dot(wk, xs, preferred_element_type=jnp.float32)
                    else:                               # C_in == 1: VPU FMA in f32
                        t = wk.astype(jnp.float32) * xs  # (C_out,1)*(1,Lv)
                    acc = t if acc is None else acc + t
            accs.append(acc)

    # ---- fused bias + ReLU + 2x2 max-pool epilogue (nothing else hits HBM) --
    pooled = jnp.maximum(jnp.maximum(accs[0], accs[1]),
                         jnp.maximum(accs[2], accs[3]))
    o_ref[0] = jnp.maximum(pooled + b_ref[...], 0.0)


def conv_relu_pool(x_planes, w9, bias, wq):
    B, _, c_in, lp = x_planes.shape
    c_out = w9.shape[1]
    lv = lp - (wq + 1)
    kernel = functools.partial(_conv_relu_pool_kernel, wq=wq)
    return pl.pallas_call(
        kernel,
        out_shape=jax.ShapeDtypeStruct((B, c_out, lv), jnp.float32),
        grid=(B,),
        in_specs=[
            pl.BlockSpec((1, 4, c_in, lp), lambda b: (b, 0, 0, 0)),
            pl.BlockSpec((9, c_out, c_in), lambda b: (0, 0, 0)),
            pl.BlockSpec((c_out, 1), lambda b: (0, 0)),
        ],
        out_specs=pl.BlockSpec((1, c_out, lv), lambda b: (b, 0, 0)),
        compiler_params=pltpu.CompilerParams(
            dimension_semantics=("parallel",),
            vmem_limit_bytes=_VMEM_LIMIT),
    )(x_planes, w9, bias)


# ---------------------------------------------------------------------------
# fc1: tiled matmul + bias (bf16 operands, f32 accumulation)
# ---------------------------------------------------------------------------
def _matmul_bias_kernel(x_ref, w_ref, b_ref, o_ref):
    o_ref[...] = (jnp.dot(x_ref[...], w_ref[...],
                          preferred_element_type=jnp.float32) + b_ref[...])


def linear_bias(x, w, b):
    B, K = x.shape
    N = w.shape[1]
    tb = 256 if (B % 256 == 0) else B          # row tile; whole array for tiny B
    return pl.pallas_call(
        _matmul_bias_kernel,
        out_shape=jax.ShapeDtypeStruct((B, N), jnp.float32),
        grid=(B // tb,),
        in_specs=[
            pl.BlockSpec((tb, K), lambda i: (i, 0)),
            pl.BlockSpec((K, N), lambda i: (0, 0)),
            pl.BlockSpec((1, N), lambda i: (0, 0)),
        ],
        out_specs=pl.BlockSpec((tb, N), lambda i: (i, 0)),
        compiler_params=pltpu.CompilerParams(
            dimension_semantics=("parallel",),
            vmem_limit_bytes=_VMEM_LIMIT),
    )(x, w, b)


# ---------------------------------------------------------------------------
# Wrapper glue (tiny XLA ops): pad + space-to-depth phase split per conv layer
# ---------------------------------------------------------------------------
def _pad_phase_split(x):
    """(B, C, H, W) -> ((B, 4, C, hq*wq + wq + 1), wq) phase-split padded planes."""
    B, C, H, W = x.shape
    xp = jnp.pad(x, ((0, 0), (0, 0), (1, 1), (1, 1)))
    hq, wq = (H + 2) // 2, (W + 2) // 2
    xq = xp.reshape(B, C, hq, 2, wq, 2).transpose(0, 3, 5, 1, 2, 4)
    xq = xq.reshape(B, 4, C, hq * wq)
    xq = jnp.pad(xq, ((0, 0), (0, 0), (0, 0), (0, wq + 1)))
    return xq, wq


def cnn_forward(x_nchw, prep):
    B = x_nchw.shape[0]

    # conv1 + ReLU + pool  (C_in == 1 -> f32 VPU path inside the kernel)
    x1, wq1 = _pad_phase_split(x_nchw)
    y1 = conv_relu_pool(x1, prep["w1"], prep["b1"], wq1)      # (B, 16, 15*15)

    # conv2 + ReLU + pool  (bf16 MXU path)
    h1 = wq1 - 1                                              # 14
    y1v = y1.reshape(B, 16, wq1, wq1)[:, :, :h1, :h1]          # (B, 16, 14, 14)
    x2, wq2 = _pad_phase_split(y1v.astype(jnp.bfloat16))
    y2 = conv_relu_pool(x2, prep["w2"], prep["b2"], wq2)      # (B, 32, 8*8)

    # fc1: weight columns were pre-permuted/padded to the (c, h*8 + w) layout
    # the conv2 kernel already emits, so no activation transpose is needed.
    xf = y2.reshape(B, -1).astype(jnp.bfloat16)               # (B, 32*64)
    return linear_bias(xf, prep["wf"], prep["bf"])


# ---------------------------------------------------------------------------
# One-time parameter layout prep (outside the hot path)
# ---------------------------------------------------------------------------
def prepare_params(p):
    c_out1, c_in1 = p["w1"].shape[0], p["w1"].shape[1]
    c_out2, c_in2 = p["w2"].shape[0], p["w2"].shape[1]
    w1 = jnp.transpose(p["w1"], (2, 3, 0, 1)).reshape(9, c_out1, c_in1)
    w2 = jnp.transpose(p["w2"], (2, 3, 0, 1)).reshape(9, c_out2, c_in2)
    classes = p["wf"].shape[0]
    # fc weight: (classes, 32*7*7) NCHW-flatten order -> columns re-indexed to
    # the conv2 kernel output layout (c, h*8 + w), zero for the pad lanes.
    wf = p["wf"].reshape(classes, c_out2, 7, 7)
    wf = jnp.pad(wf, ((0, 0), (0, 0), (0, 1), (0, 1)))        # (classes, 32, 8, 8)
    wf = wf.reshape(classes, c_out2 * 64).T                   # (2048, classes)
    return dict(
        w1=w1.astype(jnp.float32),                            # conv1 VPU path: f32
        b1=p["b1"].reshape(-1, 1).astype(jnp.float32),
        w2=w2.astype(jnp.bfloat16),                           # conv2 MXU path: bf16
        b2=p["b2"].reshape(-1, 1).astype(jnp.float32),
        wf=wf.astype(jnp.bfloat16),
        bf=p["bf"].reshape(1, -1).astype(jnp.float32),
    )


# ---------------------------------------------------------------------------
# Deterministic parameter init (PyTorch-style uniform(-1/sqrt(fan_in), ...))
# ---------------------------------------------------------------------------
def init_params(key, input_channels, classes):
    ks = jax.random.split(key, 6)

    def u(k, shape, fan_in):
        bound = 1.0 / float(fan_in) ** 0.5
        return jax.random.uniform(k, shape, jnp.float32, -bound, bound)

    return dict(
        w1=u(ks[0], (16, input_channels, 3, 3), input_channels * 9),
        b1=u(ks[1], (16,), input_channels * 9),
        w2=u(ks[2], (32, 16, 3, 3), 16 * 9),
        b2=u(ks[3], (32,), 16 * 9),
        wf=u(ks[4], (classes, 32 * 7 * 7), 32 * 7 * 7),
        bf=u(ks[5], (classes,), 32 * 7 * 7),
    )


# ---------------------------------------------------------------------------
# Pure-JAX reference (independent of the Pallas path) for a sanity check
# ---------------------------------------------------------------------------
def reference_forward(x, p):
    def block(x, w, b):
        y = lax.conv_general_dilated(
            x, w, (1, 1), ((1, 1), (1, 1)),
            dimension_numbers=("NCHW", "OIHW", "NCHW"))
        y = jnp.maximum(y + b.reshape(1, -1, 1, 1), 0.0)
        return lax.reduce_window(y, -jnp.inf, lax.max,
                                 (1, 1, 2, 2), (1, 1, 2, 2), "VALID")

    y = block(x, p["w1"], p["b1"])
    y = block(y, p["w2"], p["b2"])
    y = y.reshape(y.shape[0], -1)
    return y @ p["wf"].T + p["bf"]


if __name__ == "__main__":
    key = jax.random.PRNGKey(0)
    kx, kp = jax.random.split(key)

    input_channels, classes, batch = 1, 10, 2
    # fc1 = Linear(32*7*7, classes) pins the spatial input to 28x28
    x = jax.random.normal(kx, (batch, input_channels, 28, 28), jnp.float32)
    params = init_params(kp, input_channels, classes)
    prep = prepare_params(params)          # one-time weight layout prep

    out = jax.jit(cnn_forward)(x, prep)
    out = jax.block_until_ready(out)

    assert out.shape == (batch, classes)
    ref = reference_forward(x, params)
    # conv2 / fc operands run in bf16 (f32 accumulation) -> slightly looser tol
    assert jnp.allclose(out, ref, rtol=2e-2, atol=2e-2), "mismatch vs reference"

    print("KERNEL_OK")
</pallas_src>

<mosaic_0001>
module attributes {stable_mosaic.version = 11 : i64} {
  func.func @_conv_relu_pool_kernel(%arg0: i32, %arg1: memref<1x4x1x241xf32, #tpu.memory_space<vmem>>, %arg2: memref<9x16x1xf32, #tpu.memory_space<vmem>>, %arg3: memref<16x1xf32, #tpu.memory_space<vmem>>, %arg4: memref<1x16x225xf32, #tpu.memory_space<vmem>>) attributes {dimension_semantics = [#tpu.dimension_semantics<parallel>], iteration_bounds = array<i64: 2>, scalar_prefetch = 0 : i64, scratch_operands = 0 : i64, tpu.core_type = #tpu.core_type<tc>, window_params = [{transform_indices = @transform_0, window_bounds = array<i64: 1, 4, 1, 241>}, {pipeline_mode = #tpu.pipeline_mode<synchronous>, transform_indices = @transform_1, window_bounds = array<i64: 9, 16, 1>}, {pipeline_mode = #tpu.pipeline_mode<synchronous>, transform_indices = @transform_2, window_bounds = array<i64: 16, 1>}, {transform_indices = @transform_3, window_bounds = array<i64: 1, 16, 225>}]} {
    %c0 = arith.constant 0 : index
    %c0_0 = arith.constant 0 : index
    %c0_1 = arith.constant 0 : index
    %c0_2 = arith.constant 0 : index
    %0 = vector.load %arg1[%c0, %c0_0, %c0_1, %c0_2] : memref<1x4x1x241xf32, #tpu.memory_space<vmem>>, vector<1x1x1x241xf32>
    %1 = vector.shape_cast %0 : vector<1x1x1x241xf32> to vector<1x241xf32>
    %c0_3 = arith.constant 0 : index
    %c1 = arith.constant 1 : index
    %c0_4 = arith.constant 0 : index
    %c0_5 = arith.constant 0 : index
    %2 = vector.load %arg1[%c0_3, %c1, %c0_4, %c0_5] : memref<1x4x1x241xf32, #tpu.memory_space<vmem>>, vector<1x1x1x241xf32>
    %3 = vector.shape_cast %2 : vector<1x1x1x241xf32> to vector<1x241xf32>
    %c0_6 = arith.constant 0 : index
    %c2 = arith.constant 2 : index
    %c0_7 = arith.constant 0 : index
    %c0_8 = arith.constant 0 : index
    %4 = vector.load %arg1[%c0_6, %c2, %c0_7, %c0_8] : memref<1x4x1x241xf32, #tpu.memory_space<vmem>>, vector<1x1x1x241xf32>
    %5 = vector.shape_cast %4 : vector<1x1x1x241xf32> to vector<1x241xf32>
    %c0_9 = arith.constant 0 : index
    %c3 = arith.constant 3 : index
    %c0_10 = arith.constant 0 : index
    %c0_11 = arith.constant 0 : index
    %6 = vector.load %arg1[%c0_9, %c3, %c0_10, %c0_11] : memref<1x4x1x241xf32, #tpu.memory_space<vmem>>, vector<1x1x1x241xf32>
    %7 = vector.shape_cast %6 : vector<1x1x1x241xf32> to vector<1x241xf32>
    %8 = vector.extract_strided_slice %1 {offsets = [0, 0], sizes = [1, 225], strides = [1, 1]} : vector<1x241xf32> to vector<1x225xf32>
    %9 = vector.extract_strided_slice %1 {offsets = [0, 1], sizes = [1, 225], strides = [1, 1]} : vector<1x241xf32> to vector<1x225xf32>
    %10 = vector.extract_strided_slice %1 {offsets = [0, 15], sizes = [1, 225], strides = [1, 1]} : vector<1x241xf32> to vector<1x225xf32>
    %11 = vector.extract_strided_slice %1 {offsets = [0, 16], sizes = [1, 225], strides = [1, 1]} : vector<1x241xf32> to vector<1x225xf32>
    %12 = vector.extract_strided_slice %3 {offsets = [0, 0], sizes = [1, 225], strides = [1, 1]} : vector<1x241xf32> to vector<1x225xf32>
    %13 = vector.extract_strided_slice %3 {offsets = [0, 1], sizes = [1, 225], strides = [1, 1]} : vector<1x241xf32> to vector<1x225xf32>
    %14 = vector.extract_strided_slice %3 {offsets = [0, 15], sizes = [1, 225], strides = [1, 1]} : vector<1x241xf32> to vector<1x225xf32>
    %15 = vector.extract_strided_slice %3 {offsets = [0, 16], sizes = [1, 225], strides = [1, 1]} : vector<1x241xf32> to vector<1x225xf32>
    %16 = vector.extract_strided_slice %5 {offsets = [0, 0], sizes = [1, 225], strides = [1, 1]} : vector<1x241xf32> to vector<1x225xf32>
    %17 = vector.extract_strided_slice %5 {offsets = [0, 1], sizes = [1, 225], strides = [1, 1]} : vector<1x241xf32> to vector<1x225xf32>
    %18 = vector.extract_strided_slice %5 {offsets = [0, 15], sizes = [1, 225], strides = [1, 1]} : vector<1x241xf32> to vector<1x225xf32>
    %19 = vector.extract_strided_slice %5 {offsets = [0, 16], sizes = [1, 225], strides = [1, 1]} : vector<1x241xf32> to vector<1x225xf32>
    %20 = vector.extract_strided_slice %7 {offsets = [0, 0], sizes = [1, 225], strides = [1, 1]} : vector<1x241xf32> to vector<1x225xf32>
    %21 = vector.extract_strided_slice %7 {offsets = [0, 1], sizes = [1, 225], strides = [1, 1]} : vector<1x241xf32> to vector<1x225xf32>
    %22 = vector.extract_strided_slice %7 {offsets = [0, 15], sizes = [1, 225], strides = [1, 1]} : vector<1x241xf32> to vector<1x225xf32>
    %23 = vector.extract_strided_slice %7 {offsets = [0, 16], sizes = [1, 225], strides = [1, 1]} : vector<1x241xf32> to vector<1x225xf32>
    %c0_12 = arith.constant 0 : index
    %c0_13 = arith.constant 0 : index
    %c0_14 = arith.constant 0 : index
    %24 = vector.load %arg2[%c0_12, %c0_13, %c0_14] : memref<9x16x1xf32, #tpu.memory_space<vmem>>, vector<1x16x1xf32>
    %25 = vector.shape_cast %24 : vector<1x16x1xf32> to vector<16x1xf32>
    %26 = vector.broadcast %25 : vector<16x1xf32> to vector<16x225xf32>
    %27 = vector.broadcast %8 : vector<1x225xf32> to vector<16x225xf32>
    %28 = arith.mulf %26, %27 : vector<16x225xf32>
    %c1_15 = arith.constant 1 : index
    %c0_16 = arith.constant 0 : index
    %c0_17 = arith.constant 0 : index
    %29 = vector.load %arg2[%c1_15, %c0_16, %c0_17] : memref<9x16x1xf32, #tpu.memory_space<vmem>>, vector<1x16x1xf32>
    %30 = vector.shape_cast %29 : vector<1x16x1xf32> to vector<16x1xf32>
    %31 = vector.broadcast %30 : vector<16x1xf32> to vector<16x225xf32>
    %32 = vector.broadcast %12 : vector<1x225xf32> to vector<16x225xf32>
    %33 = arith.mulf %31, %32 : vector<16x225xf32>
    %34 = arith.addf %28, %33 : vector<16x225xf32>
    %c2_18 = arith.constant 2 : index
    %c0_19 = arith.constant 0 : index
    %c0_20 = arith.constant 0 : index
    %35 = vector.load %arg2[%c2_18, %c0_19, %c0_20] : memref<9x16x1xf32, #tpu.memory_space<vmem>>, vector<1x16x1xf32>
    %36 = vector.shape_cast %35 : vector<1x16x1xf32> to vector<16x1xf32>
    %37 = vector.broadcast %36 : vector<16x1xf32> to vector<16x225xf32>
    %38 = vector.broadcast %9 : vector<1x225xf32> to vector<16x225xf32>
    %39 = arith.mulf %37, %38 : vector<16x225xf32>
    %40 = arith.addf %34, %39 : vector<16x225xf32>
    %c3_21 = arith.constant 3 : index
    %c0_22 = arith.constant 0 : index
    %c0_23 = arith.constant 0 : index
    %41 = vector.load %arg2[%c3_21, %c0_22, %c0_23] : memref<9x16x1xf32, #tpu.memory_space<vmem>>, vector<1x16x1xf32>
    %42 = vector.shape_cast %41 : vector<1x16x1xf32> to vector<16x1xf32>
    %43 = vector.broadcast %42 : vector<16x1xf32> to vector<16x225xf32>
    %44 = vector.broadcast %16 : vector<1x225xf32> to vector<16x225xf32>
    %45 = arith.mulf %43, %44 : vector<16x225xf32>
    %46 = arith.addf %40, %45 : vector<16x225xf32>
    %c4 = arith.constant 4 : index
    %c0_24 = arith.constant 0 : index
    %c0_25 = arith.constant 0 : index
    %47 = vector.load %arg2[%c4, %c0_24, %c0_25] : memref<9x16x1xf32, #tpu.memory_space<vmem>>, vector<1x16x1xf32>
    %48 = vector.shape_cast %47 : vector<1x16x1xf32> to vector<16x1xf32>
    %49 = vector.broadcast %48 : vector<16x1xf32> to vector<16x225xf32>
    %50 = vector.broadcast %20 : vector<1x225xf32> to vector<16x225xf32>
    %51 = arith.mulf %49, %50 : vector<16x225xf32>
    %52 = arith.addf %46, %51 : vector<16x225xf32>
    %c5 = arith.constant 5 : index
    %c0_26 = arith.constant 0 : index
    %c0_27 = arith.constant 0 : index
    %53 = vector.load %arg2[%c5, %c0_26, %c0_27] : memref<9x16x1xf32, #tpu.memory_space<vmem>>, vector<1x16x1xf32>
    %54 = vector.shape_cast %53 : vector<1x16x1xf32> to vector<16x1xf32>
    %55 = vector.broadcast %54 : vector<16x1xf32> to vector<16x225xf32>
    %56 = vector.broadcast %17 : vector<1x225xf32> to vector<16x225xf32>
    %57 = arith.mulf %55, %56 : vector<16x225xf32>
    %58 = arith.addf %52, %57 : vector<16x225xf32>
    %c6 = arith.constant 6 : index
    %c0_28 = arith.constant 0 : index
    %c0_29 = arith.constant 0 : index
    %59 = vector.load %arg2[%c6, %c0_28, %c0_29] : memref<9x16x1xf32, #tpu.memory_space<vmem>>, vector<1x16x1xf32>
    %60 = vector.shape_cast %59 : vector<1x16x1xf32> to vector<16x1xf32>
    %61 = vector.broadcast %60 : vector<16x1xf32> to vector<16x225xf32>
    %62 = vector.broadcast %10 : vector<1x225xf32> to vector<16x225xf32>
    %63 = arith.mulf %61, %62 : vector<16x225xf32>
    %64 = arith.addf %58, %63 : vector<16x225xf32>
    %c7 = arith.constant 7 : index
    %c0_30 = arith.constant 0 : index
    %c0_31 = arith.constant 0 : index
    %65 = vector.load %arg2[%c7, %c0_30, %c0_31] : memref<9x16x1xf32, #tpu.memory_space<vmem>>, vector<1x16x1xf32>
    %66 = vector.shape_cast %65 : vector<1x16x1xf32> to vector<16x1xf32>
    %67 = vector.broadcast %66 : vector<16x1xf32> to vector<16x225xf32>
    %68 = vector.broadcast %14 : vector<1x225xf32> to vector<16x225xf32>
    %69 = arith.mulf %67, %68 : vector<16x225xf32>
    %70 = arith.addf %64, %69 : vector<16x225xf32>
    %c8 = arith.constant 8 : index
    %c0_32 = arith.constant 0 : index
    %c0_33 = arith.constant 0 : index
    %71 = vector.load %arg2[%c8, %c0_32, %c0_33] : memref<9x16x1xf32, #tpu.memory_space<vmem>>, vector<1x16x1xf32>
    %72 = vector.shape_cast %71 : vector<1x16x1xf32> to vector<16x1xf32>
    %73 = vector.broadcast %72 : vector<16x1xf32> to vector<16x225xf32>
    %74 = vector.broadcast %11 : vector<1x225xf32> to vector<16x225xf32>
    %75 = arith.mulf %73, %74 : vector<16x225xf32>
    %76 = arith.addf %70, %75 : vector<16x225xf32>
    %c0_34 = arith.constant 0 : index
    %c0_35 = arith.constant 0 : index
    %c0_36 = arith.constant 0 : index
    %77 = vector.load %arg2[%c0_34, %c0_35, %c0_36] : memref<9x16x1xf32, #tpu.memory_space<vmem>>, vector<1x16x1xf32>
    %78 = vector.shape_cast %77 : vector<1x16x1xf32> to vector<16x1xf32>
    %79 = vector.broadcast %78 : vector<16x1xf32> to vector<16x225xf32>
    %80 = vector.broadcast %12 : vector<1x225xf32> to vector<16x225xf32>
    %81 = arith.mulf %79, %80 : vector<16x225xf32>
    %c1_37 = arith.constant 1 : index
    %c0_38 = arith.constant 0 : index
    %c0_39 = arith.constant 0 : index
    %82 = vector.load %arg2[%c1_37, %c0_38, %c0_39] : memref<9x16x1xf32, #tpu.memory_space<vmem>>, vector<1x16x1xf32>
    %83 = vector.shape_cast %82 : vector<1x16x1xf32> to vector<16x1xf32>
    %84 = vector.broadcast %83 : vector<16x1xf32> to vector<16x225xf32>
    %85 = vector.broadcast %9 : vector<1x225xf32> to vector<16x225xf32>
    %86 = arith.mulf %84, %85 : vector<16x225xf32>
    %87 = arith.addf %81, %86 : vector<16x225xf32>
    %c2_40 = arith.constant 2 : index
    %c0_41 = arith.constant 0 : index
    %c0_42 = arith.constant 0 : index
    %88 = vector.load %arg2[%c2_40, %c0_41, %c0_42] : memref<9x16x1xf32, #tpu.memory_space<vmem>>, vector<1x16x1xf32>
    %89 = vector.shape_cast %88 : vector<1x16x1xf32> to vector<16x1xf32>
    %90 = vector.broadcast %89 : vector<16x1xf32> to vector<16x225xf32>
    %91 = vector.broadcast %13 : vector<1x225xf32> to vector<16x225xf32>
    %92 = arith.mulf %90, %91 : vector<16x225xf32>
    %93 = arith.addf %87, %92 : vector<16x225xf32>
    %c3_43 = arith.constant 3 : index
    %c0_44 = arith.constant 0 : index
    %c0_45 = arith.constant 0 : index
    %94 = vector.load %arg2[%c3_43, %c0_44, %c0_45] : memref<9x16x1xf32, #tpu.memory_space<vmem>>, vector<1x16x1xf32>
    %95 = vector.shape_cast %94 : vector<1x16x1xf32> to vector<16x1xf32>
    %96 = vector.broadcast %95 : vector<16x1xf32> to vector<16x225xf32>
    %97 = vector.broadcast %20 : vector<1x225xf32> to vector<16x225xf32>
    %98 = arith.mulf %96, %97 : vector<16x225xf32>
    %99 = arith.addf %93, %98 : vector<16x225xf32>
    %c4_46 = arith.constant 4 : index
    %c0_47 = arith.constant 0 : index
    %c0_48 = arith.constant 0 : index
    %100 = vector.load %arg2[%c4_46, %c0_47, %c0_48] : memref<9x16x1xf32, #tpu.memory_space<vmem>>, vector<1x16x1xf32>
    %101 = vector.shape_cast %100 : vector<1x16x1xf32> to vector<16x1xf32>
    %102 = vector.broadcast %101 : vector<16x1xf32> to vector<16x225xf32>
    %103 = vector.broadcast %17 : vector<1x225xf32> to vector<16x225xf32>
    %104 = arith.mulf %102, %103 : vector<16x225xf32>
    %105 = arith.addf %99, %104 : vector<16x225xf32>
    %c5_49 = arith.constant 5 : index
    %c0_50 = arith.constant 0 : index
    %c0_51 = arith.constant 0 : index
    %106 = vector.load %arg2[%c5_49, %c0_50, %c0_51] : memref<9x16x1xf32, #tpu.memory_space<vmem>>, vector<1x16x1xf32>
    %107 = vector.shape_cast %106 : vector<1x16x1xf32> to vector<16x1xf32>
    %108 = vector.broadcast %107 : vector<16x1xf32> to vector<16x225xf32>
    %109 = vector.broadcast %21 : vector<1x225xf32> to vector<16x225xf32>
    %110 = arith.mulf %108, %109 : vector<16x225xf32>
    %111 = arith.addf %105, %110 : vector<16x225xf32>
    %c6_52 = arith.constant 6 : index
    %c0_53 = arith.constant 0 : index
    %c0_54 = arith.constant 0 : index
    %112 = vector.load %arg2[%c6_52, %c0_53, %c0_54] : memref<9x16x1xf32, #tpu.memory_space<vmem>>, vector<1x16x1xf32>
    %113 = vector.shape_cast %112 : vector<1x16x1xf32> to vector<16x1xf32>
    %114 = vector.broadcast %113 : vector<16x1xf32> to vector<16x225xf32>
    %115 = vector.broadcast %14 : vector<1x225xf32> to vector<16x225xf32>
    %116 = arith.mulf %114, %115 : vector<16x225xf32>
    %117 = arith.addf %111, %116 : vector<16x225xf32>
    %c7_55 = arith.constant 7 : index
    %c0_56 = arith.constant 0 : index
    %c0_57 = arith.constant 0 : index
    %118 = vector.load %arg2[%c7_55, %c0_56, %c0_57] : memref<9x16x1xf32, #tpu.memory_space<vmem>>, vector<1x16x1xf32>
    %119 = vector.shape_cast %118 : vector<1x16x1xf32> to vector<16x1xf32>
    %120 = vector.broadcast %119 : vector<16x1xf32> to vector<16x225xf32>
    %121 = vector.broadcast %11 : vector<1x225xf32> to vector<16x225xf32>
    %122 = arith.mulf %120, %121 : vector<16x225xf32>
    %123 = arith.addf %117, %122 : vector<16x225xf32>
    %c8_58 = arith.constant 8 : index
    %c0_59 = arith.constant 0 : index
    %c0_60 = arith.constant 0 : index
    %124 = vector.load %arg2[%c8_58, %c0_59, %c0_60] : memref<9x16x1xf32, #tpu.memory_space<vmem>>, vector<1x16x1xf32>
    %125 = vector.shape_cast %124 : vector<1x16x1xf32> to vector<16x1xf32>
    %126 = vector.broadcast %125 : vector<16x1xf32> to vector<16x225xf32>
    %127 = vector.broadcast %15 : vector<1x225xf32> to vector<16x225xf32>
    %128 = arith.mulf %126, %127 : vector<16x225xf32>
    %129 = arith.addf %123, %128 : vector<16x225xf32>
    %c0_61 = arith.constant 0 : index
    %c0_62 = arith.constant 0 : index
    %c0_63 = arith.constant 0 : index
    %130 = vector.load %arg2[%c0_61, %c0_62, %c0_63] : memref<9x16x1xf32, #tpu.memory_space<vmem>>, vector<1x16x1xf32>
    %131 = vector.shape_cast %130 : vector<1x16x1xf32> to vector<16x1xf32>
    %132 = vector.broadcast %131 : vector<16x1xf32> to vector<16x225xf32>
    %133 = vector.broadcast %16 : vector<1x225xf32> to vector<16x225xf32>
    %134 = arith.mulf %132, %133 : vector<16x225xf32>
    %c1_64 = arith.constant 1 : index
    %c0_65 = arith.constant 0 : index
    %c0_66 = arith.constant 0 : index
    %135 = vector.load %arg2[%c1_64, %c0_65, %c0_66] : memref<9x16x1xf32, #tpu.memory_space<vmem>>, vector<1x16x1xf32>
    %136 = vector.shape_cast %135 : vector<1x16x1xf32> to vector<16x1xf32>
    %137 = vector.broadcast %136 : vector<16x1xf32> to vector<16x225xf32>
    %138 = vector.broadcast %20 : vector<1x225xf32> to vector<16x225xf32>
    %139 = arith.mulf %137, %138 : vector<16x225xf32>
    %140 = arith.addf %134, %139 : vector<16x225xf32>
    %c2_67 = arith.constant 2 : index
    %c0_68 = arith.constant 0 : index
    %c0_69 = arith.constant 0 : index
    %141 = vector.load %arg2[%c2_67, %c0_68, %c0_69] : memref<9x16x1xf32, #tpu.memory_space<vmem>>, vector<1x16x1xf32>
    %142 = vector.shape_cast %141 : vector<1x16x1xf32> to vector<16x1xf32>
    %143 = vector.broadcast %142 : vector<16x1xf32> to vector<16x225xf32>
    %144 = vector.broadcast %17 : vector<1x225xf32> to vector<16x225xf32>
    %145 = arith.mulf %143, %144 : vector<16x225xf32>
    %146 = arith.addf %140, %145 : vector<16x225xf32>
    %c3_70 = arith.constant 3 : index
    %c0_71 = arith.constant 0 : index
    %c0_72 = arith.constant 0 : index
    %147 = vector.load %arg2[%c3_70, %c0_71, %c0_72] : memref<9x16x1xf32, #tpu.memory_space<vmem>>, vector<1x16x1xf32>
    %148 = vector.shape_cast %147 : vector<1x16x1xf32> to vector<16x1xf32>
    %149 = vector.broadcast %148 : vector<16x1xf32> to vector<16x225xf32>
    %150 = vector.broadcast %10 : vector<1x225xf32> to vector<16x225xf32>
    %151 = arith.mulf %149, %150 : vector<16x225xf32>
    %152 = arith.addf %146, %151 : vector<16x225xf32>
    %c4_73 = arith.constant 4 : index
    %c0_74 = arith.constant 0 : index
    %c0_75 = arith.constant 0 : index
    %153 = vector.load %arg2[%c4_73, %c0_74, %c0_75] : memref<9x16x1xf32, #tpu.memory_space<vmem>>, vector<1x16x1xf32>
    %154 = vector.shape_cast %153 : vector<1x16x1xf32> to vector<16x1xf32>
    %155 = vector.broadcast %154 : vector<16x1xf32> to vector<16x225xf32>
    %156 = vector.broadcast %14 : vector<1x225xf32> to vector<16x225xf32>
    %157 = arith.mulf %155, %156 : vector<16x225xf32>
    %158 = arith.addf %152, %157 : vector<16x225xf32>
    %c5_76 = arith.constant 5 : index
    %c0_77 = arith.constant 0 : index
    %c0_78 = arith.constant 0 : index
    %159 = vector.load %arg2[%c5_76, %c0_77, %c0_78] : memref<9x16x1xf32, #tpu.memory_space<vmem>>, vector<1x16x1xf32>
    %160 = vector.shape_cast %159 : vector<1x16x1xf32> to vector<16x1xf32>
    %161 = vector.broadcast %160 : vector<16x1xf32> to vector<16x225xf32>
    %162 = vector.broadcast %11 : vector<1x225xf32> to vector<16x225xf32>
    %163 = arith.mulf %161, %162 : vector<16x225xf32>
    %164 = arith.addf %158, %163 : vector<16x225xf32>
    %c6_79 = arith.constant 6 : index
    %c0_80 = arith.constant 0 : index
    %c0_81 = arith.constant 0 : index
    %165 = vector.load %arg2[%c6_79, %c0_80, %c0_81] : memref<9x16x1xf32, #tpu.memory_space<vmem>>, vector<1x16x1xf32>
    %166 = vector.shape_cast %165 : vector<1x16x1xf32> to vector<16x1xf32>
    %167 = vector.broadcast %166 : vector<16x1xf32> to vector<16x225xf32>
    %168 = vector.broadcast %18 : vector<1x225xf32> to vector<16x225xf32>
    %169 = arith.mulf %167, %168 : vector<16x225xf32>
    %170 = arith.addf %164, %169 : vector<16x225xf32>
    %c7_82 = arith.constant 7 : index
    %c0_83 = arith.constant 0 : index
    %c0_84 = arith.constant 0 : index
    %171 = vector.load %arg2[%c7_82, %c0_83, %c0_84] : memref<9x16x1xf32, #tpu.memory_space<vmem>>, vector<1x16x1xf32>
    %172 = vector.shape_cast %171 : vector<1x16x1xf32> to vector<16x1xf32>
    %173 = vector.broadcast %172 : vector<16x1xf32> to vector<16x225xf32>
    %174 = vector.broadcast %22 : vector<1x225xf32> to vector<16x225xf32>
    %175 = arith.mulf %173, %174 : vector<16x225xf32>
    %176 = arith.addf %170, %175 : vector<16x225xf32>
    %c8_85 = arith.constant 8 : index
    %c0_86 = arith.constant 0 : index
    %c0_87 = arith.constant 0 : index
    %177 = vector.load %arg2[%c8_85, %c0_86, %c0_87] : memref<9x16x1xf32, #tpu.memory_space<vmem>>, vector<1x16x1xf32>
    %178 = vector.shape_cast %177 : vector<1x16x1xf32> to vector<16x1xf32>
    %179 = vector.broadcast %178 : vector<16x1xf32> to vector<16x225xf32>
    %180 = vector.broadcast %19 : vector<1x225xf32> to vector<16x225xf32>
    %181 = arith.mulf %179, %180 : vector<16x225xf32>
    %182 = arith.addf %176, %181 : vector<16x225xf32>
    %c0_88 = arith.constant 0 : index
    %c0_89 = arith.constant 0 : index
    %c0_90 = arith.constant 0 : index
    %183 = vector.load %arg2[%c0_88, %c0_89, %c0_90] : memref<9x16x1xf32, #tpu.memory_space<vmem>>, vector<1x16x1xf32>
    %184 = vector.shape_cast %183 : vector<1x16x1xf32> to vector<16x1xf32>
    %185 = vector.broadcast %184 : vector<16x1xf32> to vector<16x225xf32>
    %186 = vector.broadcast %20 : vector<1x225xf32> to vector<16x225xf32>
    %187 = arith.mulf %185, %186 : vector<16x225xf32>
    %c1_91 = arith.constant 1 : index
    %c0_92 = arith.constant 0 : index
    %c0_93 = arith.constant 0 : index
    %188 = vector.load %arg2[%c1_91, %c0_92, %c0_93] : memref<9x16x1xf32, #tpu.memory_space<vmem>>, vector<1x16x1xf32>
    %189 = vector.shape_cast %188 : vector<1x16x1xf32> to vector<16x1xf32>
    %190 = vector.broadcast %189 : vector<16x1xf32> to vector<16x225xf32>
    %191 = vector.broadcast %17 : vector<1x225xf32> to vector<16x225xf32>
    %192 = arith.mulf %190, %191 : vector<16x225xf32>
    %193 = arith.addf %187, %192 : vector<16x225xf32>
    %c2_94 = arith.constant 2 : index
    %c0_95 = arith.constant 0 : index
    %c0_96 = arith.constant 0 : index
    %194 = vector.load %arg2[%c2_94, %c0_95, %c0_96] : memref<9x16x1xf32, #tpu.memory_space<vmem>>, vector<1x16x1xf32>
    %195 = vector.shape_cast %194 : vector<1x16x1xf32> to vector<16x1xf32>
    %196 = vector.broadcast %195 : vector<16x1xf32> to vector<16x225xf32>
    %197 = vector.broadcast %21 : vector<1x225xf32> to vector<16x225xf32>
    %198 = arith.mulf %196, %197 : vector<16x225xf32>
    %199 = arith.addf %193, %198 : vector<16x225xf32>
    %c3_97 = arith.constant 3 : index
    %c0_98 = arith.constant 0 : index
    %c0_99 = arith.constant 0 : index
    %200 = vector.load %arg2[%c3_97, %c0_98, %c0_99] : memref<9x16x1xf32, #tpu.memory_space<vmem>>, vector<1x16x1xf32>
    %201 = vector.shape_cast %200 : vector<1x16x1xf32> to vector<16x1xf32>
    %202 = vector.broadcast %201 : vector<16x1xf32> to vector<16x225xf32>
    %203 = vector.broadcast %14 : vector<1x225xf32> to vector<16x225xf32>
    %204 = arith.mulf %202, %203 : vector<16x225xf32>
    %205 = arith.addf %199, %204 : vector<16x225xf32>
    %c4_100 = arith.constant 4 : index
    %c0_101 = arith.constant 0 : index
    %c0_102 = arith.constant 0 : index
    %206 = vector.load %arg2[%c4_100, %c0_101, %c0_102] : memref<9x16x1xf32, #tpu.memory_space<vmem>>, vector<1x16x1xf32>
    %207 = vector.shape_cast %206 : vector<1x16x1xf32> to vector<16x1xf32>
    %208 = vector.broadcast %207 : vector<16x1xf32> to vector<16x225xf32>
    %209 = vector.broadcast %11 : vector<1x225xf32> to vector<16x225xf32>
    %210 = arith.mulf %208, %209 : vector<16x225xf32>
    %211 = arith.addf %205, %210 : vector<16x225xf32>
    %c5_103 = arith.constant 5 : index
    %c0_104 = arith.constant 0 : index
    %c0_105 = arith.constant 0 : index
    %212 = vector.load %arg2[%c5_103, %c0_104, %c0_105] : memref<9x16x1xf32, #tpu.memory_space<vmem>>, vector<1x16x1xf32>
    %213 = vector.shape_cast %212 : vector<1x16x1xf32> to vector<16x1xf32>
    %214 = vector.broadcast %213 : vector<16x1xf32> to vector<16x225xf32>
    %215 = vector.broadcast %15 : vector<1x225xf32> to vector<16x225xf32>
    %216 = arith.mulf %214, %215 : vector<16x225xf32>
    %217 = arith.addf %211, %216 : vector<16x225xf32>
    %c6_106 = arith.constant 6 : index
    %c0_107 = arith.constant 0 : index
    %c0_108 = arith.constant 0 : index
    %218 = vector.load %arg2[%c6_106, %c0_107, %c0_108] : memref<9x16x1xf32, #tpu.memory_space<vmem>>, vector<1x16x1xf32>
    %219 = vector.shape_cast %218 : vector<1x16x1xf32> to vector<16x1xf32>
    %220 = vector.broadcast %219 : vector<16x1xf32> to vector<16x225xf32>
    %221 = vector.broadcast %22 : vector<1x225xf32> to vector<16x225xf32>
    %222 = arith.mulf %220, %221 : vector<16x225xf32>
    %223 = arith.addf %217, %222 : vector<16x225xf32>
    %c7_109 = arith.constant 7 : index
    %c0_110 = arith.constant 0 : index
    %c0_111 = arith.constant 0 : index
    %224 = vector.load %arg2[%c7_109, %c0_110, %c0_111] : memref<9x16x1xf32, #tpu.memory_space<vmem>>, vector<1x16x1xf32>
    %225 = vector.shape_cast %224 : vector<1x16x1xf32> to vector<16x1xf32>
    %226 = vector.broadcast %225 : vector<16x1xf32> to vector<16x225xf32>
    %227 = vector.broadcast %19 : vector<1x225xf32> to vector<16x225xf32>
    %228 = arith.mulf %226, %227 : vector<16x225xf32>
    %229 = arith.addf %223, %228 : vector<16x225xf32>
    %c8_112 = arith.constant 8 : index
    %c0_113 = arith.constant 0 : index
    %c0_114 = arith.constant 0 : index
    %230 = vector.load %arg2[%c8_112, %c0_113, %c0_114] : memref<9x16x1xf32, #tpu.memory_space<vmem>>, vector<1x16x1xf32>
    %231 = vector.shape_cast %230 : vector<1x16x1xf32> to vector<16x1xf32>
    %232 = vector.broadcast %231 : vector<16x1xf32> to vector<16x225xf32>
    %233 = vector.broadcast %23 : vector<1x225xf32> to vector<16x225xf32>
    %234 = arith.mulf %232, %233 : vector<16x225xf32>
    %235 = arith.addf %229, %234 : vector<16x225xf32>
    %236 = arith.maximumf %76, %129 : vector<16x225xf32>
    %237 = arith.maximumf %182, %235 : vector<16x225xf32>
    %238 = arith.maximumf %236, %237 : vector<16x225xf32>
    %c0_115 = arith.constant 0 : index
    %c0_116 = arith.constant 0 : index
    %239 = vector.load %arg3[%c0_115, %c0_116] : memref<16x1xf32, #tpu.memory_space<vmem>>, vector<16x1xf32>
    %240 = vector.broadcast %239 : vector<16x1xf32> to vector<16x225xf32>
    %241 = arith.addf %238, %240 : vector<16x225xf32>
    %cst = arith.constant 0.000000e+00 : f32
    %242 = vector.broadcast %cst : f32 to vector<16x225xf32>
    %243 = arith.maximumf %241, %242 : vector<16x225xf32>
    %c0_117 = arith.constant 0 : index
    %c0_118 = arith.constant 0 : index
    %c0_119 = arith.constant 0 : index
    %244 = vector.load %arg4[%c0_117, %c0_118, %c0_119] : memref<1x16x225xf32, #tpu.memory_space<vmem>>, vector<1x16x225xf32>
    %245 = vector.shape_cast %244 : vector<1x16x225xf32> to vector<16x225xf32>
    %246 = vector.shape_cast %243 : vector<16x225xf32> to vector<1x16x225xf32>
    tpu.vector_store %arg4[%c0_117, %c0_118, %c0_119], %246 {strides = array<i32>} : memref<1x16x225xf32, #tpu.memory_space<vmem>>, vector<1x16x225xf32>,
    return
  }
  func.func @transform_0(%arg0: i32) -> (i32, i32, i32, i32) {
    %c0_i32 = arith.constant 0 : i32
    %c0_i32_0 = arith.constant 0 : i32
    %c0_i32_1 = arith.constant 0 : i32
    %c0_i32_2 = arith.constant 0 : i32
    return %arg0, %c0_i32, %c0_i32_0, %c0_i32_1 : i32, i32, i32, i32
  }
  func.func @transform_1(%arg0: i32) -> (i32, i32, i32) {
    %c0_i32 = arith.constant 0 : i32
    %c0_i32_0 = arith.constant 0 : i32
    %c0_i32_1 = arith.constant 0 : i32
    %c0_i32_2 = arith.constant 0 : i32
    return %c0_i32, %c0_i32_0, %c0_i32_1 : i32, i32, i32
  }
  func.func @transform_2(%arg0: i32) -> (i32, i32) {
    %c0_i32 = arith.constant 0 : i32
    %c0_i32_0 = arith.constant 0 : i32
    %c0_i32_1 = arith.constant 0 : i32
    return %c0_i32, %c0_i32_0 : i32, i32
  }
  func.func @transform_3(%arg0: i32) -> (i32, i32, i32) {
    %c0_i32 = arith.constant 0 : i32
    %c0_i32_0 = arith.constant 0 : i32
    %c0_i32_1 = arith.constant 0 : i32
    return %arg0, %c0_i32, %c0_i32_0 : i32, i32, i32
  }
}

module attributes {stable_mosaic.version = 11 : i64} {
  func.func @_conv_relu_pool_kernel(%arg0: i32, %arg1: memref<1x4x16x73xbf16, #tpu.memory_space<vmem>>, %arg2: memref<9x32x16xbf16, #tpu.memory_space<vmem>>, %arg3: memref<32x1xf32, #tpu.memory_space<vmem>>, %arg4: memref<1x32x64xf32, #tpu.memory_space<vmem>>) attributes {dimension_semantics = [#tpu.dimension_semantics<parallel>], iteration_bounds = array<i64: 2>, scalar_prefetch = 0 : i64, scratch_operands = 0 : i64, tpu.core_type = #tpu.core_type<tc>, window_params = [{transform_indices = @transform_0, window_bounds = array<i64: 1, 4, 16, 73>}, {pipeline_mode = #tpu.pipeline_mode<synchronous>, transform_indices = @transform_1, window_bounds = array<i64: 9, 32, 16>}, {pipeline_mode = #tpu.pipeline_mode<synchronous>, transform_indices = @transform_2, window_bounds = array<i64: 32, 1>}, {transform_indices = @transform_3, window_bounds = array<i64: 1, 32, 64>}]} {
    %c0 = arith.constant 0 : index
    %c0_0 = arith.constant 0 : index
    %c0_1 = arith.constant 0 : index
    %c0_2 = arith.constant 0 : index
    %0 = vector.load %arg1[%c0, %c0_0, %c0_1, %c0_2] : memref<1x4x16x73xbf16, #tpu.memory_space<vmem>>, vector<1x1x16x73xbf16>
    %1 = vector.shape_cast %0 : vector<1x1x16x73xbf16> to vector<16x73xbf16>
    %c0_3 = arith.constant 0 : index
    %c1 = arith.constant 1 : index
    %c0_4 = arith.constant 0 : index
    %c0_5 = arith.constant 0 : index
    %2 = vector.load %arg1[%c0_3, %c1, %c0_4, %c0_5] : memref<1x4x16x73xbf16, #tpu.memory_space<vmem>>, vector<1x1x16x73xbf16>
    %3 = vector.shape_cast %2 : vector<1x1x16x73xbf16> to vector<16x73xbf16>
    %c0_6 = arith.constant 0 : index
    %c2 = arith.constant 2 : index
    %c0_7 = arith.constant 0 : index
    %c0_8 = arith.constant 0 : index
    %4 = vector.load %arg1[%c0_6, %c2, %c0_7, %c0_8] : memref<1x4x16x73xbf16, #tpu.memory_space<vmem>>, vector<1x1x16x73xbf16>
    %5 = vector.shape_cast %4 : vector<1x1x16x73xbf16> to vector<16x73xbf16>
    %c0_9 = arith.constant 0 : index
    %c3 = arith.constant 3 : index
    %c0_10 = arith.constant 0 : index
    %c0_11 = arith.constant 0 : index
    %6 = vector.load %arg1[%c0_9, %c3, %c0_10, %c0_11] : memref<1x4x16x73xbf16, #tpu.memory_space<vmem>>, vector<1x1x16x73xbf16>
    %7 = vector.shape_cast %6 : vector<1x1x16x73xbf16> to vector<16x73xbf16>
    %8 = vector.extract_strided_slice %1 {offsets = [0, 0], sizes = [16, 64], strides = [1, 1]} : vector<16x73xbf16> to vector<16x64xbf16>
    %9 = vector.extract_strided_slice %1 {offsets = [0, 1], sizes = [16, 64], strides = [1, 1]} : vector<16x73xbf16> to vector<16x64xbf16>
    %10 = vector.extract_strided_slice %1 {offsets = [0, 8], sizes = [16, 64], strides = [1, 1]} : vector<16x73xbf16> to vector<16x64xbf16>
    %11 = vector.extract_strided_slice %1 {offsets = [0, 9], sizes = [16, 64], strides = [1, 1]} : vector<16x73xbf16> to vector<16x64xbf16>
    %12 = vector.extract_strided_slice %3 {offsets = [0, 0], sizes = [16, 64], strides = [1, 1]} : vector<16x73xbf16> to vector<16x64xbf16>
    %13 = vector.extract_strided_slice %3 {offsets = [0, 1], sizes = [16, 64], strides = [1, 1]} : vector<16x73xbf16> to vector<16x64xbf16>
    %14 = vector.extract_strided_slice %3 {offsets = [0, 8], sizes = [16, 64], strides = [1, 1]} : vector<16x73xbf16> to vector<16x64xbf16>
    %15 = vector.extract_strided_slice %3 {offsets = [0, 9], sizes = [16, 64], strides = [1, 1]} : vector<16x73xbf16> to vector<16x64xbf16>
    %16 = vector.extract_strided_slice %5 {offsets = [0, 0], sizes = [16, 64], strides = [1, 1]} : vector<16x73xbf16> to vector<16x64xbf16>
    %17 = vector.extract_strided_slice %5 {offsets = [0, 1], sizes = [16, 64], strides = [1, 1]} : vector<16x73xbf16> to vector<16x64xbf16>
    %18 = vector.extract_strided_slice %5 {offsets = [0, 8], sizes = [16, 64], strides = [1, 1]} : vector<16x73xbf16> to vector<16x64xbf16>
    %19 = vector.extract_strided_slice %5 {offsets = [0, 9], sizes = [16, 64], strides = [1, 1]} : vector<16x73xbf16> to vector<16x64xbf16>
    %20 = vector.extract_strided_slice %7 {offsets = [0, 0], sizes = [16, 64], strides = [1, 1]} : vector<16x73xbf16> to vector<16x64xbf16>
    %21 = vector.extract_strided_slice %7 {offsets = [0, 1], sizes = [16, 64], strides = [1, 1]} : vector<16x73xbf16> to vector<16x64xbf16>
    %22 = vector.extract_strided_slice %7 {offsets = [0, 8], sizes = [16, 64], strides = [1, 1]} : vector<16x73xbf16> to vector<16x64xbf16>
    %23 = vector.extract_strided_slice %7 {offsets = [0, 9], sizes = [16, 64], strides = [1, 1]} : vector<16x73xbf16> to vector<16x64xbf16>
    %c0_12 = arith.constant 0 : index
    %c0_13 = arith.constant 0 : index
    %c0_14 = arith.constant 0 : index
    %24 = vector.load %arg2[%c0_12, %c0_13, %c0_14] : memref<9x32x16xbf16, #tpu.memory_space<vmem>>, vector<1x32x16xbf16>
    %25 = vector.shape_cast %24 : vector<1x32x16xbf16> to vector<32x16xbf16>
    %cst = arith.constant dense<0.000000e+00> : vector<32x64xf32>
    %26 = tpu.matmul %25, %8, %cst {dimension_numbers = #tpu.dot_dimension_numbers<[1], [0], [0], [1], [0, 0, 1, 1], [], []>} : vector<32x16xbf16>, vector<16x64xbf16>, vector<32x64xf32> -> vector<32x64xf32>
    %c1_15 = arith.constant 1 : index
    %c0_16 = arith.constant 0 : index
    %c0_17 = arith.constant 0 : index
    %27 = vector.load %arg2[%c1_15, %c0_16, %c0_17] : memref<9x32x16xbf16, #tpu.memory_space<vmem>>, vector<1x32x16xbf16>
    %28 = vector.shape_cast %27 : vector<1x32x16xbf16> to vector<32x16xbf16>
    %cst_18 = arith.constant dense<0.000000e+00> : vector<32x64xf32>
    %29 = tpu.matmul %28, %12, %cst_18 {dimension_numbers = #tpu.dot_dimension_numbers<[1], [0], [0], [1], [0, 0, 1, 1], [], []>} : vector<32x16xbf16>, vector<16x64xbf16>, vector<32x64xf32> -> vector<32x64xf32>
    %30 = arith.addf %26, %29 : vector<32x64xf32>
    %c2_19 = arith.constant 2 : index
    %c0_20 = arith.constant 0 : index
    %c0_21 = arith.constant 0 : index
    %31 = vector.load %arg2[%c2_19, %c0_20, %c0_21] : memref<9x32x16xbf16, #tpu.memory_space<vmem>>, vector<1x32x16xbf16>
    %32 = vector.shape_cast %31 : vector<1x32x16xbf16> to vector<32x16xbf16>
    %cst_22 = arith.constant dense<0.000000e+00> : vector<32x64xf32>
    %33 = tpu.matmul %32, %9, %cst_22 {dimension_numbers = #tpu.dot_dimension_numbers<[1], [0], [0], [1], [0, 0, 1, 1], [], []>} : vector<32x16xbf16>, vector<16x64xbf16>, vector<32x64xf32> -> vector<32x64xf32>
    %34 = arith.addf %30, %33 : vector<32x64xf32>
    %c3_23 = arith.constant 3 : index
    %c0_24 = arith.constant 0 : index
    %c0_25 = arith.constant 0 : index
    %35 = vector.load %arg2[%c3_23, %c0_24, %c0_25] : memref<9x32x16xbf16, #tpu.memory_space<vmem>>, vector<1x32x16xbf16>
    %36 = vector.shape_cast %35 : vector<1x32x16xbf16> to vector<32x16xbf16>
    %cst_26 = arith.constant dense<0.000000e+00> : vector<32x64xf32>
    %37 = tpu.matmul %36, %16, %cst_26 {dimension_numbers = #tpu.dot_dimension_numbers<[1], [0], [0], [1], [0, 0, 1, 1], [], []>} : vector<32x16xbf16>, vector<16x64xbf16>, vector<32x64xf32> -> vector<32x64xf32>
    %38 = arith.addf %34, %37 : vector<32x64xf32>
    %c4 = arith.constant 4 : index
    %c0_27 = arith.constant 0 : index
    %c0_28 = arith.constant 0 : index
    %39 = vector.load %arg2[%c4, %c0_27, %c0_28] : memref<9x32x16xbf16, #tpu.memory_space<vmem>>, vector<1x32x16xbf16>
    %40 = vector.shape_cast %39 : vector<1x32x16xbf16> to vector<32x16xbf16>
    %cst_29 = arith.constant dense<0.000000e+00> : vector<32x64xf32>
    %41 = tpu.matmul %40, %20, %cst_29 {dimension_numbers = #tpu.dot_dimension_numbers<[1], [0], [0], [1], [0, 0, 1, 1], [], []>} : vector<32x16xbf16>, vector<16x64xbf16>, vector<32x64xf32> -> vector<32x64xf32>
    %42 = arith.addf %38, %41 : vector<32x64xf32>
    %c5 = arith.constant 5 : index
    %c0_30 = arith.constant 0 : index
    %c0_31 = arith.constant 0 : index
    %43 = vector.load %arg2[%c5, %c0_30, %c0_31] : memref<9x32x16xbf16, #tpu.memory_space<vmem>>, vector<1x32x16xbf16>
    %44 = vector.shape_cast %43 : vector<1x32x16xbf16> to vector<32x16xbf16>
    %cst_32 = arith.constant dense<0.000000e+00> : vector<32x64xf32>
    %45 = tpu.matmul %44, %17, %cst_32 {dimension_numbers = #tpu.dot_dimension_numbers<[1], [0], [0], [1], [0, 0, 1, 1], [], []>} : vector<32x16xbf16>, vector<16x64xbf16>, vector<32x64xf32> -> vector<32x64xf32>
    %46 = arith.addf %42, %45 : vector<32x64xf32>
    %c6 = arith.constant 6 : index
    %c0_33 = arith.constant 0 : index
    %c0_34 = arith.constant 0 : index
    %47 = vector.load %arg2[%c6, %c0_33, %c0_34] : memref<9x32x16xbf16, #tpu.memory_space<vmem>>, vector<1x32x16xbf16>
    %48 = vector.shape_cast %47 : vector<1x32x16xbf16> to vector<32x16xbf16>
    %cst_35 = arith.constant dense<0.000000e+00> : vector<32x64xf32>
    %49 = tpu.matmul %48, %10, %cst_35 {dimension_numbers = #tpu.dot_dimension_numbers<[1], [0], [0], [1], [0, 0, 1, 1], [], []>} : vector<32x16xbf16>, vector<16x64xbf16>, vector<32x64xf32> -> vector<32x64xf32>
    %50 = arith.addf %46, %49 : vector<32x64xf32>
    %c7 = arith.constant 7 : index
    %c0_36 = arith.constant 0 : index
    %c0_37 = arith.constant 0 : index
    %51 = vector.load %arg2[%c7, %c0_36, %c0_37] : memref<9x32x16xbf16, #tpu.memory_space<vmem>>, vector<1x32x16xbf16>
    %52 = vector.shape_cast %51 : vector<1x32x16xbf16> to vector<32x16xbf16>
    %cst_38 = arith.constant dense<0.000000e+00> : vector<32x64xf32>
    %53 = tpu.matmul %52, %14, %cst_38 {dimension_numbers = #tpu.dot_dimension_numbers<[1], [0], [0], [1], [0, 0, 1, 1], [], []>} : vector<32x16xbf16>, vector<16x64xbf16>, vector<32x64xf32> -> vector<32x64xf32>
    %54 = arith.addf %50, %53 : vector<32x64xf32>
    %c8 = arith.constant 8 : index
    %c0_39 = arith.constant 0 : index
    %c0_40 = arith.constant 0 : index
    %55 = vector.load %arg2[%c8, %c0_39, %c0_40] : memref<9x32x16xbf16, #tpu.memory_space<vmem>>, vector<1x32x16xbf16>
    %56 = vector.shape_cast %55 : vector<1x32x16xbf16> to vector<32x16xbf16>
    %cst_41 = arith.constant dense<0.000000e+00> : vector<32x64xf32>
    %57 = tpu.matmul %56, %11, %cst_41 {dimension_numbers = #tpu.dot_dimension_numbers<[1], [0], [0], [1], [0, 0, 1, 1], [], []>} : vector<32x16xbf16>, vector<16x64xbf16>, vector<32x64xf32> -> vector<32x64xf32>
    %58 = arith.addf %54, %57 : vector<32x64xf32>
    %c0_42 = arith.constant 0 : index
    %c0_43 = arith.constant 0 : index
    %c0_44 = arith.constant 0 : index
    %59 = vector.load %arg2[%c0_42, %c0_43, %c0_44] : memref<9x32x16xbf16, #tpu.memory_space<vmem>>, vector<1x32x16xbf16>
    %60 = vector.shape_cast %59 : vector<1x32x16xbf16> to vector<32x16xbf16>
    %cst_45 = arith.constant dense<0.000000e+00> : vector<32x64xf32>
    %61 = tpu.matmul %60, %12, %cst_45 {dimension_numbers = #tpu.dot_dimension_numbers<[1], [0], [0], [1], [0, 0, 1, 1], [], []>} : vector<32x16xbf16>, vector<16x64xbf16>, vector<32x64xf32> -> vector<32x64xf32>
    %c1_46 = arith.constant 1 : index
    %c0_47 = arith.constant 0 : index
    %c0_48 = arith.constant 0 : index
    %62 = vector.load %arg2[%c1_46, %c0_47, %c0_48] : memref<9x32x16xbf16, #tpu.memory_space<vmem>>, vector<1x32x16xbf16>
    %63 = vector.shape_cast %62 : vector<1x32x16xbf16> to vector<32x16xbf16>
    %cst_49 = arith.constant dense<0.000000e+00> : vector<32x64xf32>
    %64 = tpu.matmul %63, %9, %cst_49 {dimension_numbers = #tpu.dot_dimension_numbers<[1], [0], [0], [1], [0, 0, 1, 1], [], []>} : vector<32x16xbf16>, vector<16x64xbf16>, vector<32x64xf32> -> vector<32x64xf32>
    %65 = arith.addf %61, %64 : vector<32x64xf32>
    %c2_50 = arith.constant 2 : index
    %c0_51 = arith.constant 0 : index
    %c0_52 = arith.constant 0 : index
    %66 = vector.load %arg2[%c2_50, %c0_51, %c0_52] : memref<9x32x16xbf16, #tpu.memory_space<vmem>>, vector<1x32x16xbf16>
    %67 = vector.shape_cast %66 : vector<1x32x16xbf16> to vector<32x16xbf16>
    %cst_53 = arith.constant dense<0.000000e+00> : vector<32x64xf32>
    %68 = tpu.matmul %67, %13, %cst_53 {dimension_numbers = #tpu.dot_dimension_numbers<[1], [0], [0], [1], [0, 0, 1, 1], [], []>} : vector<32x16xbf16>, vector<16x64xbf16>, vector<32x64xf32> -> vector<32x64xf32>
    %69 = arith.addf %65, %68 : vector<32x64xf32>
    %c3_54 = arith.constant 3 : index
    %c0_55 = arith.constant 0 : index
    %c0_56 = arith.constant 0 : index
    %70 = vector.load %arg2[%c3_54, %c0_55, %c0_56] : memref<9x32x16xbf16, #tpu.memory_space<vmem>>, vector<1x32x16xbf16>
    %71 = vector.shape_cast %70 : vector<1x32x16xbf16> to vector<32x16xbf16>
    %cst_57 = arith.constant dense<0.000000e+00> : vector<32x64xf32>
    %72 = tpu.matmul %71, %20, %cst_57 {dimension_numbers = #tpu.dot_dimension_numbers<[1], [0], [0], [1], [0, 0, 1, 1], [], []>} : vector<32x16xbf16>, vector<16x64xbf16>, vector<32x64xf32> -> vector<32x64xf32>
    %73 = arith.addf %69, %72 : vector<32x64xf32>
    %c4_58 = arith.constant 4 : index
    %c0_59 = arith.constant 0 : index
    %c0_60 = arith.constant 0 : index
    %74 = vector.load %arg2[%c4_58, %c0_59, %c0_60] : memref<9x32x16xbf16, #tpu.memory_space<vmem>>, vector<1x32x16xbf16>
    %75 = vector.shape_cast %74 : vector<1x32x16xbf16> to vector<32x16xbf16>
    %cst_61 = arith.constant dense<0.000000e+00> : vector<32x64xf32>
    %76 = tpu.matmul %75, %17, %cst_61 {dimension_numbers = #tpu.dot_dimension_numbers<[1], [0], [0], [1], [0, 0, 1, 1], [], []>} : vector<32x16xbf16>, vector<16x64xbf16>, vector<32x64xf32> -> vector<32x64xf32>
    %77 = arith.addf %73, %76 : vector<32x64xf32>
    %c5_62 = arith.constant 5 : index
    %c0_63 = arith.constant 0 : index
    %c0_64 = arith.constant 0 : index
    %78 = vector.load %arg2[%c5_62, %c0_63, %c0_64] : memref<9x32x16xbf16, #tpu.memory_space<vmem>>, vector<1x32x16xbf16>
    %79 = vector.shape_cast %78 : vector<1x32x16xbf16> to vector<32x16xbf16>
    %cst_65 = arith.constant dense<0.000000e+00> : vector<32x64xf32>
    %80 = tpu.matmul %79, %21, %cst_65 {dimension_numbers = #tpu.dot_dimension_numbers<[1], [0], [0], [1], [0, 0, 1, 1], [], []>} : vector<32x16xbf16>, vector<16x64xbf16>, vector<32x64xf32> -> vector<32x64xf32>
    %81 = arith.addf %77, %80 : vector<32x64xf32>
    %c6_66 = arith.constant 6 : index
    %c0_67 = arith.constant 0 : index
    %c0_68 = arith.constant 0 : index
    %82 = vector.load %arg2[%c6_66, %c0_67, %c0_68] : memref<9x32x16xbf16, #tpu.memory_space<vmem>>, vector<1x32x16xbf16>
    %83 = vector.shape_cast %82 : vector<1x32x16xbf16> to vector<32x16xbf16>
    %cst_69 = arith.constant dense<0.000000e+00> : vector<32x64xf32>
    %84 = tpu.matmul %83, %14, %cst_69 {dimension_numbers = #tpu.dot_dimension_numbers<[1], [0], [0], [1], [0, 0, 1, 1], [], []>} : vector<32x16xbf16>, vector<16x64xbf16>, vector<32x64xf32> -> vector<32x64xf32>
    %85 = arith.addf %81, %84 : vector<32x64xf32>
    %c7_70 = arith.constant 7 : index
    %c0_71 = arith.constant 0 : index
    %c0_72 = arith.constant 0 : index
    %86 = vector.load %arg2[%c7_70, %c0_71, %c0_72] : memref<9x32x16xbf16, #tpu.memory_space<vmem>>, vector<1x32x16xbf16>
    %87 = vector.shape_cast %86 : vector<1x32x16xbf16> to vector<32x16xbf16>
    %cst_73 = arith.constant dense<0.000000e+00> : vector<32x64xf32>
    %88 = tpu.matmul %87, %11, %cst_73 {dimension_numbers = #tpu.dot_dimension_numbers<[1], [0], [0], [1], [0, 0, 1, 1], [], []>} : vector<32x16xbf16>, vector<16x64xbf16>, vector<32x64xf32> -> vector<32x64xf32>
    %89 = arith.addf %85, %88 : vector<32x64xf32>
    %c8_74 = arith.constant 8 : index
    %c0_75 = arith.constant 0 : index
    %c0_76 = arith.constant 0 : index
    %90 = vector.load %arg2[%c8_74, %c0_75, %c0_76] : memref<9x32x16xbf16, #tpu.memory_space<vmem>>, vector<1x32x16xbf16>
    %91 = vector.shape_cast %90 : vector<1x32x16xbf16> to vector<32x16xbf16>
    %cst_77 = arith.constant dense<0.000000e+00> : vector<32x64xf32>
    %92 = tpu.matmul %91, %15, %cst_77 {dimension_numbers = #tpu.dot_dimension_numbers<[1], [0], [0], [1], [0, 0, 1, 1], [], []>} : vector<32x16xbf16>, vector<16x64xbf16>, vector<32x64xf32> -> vector<32x64xf32>
    %93 = arith.addf %89, %92 : vector<32x64xf32>
    %c0_78 = arith.constant 0 : index
    %c0_79 = arith.constant 0 : index
    %c0_80 = arith.constant 0 : index
    %94 = vector.load %arg2[%c0_78, %c0_79, %c0_80] : memref<9x32x16xbf16, #tpu.memory_space<vmem>>, vector<1x32x16xbf16>
    %95 = vector.shape_cast %94 : vector<1x32x16xbf16> to vector<32x16xbf16>
    %cst_81 = arith.constant dense<0.000000e+00> : vector<32x64xf32>
    %96 = tpu.matmul %95, %16, %cst_81 {dimension_numbers = #tpu.dot_dimension_numbers<[1], [0], [0], [1], [0, 0, 1, 1], [], []>} : vector<32x16xbf16>, vector<16x64xbf16>, vector<32x64xf32> -> vector<32x64xf32>
    %c1_82 = arith.constant 1 : index
    %c0_83 = arith.constant 0 : index
    %c0_84 = arith.constant 0 : index
    %97 = vector.load %arg2[%c1_82, %c0_83, %c0_84] : memref<9x32x16xbf16, #tpu.memory_space<vmem>>, vector<1x32x16xbf16>
    %98 = vector.shape_cast %97 : vector<1x32x16xbf16> to vector<32x16xbf16>
    %cst_85 = arith.constant dense<0.000000e+00> : vector<32x64xf32>
    %99 = tpu.matmul %98, %20, %cst_85 {dimension_numbers = #tpu.dot_dimension_numbers<[1], [0], [0], [1], [0, 0, 1, 1], [], []>} : vector<32x16xbf16>, vector<16x64xbf16>, vector<32x64xf32> -> vector<32x64xf32>
    %100 = arith.addf %96, %99 : vector<32x64xf32>
    %c2_86 = arith.constant 2 : index
    %c0_87 = arith.constant 0 : index
    %c0_88 = arith.constant 0 : index
    %101 = vector.load %arg2[%c2_86, %c0_87, %c0_88] : memref<9x32x16xbf16, #tpu.memory_space<vmem>>, vector<1x32x16xbf16>
    %102 = vector.shape_cast %101 : vector<1x32x16xbf16> to vector<32x16xbf16>
    %cst_89 = arith.constant dense<0.000000e+00> : vector<32x64xf32>
    %103 = tpu.matmul %102, %17, %cst_89 {dimension_numbers = #tpu.dot_dimension_numbers<[1], [0], [0], [1], [0, 0, 1, 1], [], []>} : vector<32x16xbf16>, vector<16x64xbf16>, vector<32x64xf32> -> vector<32x64xf32>
    %104 = arith.addf %100, %103 : vector<32x64xf32>
    %c3_90 = arith.constant 3 : index
    %c0_91 = arith.constant 0 : index
    %c0_92 = arith.constant 0 : index
    %105 = vector.load %arg2[%c3_90, %c0_91, %c0_92] : memref<9x32x16xbf16, #tpu.memory_space<vmem>>, vector<1x32x16xbf16>
    %106 = vector.shape_cast %105 : vector<1x32x16xbf16> to vector<32x16xbf16>
    %cst_93 = arith.constant dense<0.000000e+00> : vector<32x64xf32>
    %107 = tpu.matmul %106, %10, %cst_93 {dimension_numbers = #tpu.dot_dimension_numbers<[1], [0], [0], [1], [0, 0, 1, 1], [], []>} : vector<32x16xbf16>, vector<16x64xbf16>, vector<32x64xf32> -> vector<32x64xf32>
    %108 = arith.addf %104, %107 : vector<32x64xf32>
    %c4_94 = arith.constant 4 : index
    %c0_95 = arith.constant 0 : index
    %c0_96 = arith.constant 0 : index
    %109 = vector.load %arg2[%c4_94, %c0_95, %c0_96] : memref<9x32x16xbf16, #tpu.memory_space<vmem>>, vector<1x32x16xbf16>
    %110 = vector.shape_cast %109 : vector<1x32x16xbf16> to vector<32x16xbf16>
    %cst_97 = arith.constant dense<0.000000e+00> : vector<32x64xf32>
    %111 = tpu.matmul %110, %14, %cst_97 {dimension_numbers = #tpu.dot_dimension_numbers<[1], [0], [0], [1], [0, 0, 1, 1], [], []>} : vector<32x16xbf16>, vector<16x64xbf16>, vector<32x64xf32> -> vector<32x64xf32>
    %112 = arith.addf %108, %111 : vector<32x64xf32>
    %c5_98 = arith.constant 5 : index
    %c0_99 = arith.constant 0 : index
    %c0_100 = arith.constant 0 : index
    %113 = vector.load %arg2[%c5_98, %c0_99, %c0_100] : memref<9x32x16xbf16, #tpu.memory_space<vmem>>, vector<1x32x16xbf16>
    %114 = vector.shape_cast %113 : vector<1x32x16xbf16> to vector<32x16xbf16>
    %cst_101 = arith.constant dense<0.000000e+00> : vector<32x64xf32>
    %115 = tpu.matmul %114, %11, %cst_101 {dimension_numbers = #tpu.dot_dimension_numbers<[1], [0], [0], [1], [0, 0, 1, 1], [], []>} : vector<32x16xbf16>, vector<16x64xbf16>, vector<32x64xf32> -> vector<32x64xf32>
    %116 = arith.addf %112, %115 : vector<32x64xf32>
    %c6_102 = arith.constant 6 : index
    %c0_103 = arith.constant 0 : index
    %c0_104 = arith.constant 0 : index
    %117 = vector.load %arg2[%c6_102, %c0_103, %c0_104] : memref<9x32x16xbf16, #tpu.memory_space<vmem>>, vector<1x32x16xbf16>
    %118 = vector.shape_cast %117 : vector<1x32x16xbf16> to vector<32x16xbf16>
    %cst_105 = arith.constant dense<0.000000e+00> : vector<32x64xf32>
    %119 = tpu.matmul %118, %18, %cst_105 {dimension_numbers = #tpu.dot_dimension_numbers<[1], [0], [0], [1], [0, 0, 1, 1], [], []>} : vector<32x16xbf16>, vector<16x64xbf16>, vector<32x64xf32> -> vector<32x64xf32>
    %120 = arith.addf %116, %119 : vector<32x64xf32>
    %c7_106 = arith.constant 7 : index
    %c0_107 = arith.constant 0 : index
    %c0_108 = arith.constant 0 : index
    %121 = vector.load %arg2[%c7_106, %c0_107, %c0_108] : memref<9x32x16xbf16, #tpu.memory_space<vmem>>, vector<1x32x16xbf16>
    %122 = vector.shape_cast %121 : vector<1x32x16xbf16> to vector<32x16xbf16>
    %cst_109 = arith.constant dense<0.000000e+00> : vector<32x64xf32>
    %123 = tpu.matmul %122, %22, %cst_109 {dimension_numbers = #tpu.dot_dimension_numbers<[1], [0], [0], [1], [0, 0, 1, 1], [], []>} : vector<32x16xbf16>, vector<16x64xbf16>, vector<32x64xf32> -> vector<32x64xf32>
    %124 = arith.addf %120, %123 : vector<32x64xf32>
    %c8_110 = arith.constant 8 : index
    %c0_111 = arith.constant 0 : index
    %c0_112 = arith.constant 0 : index
    %125 = vector.load %arg2[%c8_110, %c0_111, %c0_112] : memref<9x32x16xbf16, #tpu.memory_space<vmem>>, vector<1x32x16xbf16>
    %126 = vector.shape_cast %125 : vector<1x32x16xbf16> to vector<32x16xbf16>
    %cst_113 = arith.constant dense<0.000000e+00> : vector<32x64xf32>
    %127 = tpu.matmul %126, %19, %cst_113 {dimension_numbers = #tpu.dot_dimension_numbers<[1], [0], [0], [1], [0, 0, 1, 1], [], []>} : vector<32x16xbf16>, vector<16x64xbf16>, vector<32x64xf32> -> vector<32x64xf32>
    %128 = arith.addf %124, %127 : vector<32x64xf32>
    %c0_114 = arith.constant 0 : index
    %c0_115 = arith.constant 0 : index
    %c0_116 = arith.constant 0 : index
    %129 = vector.load %arg2[%c0_114, %c0_115, %c0_116] : memref<9x32x16xbf16, #tpu.memory_space<vmem>>, vector<1x32x16xbf16>
    %130 = vector.shape_cast %129 : vector<1x32x16xbf16> to vector<32x16xbf16>
    %cst_117 = arith.constant dense<0.000000e+00> : vector<32x64xf32>
    %131 = tpu.matmul %130, %20, %cst_117 {dimension_numbers = #tpu.dot_dimension_numbers<[1], [0], [0], [1], [0, 0, 1, 1], [], []>} : vector<32x16xbf16>, vector<16x64xbf16>, vector<32x64xf32> -> vector<32x64xf32>
    %c1_118 = arith.constant 1 : index
    %c0_119 = arith.constant 0 : index
    %c0_120 = arith.constant 0 : index
    %132 = vector.load %arg2[%c1_118, %c0_119, %c0_120] : memref<9x32x16xbf16, #tpu.memory_space<vmem>>, vector<1x32x16xbf16>
    %133 = vector.shape_cast %132 : vector<1x32x16xbf16> to vector<32x16xbf16>
    %cst_121 = arith.constant dense<0.000000e+00> : vector<32x64xf32>
    %134 = tpu.matmul %133, %17, %cst_121 {dimension_numbers = #tpu.dot_dimension_numbers<[1], [0], [0], [1], [0, 0, 1, 1], [], []>} : vector<32x16xbf16>, vector<16x64xbf16>, vector<32x64xf32> -> vector<32x64xf32>
    %135 = arith.addf %131, %134 : vector<32x64xf32>
    %c2_122 = arith.constant 2 : index
    %c0_123 = arith.constant 0 : index
    %c0_124 = arith.constant 0 : index
    %136 = vector.load %arg2[%c2_122, %c0_123, %c0_124] : memref<9x32x16xbf16, #tpu.memory_space<vmem>>, vector<1x32x16xbf16>
    %137 = vector.shape_cast %136 : vector<1x32x16xbf16> to vector<32x16xbf16>
    %cst_125 = arith.constant dense<0.000000e+00> : vector<32x64xf32>
    %138 = tpu.matmul %137, %21, %cst_125 {dimension_numbers = #tpu.dot_dimension_numbers<[1], [0], [0], [1], [0, 0, 1, 1], [], []>} : vector<32x16xbf16>, vector<16x64xbf16>, vector<32x64xf32> -> vector<32x64xf32>
    %139 = arith.addf %135, %138 : vector<32x64xf32>
    %c3_126 = arith.constant 3 : index
    %c0_127 = arith.constant 0 : index
    %c0_128 = arith.constant 0 : index
    %140 = vector.load %arg2[%c3_126, %c0_127, %c0_128] : memref<9x32x16xbf16, #tpu.memory_space<vmem>>, vector<1x32x16xbf16>
    %141 = vector.shape_cast %140 : vector<1x32x16xbf16> to vector<32x16xbf16>
    %cst_129 = arith.constant dense<0.000000e+00> : vector<32x64xf32>
    %142 = tpu.matmul %141, %14, %cst_129 {dimension_numbers = #tpu.dot_dimension_numbers<[1], [0], [0], [1], [0, 0, 1, 1], [], []>} : vector<32x16xbf16>, vector<16x64xbf16>, vector<32x64xf32> -> vector<32x64xf32>
    %143 = arith.addf %139, %142 : vector<32x64xf32>
    %c4_130 = arith.constant 4 : index
    %c0_131 = arith.constant 0 : index
    %c0_132 = arith.constant 0 : index
    %144 = vector.load %arg2[%c4_130, %c0_131, %c0_132] : memref<9x32x16xbf16, #tpu.memory_space<vmem>>, vector<1x32x16xbf16>
    %145 = vector.shape_cast %144 : vector<1x32x16xbf16> to vector<32x16xbf16>
    %cst_133 = arith.constant dense<0.000000e+00> : vector<32x64xf32>
    %146 = tpu.matmul %145, %11, %cst_133 {dimension_numbers = #tpu.dot_dimension_numbers<[1], [0], [0], [1], [0, 0, 1, 1], [], []>} : vector<32x16xbf16>, vector<16x64xbf16>, vector<32x64xf32> -> vector<32x64xf32>
    %147 = arith.addf %143, %146 : vector<32x64xf32>
    %c5_134 = arith.constant 5 : index
    %c0_135 = arith.constant 0 : index
    %c0_136 = arith.constant 0 : index
    %148 = vector.load %arg2[%c5_134, %c0_135, %c0_136] : memref<9x32x16xbf16, #tpu.memory_space<vmem>>, vector<1x32x16xbf16>
    %149 = vector.shape_cast %148 : vector<1x32x16xbf16> to vector<32x16xbf16>
    %cst_137 = arith.constant dense<0.000000e+00> : vector<32x64xf32>
    %150 = tpu.matmul %149, %15, %cst_137 {dimension_numbers = #tpu.dot_dimension_numbers<[1], [0], [0], [1], [0, 0, 1, 1], [], []>} : vector<32x16xbf16>, vector<16x64xbf16>, vector<32x64xf32> -> vector<32x64xf32>
    %151 = arith.addf %147, %150 : vector<32x64xf32>
    %c6_138 = arith.constant 6 : index
    %c0_139 = arith.constant 0 : index
    %c0_140 = arith.constant 0 : index
    %152 = vector.load %arg2[%c6_138, %c0_139, %c0_140] : memref<9x32x16xbf16, #tpu.memory_space<vmem>>, vector<1x32x16xbf16>
    %153 = vector.shape_cast %152 : vector<1x32x16xbf16> to vector<32x16xbf16>
    %cst_141 = arith.constant dense<0.000000e+00> : vector<32x64xf32>
    %154 = tpu.matmul %153, %22, %cst_141 {dimension_numbers = #tpu.dot_dimension_numbers<[1], [0], [0], [1], [0, 0, 1, 1], [], []>} : vector<32x16xbf16>, vector<16x64xbf16>, vector<32x64xf32> -> vector<32x64xf32>
    %155 = arith.addf %151, %154 : vector<32x64xf32>
    %c7_142 = arith.constant 7 : index
    %c0_143 = arith.constant 0 : index
    %c0_144 = arith.constant 0 : index
    %156 = vector.load %arg2[%c7_142, %c0_143, %c0_144] : memref<9x32x16xbf16, #tpu.memory_space<vmem>>, vector<1x32x16xbf16>
    %157 = vector.shape_cast %156 : vector<1x32x16xbf16> to vector<32x16xbf16>
    %cst_145 = arith.constant dense<0.000000e+00> : vector<32x64xf32>
    %158 = tpu.matmul %157, %19, %cst_145 {dimension_numbers = #tpu.dot_dimension_numbers<[1], [0], [0], [1], [0, 0, 1, 1], [], []>} : vector<32x16xbf16>, vector<16x64xbf16>, vector<32x64xf32> -> vector<32x64xf32>
    %159 = arith.addf %155, %158 : vector<32x64xf32>
    %c8_146 = arith.constant 8 : index
    %c0_147 = arith.constant 0 : index
    %c0_148 = arith.constant 0 : index
    %160 = vector.load %arg2[%c8_146, %c0_147, %c0_148] : memref<9x32x16xbf16, #tpu.memory_space<vmem>>, vector<1x32x16xbf16>
    %161 = vector.shape_cast %160 : vector<1x32x16xbf16> to vector<32x16xbf16>
    %cst_149 = arith.constant dense<0.000000e+00> : vector<32x64xf32>
    %162 = tpu.matmul %161, %23, %cst_149 {dimension_numbers = #tpu.dot_dimension_numbers<[1], [0], [0], [1], [0, 0, 1, 1], [], []>} : vector<32x16xbf16>, vector<16x64xbf16>, vector<32x64xf32> -> vector<32x64xf32>
    %163 = arith.addf %159, %162 : vector<32x64xf32>
    %164 = arith.maximumf %58, %93 : vector<32x64xf32>
    %165 = arith.maximumf %128, %163 : vector<32x64xf32>
    %166 = arith.maximumf %164, %165 : vector<32x64xf32>
    %c0_150 = arith.constant 0 : index
    %c0_151 = arith.constant 0 : index
    %167 = vector.load %arg3[%c0_150, %c0_151] : memref<32x1xf32, #tpu.memory_space<vmem>>, vector<32x1xf32>
    %168 = vector.broadcast %167 : vector<32x1xf32> to vector<32x64xf32>
    %169 = arith.addf %166, %168 : vector<32x64xf32>
    %cst_152 = arith.constant 0.000000e+00 : f32
    %170 = vector.broadcast %cst_152 : f32 to vector<32x64xf32>
    %171 = arith.maximumf %169, %170 : vector<32x64xf32>
    %c0_153 = arith.constant 0 : index
    %c0_154 = arith.constant 0 : index
    %c0_155 = arith.constant 0 : index
    %172 = vector.load %arg4[%c0_153, %c0_154, %c0_155] : memref<1x32x64xf32, #tpu.memory_space<vmem>>, vector<1x32x64xf32>
    %173 = vector.shape_cast %172 : vector<1x32x64xf32> to vector<32x64xf32>
    %174 = vector.shape_cast %171 : vector<32x64xf32> to vector<1x32x64xf32>
    tpu.vector_store %arg4[%c0_153, %c0_154, %c0_155], %174 {strides = array<i32>} : memref<1x32x64xf32, #tpu.memory_space<vmem>>, vector<1x32x64xf32>,
    return
  }
  func.func @transform_0(%arg0: i32) -> (i32, i32, i32, i32) {
    %c0_i32 = arith.constant 0 : i32
    %c0_i32_0 = arith.constant 0 : i32
    %c0_i32_1 = arith.constant 0 : i32
    %c0_i32_2 = arith.constant 0 : i32
    return %arg0, %c0_i32, %c0_i32_0, %c0_i32_1 : i32, i32, i32, i32
  }
  func.func @transform_1(%arg0: i32) -> (i32, i32, i32) {
    %c0_i32 = arith.constant 0 : i32
    %c0_i32_0 = arith.constant 0 : i32
    %c0_i32_1 = arith.constant 0 : i32
    %c0_i32_2 = arith.constant 0 : i32
    return %c0_i32, %c0_i32_0, %c0_i32_1 : i32, i32, i32
  }
  func.func @transform_2(%arg0: i32) -> (i32, i32) {
    %c0_i32 = arith.constant 0 : i32
    %c0_i32_0 = arith.constant 0 : i32
    %c0_i32_1 = arith.constant 0 : i32
    return %c0_i32, %c0_i32_0 : i32, i32
  }
  func.func @transform_3(%arg0: i32) -> (i32, i32, i32) {
    %c0_i32 = arith.constant 0 : i32
    %c0_i32_0 = arith.constant 0 : i32
    %c0_i32_1 = arith.constant 0 : i32
    return %arg0, %c0_i32, %c0_i32_0 : i32, i32, i32
  }
}

module attributes {stable_mosaic.version = 11 : i64} {
  func.func @_matmul_bias_kernel(%arg0: i32, %arg1: memref<2x2048xbf16, #tpu.memory_space<vmem>>, %arg2: memref<2048x10xbf16, #tpu.memory_space<vmem>>, %arg3: memref<1x10xf32, #tpu.memory_space<vmem>>, %arg4: memref<2x10xf32, #tpu.memory_space<vmem>>) attributes {dimension_semantics = [#tpu.dimension_semantics<parallel>], iteration_bounds = array<i64: 1>, scalar_prefetch = 0 : i64, scratch_operands = 0 : i64, tpu.core_type = #tpu.core_type<tc>, window_params = [{transform_indices = @transform_0, window_bounds = array<i64: 2, 2048>}, {pipeline_mode = #tpu.pipeline_mode<synchronous>, transform_indices = @transform_1, window_bounds = array<i64: 2048, 10>}, {pipeline_mode = #tpu.pipeline_mode<synchronous>, transform_indices = @transform_2, window_bounds = array<i64: 1, 10>}, {transform_indices = @transform_3, window_bounds = array<i64: 2, 10>}]} {
    %c0 = arith.constant 0 : index
    %c0_0 = arith.constant 0 : index
    %0 = vector.load %arg1[%c0, %c0_0] : memref<2x2048xbf16, #tpu.memory_space<vmem>>, vector<2x2048xbf16>
    %c0_1 = arith.constant 0 : index
    %c0_2 = arith.constant 0 : index
    %1 = vector.load %arg2[%c0_1, %c0_2] : memref<2048x10xbf16, #tpu.memory_space<vmem>>, vector<2048x10xbf16>
    %cst = arith.constant dense<0.000000e+00> : vector<2x10xf32>
    %2 = tpu.matmul %0, %1, %cst {dimension_numbers = #tpu.dot_dimension_numbers<[1], [0], [0], [1], [0, 0, 1, 1], [], []>} : vector<2x2048xbf16>, vector<2048x10xbf16>, vector<2x10xf32> -> vector<2x10xf32>
    %c0_3 = arith.constant 0 : index
    %c0_4 = arith.constant 0 : index
    %3 = vector.load %arg3[%c0_3, %c0_4] : memref<1x10xf32, #tpu.memory_space<vmem>>, vector<1x10xf32>
    %4 = vector.broadcast %3 : vector<1x10xf32> to vector<2x10xf32>
    %5 = arith.addf %2, %4 : vector<2x10xf32>
    %c0_5 = arith.constant 0 : index
    %c0_6 = arith.constant 0 : index
    %6 = vector.load %arg4[%c0_5, %c0_6] : memref<2x10xf32, #tpu.memory_space<vmem>>, vector<2x10xf32>
    tpu.vector_store %arg4[%c0_5, %c0_6], %5 {strides = array<i32>} : memref<2x10xf32, #tpu.memory_space<vmem>>, vector<2x10xf32>,
    return
  }
  func.func @transform_0(%arg0: i32) -> (i32, i32) {
    %c0_i32 = arith.constant 0 : i32
    %c0_i32_0 = arith.constant 0 : i32
    return %arg0, %c0_i32 : i32, i32
  }
  func.func @transform_1(%arg0: i32) -> (i32, i32) {
    %c0_i32 = arith.constant 0 : i32
    %c0_i32_0 = arith.constant 0 : i32
    %c0_i32_1 = arith.constant 0 : i32
    return %c0_i32, %c0_i32_0 : i32, i32
  }
  func.func @transform_2(%arg0: i32) -> (i32, i32) {
    %c0_i32 = arith.constant 0 : i32
    %c0_i32_0 = arith.constant 0 : i32
    %c0_i32_1 = arith.constant 0 : i32
    return %c0_i32, %c0_i32_0 : i32, i32
  }
  func.func @transform_3(%arg0: i32) -> (i32, i32) {
    %c0_i32 = arith.constant 0 : i32
    %c0_i32_0 = arith.constant 0 : i32
    return %arg0, %c0_i32 : i32, i32
  }
}

</mosaic_0001>

<bundles_post_ra>
// kernel: cnn_forward.3
= control target key start
LH: loop header
LB: loop body
LE: loop exit
PB: predicated region body
PF: predicated region fallthrough
CT: control target
= control target key end

     0   :  { %s1264_s12 = smov 0   ;;  %s1929_s0 = inlined_call_operand.vmem [shape: f32[2,4,1,241], index: 0, kind: input, shape index: {}]   ;;  %s1930_s1 = inlined_call_operand.vmem [shape: f32[9,16,1], index: 1, kind: input, shape index: {}]   ;;  %s1931_s2 = inlined_call_operand.vmem [shape: f32[16,1], index: 2, kind: input, shape index: {}]   ;;  %s1932_s3 = inlined_call_operand.vmem [shape: f32[2,16,225], index: 3, kind: output, shape index: {}]  }
   0x1 LB: > { %s1188_s13 = sadd.s32 4294967295, %s1238_s12   ;;  %p1192_p0 = scmp.ge.s32.totalorder %s1238_s12, 1  ;;  %s1238_s12 = sphi %s1264_s12, %s13_s12  }
   0x2   : > { %p136_p1 = scmp.lt.s32.totalorder %s1238_s12, 3 }
   0x4   : > { %p137_p2 = pnand %p1192_p0, %p136_p1 }
   0x5   : > { %v1199_v0 = vld [vmem:[%s1930_s1 + $0x10] sm:$0xff] (!%p137_p2)  ;;  %v175_v1 = vld [vmem:[%s1930_s1] sm:$0xff] (!%p137_p2)  ;;  %p159_p3 = scmp.lt.s32.totalorder (!%p137_p2), %s1188_s13, 1  ;;  %v188_v2 = vlaneseq (!%p137_p2)  ;;  %v1240_v3 = vmov (!%p137_p2), 0   ;;  %v1200_v5 = vld [vmem:[%s1930_s1 + $0x18] sm:$0xff] (!%p137_p2)  ;;  %s1242_s30 = smov (!%p137_p2), 113  }
   0x6   : > { %140 = sbr.rel (%p137_p2) target bundleno = 499 (0x1f3), region = 32  ;;  %1231 = vset.pattern.permute.xlu1 (!%p137_p2), %v1240_v3  ;;  %1230 = vset.pattern.permute.xlu0 (!%p137_p2), %v1240_v3  ;;  %v176_v6 = vld [vmem:[%s1930_s1 + $0x8] sm:$0xff] (!%p137_p2)  ;;  %v1201_v10 = vld [vmem:[%s1930_s1 + $0x20] sm:$0xff] (!%p137_p2)  ;;  %v1204_v14 = vld [vmem:[%s1930_s1 + $0x38] sm:$0xff] (!%p137_p2)  ;;  %s1243_s4 = smov (!%p137_p2), 112   ;;  %vm263_vm0 = vcmask (!%p137_p2), 1039360  }
   0x7   : > { %207 = vperm.xlu1 (!%p137_p2), %1231, %v1199_v0   ;;  %179 = vperm.xlu0 (!%p137_p2), %1230, %v175_v1   ;;  %v189_v4 = vshrl.u32 (!%p137_p2), %v188_v2, 7  ;;  %v1202_v9 = vld [vmem:[%s1930_s1 + $0x28] sm:$0xff] (!%p137_p2)  ;;  %v1203_v15 = vld [vmem:[%s1930_s1 + $0x30] sm:$0xff] (!%p137_p2)  ;;  %v1205_v17 = vld [vmem:[%s1930_s1 + $0x40] sm:$0xff] (!%p137_p2)  ;;  %vm406_vm1 = vcmask (!%p137_p2), 924672   ;;  %vm485_vm2 = vcmask (!%p137_p2), 916480  }
   0x8   : > { %v1206_v16 = vld [vmem:[%s1930_s1 + $0x48] sm:$0xff] (!%p137_p2)  ;;  %v1208_v18 = vld [vmem:[%s1930_s1 + $0x58] sm:$0xff] (!%p137_p2)  ;;  %v1207_v19 = vld [vmem:[%s1930_s1 + $0x50] sm:$0xff] (!%p137_p2)  ;;  %vm1129_vm3 = vcmask (!%p137_p2), 793600  }
   0x9   : > { %v194_v7 = vsub.s32 (!%p137_p2), 1, %v189_v4  ;;  %v190_v8 = vsub.s32 (!%p137_p2), 0, %v189_v4  ;;  %v1210_v20 = vld [vmem:[%s1930_s1 + $0x68] sm:$0xff] (!%p137_p2)  ;;  %v1209_v21 = vld [vmem:[%s1930_s1 + $0x60] sm:$0xff] (!%p137_p2)  ;;  %v1212_v22 = vld [vmem:[%s1930_s1 + $0x78] sm:$0xff] (!%p137_p2) }
   0xa   : > { %v1211_v23 = vld [vmem:[%s1930_s1 + $0x70] sm:$0xff] (!%p137_p2)  ;;  %v1214_v24 = vld [vmem:[%s1930_s1 + $0x88] sm:$0xff] (!%p137_p2)  ;;  %v1213_v25 = vld [vmem:[%s1930_s1 + $0x80] sm:$0xff] (!%p137_p2) }
   0xb   : > { %212 = vperm.xlu1 (!%p137_p2), %1231, %v1200_v5   ;;  %184 = vperm.xlu0 (!%p137_p2), %1230, %v176_v6  }
   0xd   : > { %s1934_s13 = smov (!%p159_p3, %s1188_s13), 1 }
   0xe   : > { %s1193_s22 = sshll.u32 %s1934_s13, 3  ;;  %s1217_s9 = sshll.u32 %s1934_s13, 5 }
   0xf   : > { %s1290_s25 = scalar_lea.vmem %s1929_s0, %s1193_s22  ;;  %244 = vperm.xlu1 %1231, %v1202_v9   ;;  %239 = vperm.xlu0 %1230, %v1201_v10   ;;  %s167_s14 = scalar_lea.vmem %s1932_s3, %s1217_s9 }
  0x10   : > { %v1198_v11 = vld [vmem:[%s1290_s25 + $0x6] sm:$0x3]  ;;  %v168_v26 = vld [vmem:[%s1290_s25] sm:$0x3]  ;;  %v1196_v27 = vld [vmem:[%s1290_s25 + $0x2] sm:$0x3] }
  0x11   : > { %v1299_v12 = vrot.slane %v1198_v11, %v194_v7  ;;  %v1301_v13 = vrot.slane %v1198_v11, %v190_v8  ;;  %v1197_v28 = vld [vmem:[%s1290_s25 + $0x4] sm:$0x3]  ;;  %v1342_v29 = vrot.slane %v168_v26, %v194_v7  ;;  %v1344_v30 = vrot.slane %v1196_v27, %v194_v7  ;;  %s1241_s25 = smov 127  }
  0x12   : > { %v1346_v31 = vrot.slane %v168_v26, %v190_v8  ;;  %v1348_v32 = vrot.slane %v1196_v27, %v190_v8  ;;  %v1350_v33 = vrot.slane %v1197_v28, %v194_v7  ;;  %v1356_v36 = vrot.slane %v1197_v28, %v190_v8 }
  0x13   : > { %284 = vperm.xlu1 %1231, %v1204_v14   ;;  %279 = vperm.xlu0 %1230, %v1203_v15  }
  0x17   : > { %316 = vperm.xlu1 %1231, %v1206_v16   ;;  %311 = vperm.xlu0 %1230, %v1205_v17  }
  0x1b   : > { %348 = vperm.xlu1 %1231, %v1208_v18   ;;  %343 = vperm.xlu0 %1230, %v1207_v19  }
  0x1f   : > { %387 = vperm.xlu1 %1231, %v1210_v20   ;;  %382 = vperm.xlu0 %1230, %v1209_v21  }
  0x23   : > { %427 = vperm.xlu1 %1231, %v1212_v22   ;;  %422 = vperm.xlu0 %1230, %v1211_v23  }
  0x27   : > { %466 = vperm.xlu1 %1231, %v1214_v24   ;;  %461 = vperm.xlu0 %1230, %v1213_v25  }
  0x86   : > { %v1352_v34 = vpop.permute.xlu1 %207  ;;  %v1354_v35 = vpop.permute.xlu0 %179 }
  0x87   : > { %v227_v37 = vmul.f32 %v1344_v30, %v1352_v34  ;;  %v199_v38 = vmul.f32 %v1342_v29, %v1354_v35  ;;  %v226_v39 = vmul.f32 %v1348_v32, %v1352_v34  ;;  %v198_v40 = vmul.f32 %v1346_v31, %v1354_v35 }
  0x88   : > { %v691_v42 = vmul.f32 %v1350_v33, %v1354_v35  ;;  %v695_v46 = vmul.f32 %v1299_v12, %v1352_v34  ;;  %v690_v47 = vmul.f32 %v1356_v36, %v1354_v35  ;;  %v694_v48 = vmul.f32 %v1301_v13, %v1352_v34 }
  0x89   : > { %v1366_v41 = vadd.f32 %v227_v37, %v199_v38  ;;  %v1374_v45 = vadd.f32 %v226_v39, %v198_v40 }
  0x8a   : > { %v1370_v43 = vpop.permute.xlu1 %212  ;;  %v1372_v44 = vpop.permute.xlu0 %184  ;;  %v1392_v54 = vadd.f32 %v695_v46, %v691_v42  ;;  %v1400_v58 = vadd.f32 %v694_v48, %v690_v47  ;;  %v501_v47 = vmul.f32 %v1352_v34, %v1342_v29  ;;  %v500_v48 = vmul.f32 %v1352_v34, %v1346_v31 }
  0x8b   : > { %v229_v49 = vmul.f32 %v1344_v30, %v1370_v43  ;;  %v201_v50 = vmul.f32 %v1342_v29, %v1372_v44  ;;  %v228_v51 = vmul.f32 %v1348_v32, %v1370_v43  ;;  %v200_v52 = vmul.f32 %v1346_v31, %v1372_v44 }
  0x8c   : > { %v693_v18 = vmul.f32 %v1350_v33, %v1372_v44  ;;  %v697_v19 = vmul.f32 %v1299_v12, %v1370_v43  ;;  %v692_v24 = vmul.f32 %v1356_v36, %v1372_v44  ;;  %v696_v25 = vmul.f32 %v1301_v13, %v1370_v43 }
  0x8d   : > { %v1390_v53 = vadd.f32 %v229_v49, %v201_v50  ;;  %v1398_v57 = vadd.f32 %v228_v51, %v200_v52  ;;  %v503_v49 = vmul.f32 %v1370_v43, %v1342_v29  ;;  %v502_v50 = vmul.f32 %v1370_v43, %v1346_v31 }
  0x8e   : > { %v1394_v55 = vpop.permute.xlu1 %244  ;;  %v1396_v56 = vpop.permute.xlu0 %239  ;;  %v1466_v23 = vadd.f32 %v697_v19, %v693_v18  ;;  %v1478_v28 = vadd.f32 %v696_v25, %v692_v24 }
  0x8f   : > { %v248_v59 = vmul.f32 %v1396_v56, %v1342_v29  ;;  %v247_v60 = vmul.f32 %v1396_v56, %v1346_v31  ;;  %v250_v63 = vmul.f32 %v1394_v55, %v1342_v29  ;;  %v249_v0 = vmul.f32 %v1394_v55, %v1346_v31 }
  0x90   : > { %v527_v51 = vmul.f32 %v1396_v56, %v1344_v30  ;;  %v526_v52 = vmul.f32 %v1396_v56, %v1348_v32 }
  0x91   : > { %257 = vrot.lane.b32.xlu1 %v248_v59, %s1241_s25  ;;  %255 = vrot.lane.b32.xlu0 %v247_v60, %s1241_s25  ;;  %v529_v59 = vmul.f32 %v1394_v55, %v1344_v30  ;;  %v528_v60 = vmul.f32 %v1394_v55, %v1348_v32 }
  0x92   : > { %v1408_v61 = vpop.permute.xlu1 %284  ;;  %v1410_v62 = vpop.permute.xlu0 %279 }
  0x95   : > { %261 = vrot.lane.b32.xlu1 %v250_v63, %s1241_s25  ;;  %259 = vrot.lane.b32.xlu0 %v249_v0, %s1241_s25 }
  0x96   : > { %v1418_v1 = vpop.permute.xlu1 %316  ;;  %v1420_v2 = vpop.permute.xlu0 %311 }
  0x97   : > { %v561_v63 = vmul.f32 %v1420_v2, %v1350_v33  ;;  %v560_v0 = vmul.f32 %v1420_v2, %v1356_v36 }
  0x9a   : > { %v1422_v3 = vpop.permute.xlu0 %343  ;;  %v1428_v6 = vpop.permute.xlu1 %348 }
  0x9b   : > { %v352_v4 = vmul.f32 %v1422_v3, %v1350_v33  ;;  %v351_v5 = vmul.f32 %v1422_v3, %v1356_v36  ;;  %v354_v7 = vmul.f32 %v1428_v6, %v1350_v33  ;;  %v353_v8 = vmul.f32 %v1428_v6, %v1356_v36 }
  0x9d   : > { %361 = vrot.lane.b32.xlu1 %v352_v4, %s1241_s25  ;;  %359 = vrot.lane.b32.xlu0 %v351_v5, %s1241_s25  ;;  %v563_v4 = vmul.f32 %v1418_v1, %v1350_v33  ;;  %v562_v5 = vmul.f32 %v1418_v1, %v1356_v36 }
  0x9e   : > { %v1436_v9 = vpop.permute.xlu0 %382  ;;  %v1444_v14 = vpop.permute.xlu1 %387 }
  0x9f   : > { %v391_v10 = vmul.f32 %v1436_v9, %v1342_v29  ;;  %v390_v11 = vmul.f32 %v1436_v9, %v1346_v31  ;;  %v393_v15 = vmul.f32 %v1444_v14, %v1342_v29  ;;  %v392_v16 = vmul.f32 %v1444_v14, %v1346_v31 }
  0xa0   : > { %v615_v18 = vmul.f32 %v1444_v14, %v1344_v30  ;;  %v614_v19 = vmul.f32 %v1444_v14, %v1348_v32 }
  0xa1   : > { %365 = vrot.lane.b32.xlu1 %v354_v7, %s1241_s25  ;;  %363 = vrot.lane.b32.xlu0 %v353_v8, %s1241_s25  ;;  %v587_v7 = vmul.f32 %v1422_v3, %v1299_v12  ;;  %v586_v8 = vmul.f32 %v1422_v3, %v1301_v13 }
  0xa2   : > { %v1452_v17 = vpop.permute.xlu0 %422  ;;  %v1464_v22 = vpop.permute.xlu1 %427 }
  0xa3   : > { %v431_v20 = vmul.f32 %v1452_v17, %v1344_v30  ;;  %v430_v21 = vmul.f32 %v1452_v17, %v1348_v32  ;;  %v433_v26 = vmul.f32 %v1464_v22, %v1344_v30  ;;  %v432_v27 = vmul.f32 %v1464_v22, %v1348_v32 }
  0xa4   : > { %v641_v24 = vmul.f32 %v1464_v22, %v1342_v29  ;;  %v640_v25 = vmul.f32 %v1464_v22, %v1346_v31 }
  0xa5   : > { %400 = vrot.lane.b32.xlu1 %v391_v10, %s1242_s30  ;;  %398 = vrot.lane.b32.xlu0 %v390_v11, %s1242_s30  ;;  %v589_v10 = vmul.f32 %v1428_v6, %v1299_v12  ;;  %v588_v11 = vmul.f32 %v1428_v6, %v1301_v13 }
  0xa6   : > { %v1480_v37 = vpop.permute.xlu0 %461  ;;  %v1488_v40 = vpop.permute.xlu1 %466 }
  0xa7   : > { %v470_v38 = vmul.f32 %v1480_v37, %v1342_v29  ;;  %v469_v39 = vmul.f32 %v1480_v37, %v1346_v31  ;;  %v472_v42 = vmul.f32 %v1488_v40, %v1342_v29  ;;  %v471_v46 = vmul.f32 %v1488_v40, %v1346_v31 }
  0xa9   : > { %404 = vrot.lane.b32.xlu1 %v393_v15, %s1242_s30  ;;  %402 = vrot.lane.b32.xlu0 %v392_v16, %s1242_s30  ;;  %v613_v15 = vmul.f32 %v1436_v9, %v1344_v30  ;;  %v612_v16 = vmul.f32 %v1436_v9, %v1348_v32 }
  0xad   : > { %440 = vrot.lane.b32.xlu1 %v431_v20, %s1242_s30  ;;  %438 = vrot.lane.b32.xlu0 %v430_v21, %s1242_s30  ;;  %v639_v20 = vmul.f32 %v1452_v17, %v1342_v29  ;;  %v638_v21 = vmul.f32 %v1452_v17, %v1346_v31 }
  0xb1   : > { %444 = vrot.lane.b32.xlu1 %v433_v26, %s1242_s30  ;;  %442 = vrot.lane.b32.xlu0 %v432_v27, %s1242_s30  ;;  %v665_v26 = vmul.f32 %v1480_v37, %v1344_v30  ;;  %v664_v27 = vmul.f32 %v1480_v37, %v1348_v32 }
  0xb5   : > { %479 = vrot.lane.b32.xlu1 %v470_v38, %s1243_s4  ;;  %477 = vrot.lane.b32.xlu0 %v469_v39, %s1243_s4  ;;  %v667_v38 = vmul.f32 %v1488_v40, %v1344_v30  ;;  %v666_v39 = vmul.f32 %v1488_v40, %v1348_v32 }
  0xb9   : > { %483 = vrot.lane.b32.xlu1 %v472_v42, %s1243_s4  ;;  %481 = vrot.lane.b32.xlu0 %v471_v46, %s1243_s4  ;;  %v703_v42 = vmul.f32 %v1350_v33, %v1396_v56  ;;  %v702_v46 = vmul.f32 %v1356_v36, %v1396_v56 }
  0xbd   : > { %510 = vrot.lane.b32.xlu1 %v501_v47, %s1241_s25  ;;  %508 = vrot.lane.b32.xlu0 %v500_v48, %s1241_s25  ;;  %v705_v47 = vmul.f32 %v1350_v33, %v1394_v55  ;;  %v704_v48 = vmul.f32 %v1356_v36, %v1394_v55 }
  0xc1   : > { %514 = vrot.lane.b32.xlu1 %v503_v49, %s1241_s25  ;;  %512 = vrot.lane.b32.xlu0 %v502_v50, %s1241_s25  ;;  %v729_v49 = vmul.f32 %v1410_v62, %v1342_v29  ;;  %v728_v50 = vmul.f32 %v1410_v62, %v1346_v31 }
  0xc5   : > { %536 = vrot.lane.b32.xlu1 %v527_v51, %s1241_s25  ;;  %534 = vrot.lane.b32.xlu0 %v526_v52, %s1241_s25  ;;  %v731_v51 = vmul.f32 %v1408_v61, %v1342_v29  ;;  %v730_v52 = vmul.f32 %v1408_v61, %v1346_v31 }
  0xc9   : > { %540 = vrot.lane.b32.xlu1 %v529_v59, %s1241_s25  ;;  %538 = vrot.lane.b32.xlu0 %v528_v60, %s1241_s25 }
  0xcd   : > { %570 = vrot.lane.b32.xlu1 %v561_v63, %s1241_s25  ;;  %568 = vrot.lane.b32.xlu0 %v560_v0, %s1241_s25  ;;  %v755_v63 = vmul.f32 %v1420_v2, %v1344_v30  ;;  %v754_v0 = vmul.f32 %v1420_v2, %v1348_v32 }
  0xd1   : > { %574 = vrot.lane.b32.xlu1 %v563_v4, %s1241_s25  ;;  %572 = vrot.lane.b32.xlu0 %v562_v5, %s1241_s25  ;;  %v299_v4 = vmul.f32 %v1350_v33, %v1410_v62 }
  0xd5   : > { %596 = vrot.lane.b32.xlu1 %v587_v7, %s1241_s25  ;;  %594 = vrot.lane.b32.xlu0 %v586_v8, %s1241_s25  ;;  %v298_v8 = vmul.f32 %v1356_v36, %v1410_v62 }
  0xd9   : > { %600 = vrot.lane.b32.xlu1 %v589_v10, %s1241_s25  ;;  %598 = vrot.lane.b32.xlu0 %v588_v11, %s1241_s25 }
  0xdd   : > { %622 = vrot.lane.b32.xlu1 %v613_v15, %s1242_s30  ;;  %620 = vrot.lane.b32.xlu0 %v612_v16, %s1242_s30  ;;  %v331_v15 = vmul.f32 %v1299_v12, %v1420_v2 }
  0xe1   : > { %626 = vrot.lane.b32.xlu1 %v615_v18, %s1242_s30  ;;  %624 = vrot.lane.b32.xlu0 %v614_v19, %s1242_s30 }
  0xe5   : > { %648 = vrot.lane.b32.xlu1 %v639_v20, %s1243_s4  ;;  %646 = vrot.lane.b32.xlu0 %v638_v21, %s1243_s4  ;;  %v756_v20 = vmul.f32 %v1418_v1, %v1348_v32  ;;  %v301_v21 = vmul.f32 %v1350_v33, %v1408_v61 }
  0xe9   : > { %652 = vrot.lane.b32.xlu1 %v641_v24, %s1243_s4  ;;  %650 = vrot.lane.b32.xlu0 %v640_v25, %s1243_s4 }
  0xed   : > { %674 = vrot.lane.b32.xlu1 %v665_v26, %s1243_s4  ;;  %672 = vrot.lane.b32.xlu0 %v664_v27, %s1243_s4  ;;  %v300_v27 = vmul.f32 %v1356_v36, %v1408_v61 }
  0xf1   : > { %678 = vrot.lane.b32.xlu1 %v667_v38, %s1243_s4  ;;  %676 = vrot.lane.b32.xlu0 %v666_v39, %s1243_s4 }
  0xf5   : > { %712 = vrot.lane.b32.xlu1 %v703_v42, %s1241_s25  ;;  %710 = vrot.lane.b32.xlu0 %v702_v46, %s1241_s25  ;;  %v333_v46 = vmul.f32 %v1299_v12, %v1418_v1 }
  0xf9   : > { %716 = vrot.lane.b32.xlu1 %v705_v47, %s1241_s25  ;;  %714 = vrot.lane.b32.xlu0 %v704_v48, %s1241_s25  ;;  %v780_v48 = vmul.f32 %v1422_v3, %v1346_v31 }
  0xfd   : > { %738 = vrot.lane.b32.xlu1 %v729_v49, %s1242_s30  ;;  %736 = vrot.lane.b32.xlu0 %v728_v50, %s1242_s30  ;;  %v332_v49 = vmul.f32 %v1301_v13, %v1418_v1 }
 0x101   : > { %742 = vrot.lane.b32.xlu1 %v731_v51, %s1242_s30  ;;  %740 = vrot.lane.b32.xlu0 %v730_v52, %s1242_s30 }
 0x103   : > { %v258_v59 = vpop.permute.xlu1 %257  ;;  %v256_v60 = vpop.permute.xlu0 %255 }
 0x104   : > { %v271_v5 = vadd.f32 %v258_v59, %v1366_v41  ;;  %v264_v7 = vsel %vm263_vm0, %v256_v60, %v258_v59  ;;  %v757_v41 = vmul.f32 %v1418_v1, %v1344_v30  ;;  %v783_v59 = vmul.f32 %v1428_v6, %v1342_v29 }
 0x105   : > { %v270_v10 = vadd.f32 %v264_v7, %v1374_v45  ;;  %764 = vrot.lane.b32.xlu1 %v755_v63, %s1242_s30  ;;  %762 = vrot.lane.b32.xlu0 %v754_v0, %s1242_s30  ;;  %v330_v45 = vmul.f32 %v1301_v13, %v1420_v2  ;;  %v782_v60 = vmul.f32 %v1428_v6, %v1346_v31 }
 0x106   : > { %v303_v11 = vadd.f32 %v299_v4, %v271_v5  ;;  %v807_v4 = vmul.f32 %v1436_v9, %v1350_v33  ;;  %v806_v5 = vmul.f32 %v1436_v9, %v1356_v36 }
 0x107   : > { %v302_v16 = vadd.f32 %v298_v8, %v270_v10  ;;  %v262_v18 = vpop.permute.xlu1 %261  ;;  %v260_v19 = vpop.permute.xlu0 %259  ;;  %v809_v10 = vmul.f32 %v1444_v14, %v1350_v33 }
 0x108   : > { %v273_v24 = vadd.f32 %v262_v18, %v1390_v53  ;;  %v265_v25 = vsel %vm263_vm0, %v260_v19, %v262_v18  ;;  %v335_v26 = vadd.f32 %v331_v15, %v303_v11  ;;  %v781_v53 = vmul.f32 %v1422_v3, %v1342_v29 }
 0x109   : > { %v272_v38 = vadd.f32 %v265_v25, %v1398_v57  ;;  %768 = vrot.lane.b32.xlu1 %v757_v41, %s1242_s30  ;;  %766 = vrot.lane.b32.xlu0 %v756_v20, %s1242_s30  ;;  %v334_v39 = vadd.f32 %v330_v45, %v302_v16  ;;  %v808_v11 = vmul.f32 %v1444_v14, %v1356_v36 }
 0x10a   : > { %v305_v42 = vadd.f32 %v301_v21, %v273_v24  ;;  %v833_v19 = vmul.f32 %v1452_v17, %v1299_v12  ;;  %v832_v41 = vmul.f32 %v1452_v17, %v1301_v13 }
 0x10b   : > { %v304_v47 = vadd.f32 %v300_v27, %v272_v38 }
 0x10c   : > { %v337_v57 = vadd.f32 %v333_v46, %v305_v42  ;;  %v888_v46 = vmul.f32 %v1356_v36, %v1352_v34 }
 0x10d   : > { %790 = vrot.lane.b32.xlu1 %v781_v53, %s1243_s4  ;;  %788 = vrot.lane.b32.xlu0 %v780_v48, %s1243_s4  ;;  %v336_v50 = vadd.f32 %v332_v49, %v304_v47  ;;  %v834_v47 = vmul.f32 %v1464_v22, %v1301_v13 }
 0x10f   : > { %v362_v51 = vpop.permute.xlu1 %361  ;;  %v360_v52 = vpop.permute.xlu0 %359 }
 0x110   : > { %v367_v15 = vsel %vm263_vm0, %v360_v52, %v362_v51  ;;  %v374_v20 = vadd.f32 %v362_v51, %v335_v26 }
 0x111   : > { %794 = vrot.lane.b32.xlu1 %v783_v59, %s1243_s4  ;;  %792 = vrot.lane.b32.xlu0 %v782_v60, %s1243_s4  ;;  %v373_v21 = vadd.f32 %v367_v15, %v334_v39 }
 0x113   : > { %v366_v63 = vpop.permute.xlu1 %365  ;;  %v364_v0 = vpop.permute.xlu0 %363 }
 0x114   : > { %v368_v24 = vsel %vm263_vm0, %v364_v0, %v366_v63  ;;  %v376_v26 = vadd.f32 %v366_v63, %v337_v57  ;;  %v889_v57 = vmul.f32 %v1350_v33, %v1352_v34 }
 0x115   : > { %816 = vrot.lane.b32.xlu1 %v807_v4, %s1242_s30  ;;  %814 = vrot.lane.b32.xlu0 %v806_v5, %s1242_s30  ;;  %v375_v49 = vadd.f32 %v368_v24, %v336_v50  ;;  %v890_v4 = vmul.f32 %v1356_v36, %v1370_v43  ;;  %v497_v24 = vmul.f32 %v1344_v30, %v1354_v35 }
 0x117   : > { %v401_v7 = vpop.permute.xlu1 %400  ;;  %v399_v8 = vpop.permute.xlu0 %398 }
 0x118   : > { %v407_v45 = vsel %vm406_vm1, %v399_v8, %v401_v7  ;;  %v414_v25 = vadd.f32 %v401_v7, %v374_v20  ;;  %v915_v20 = vmul.f32 %v1299_v12, %v1396_v56 }
 0x119   : > { %820 = vrot.lane.b32.xlu1 %v809_v10, %s1242_s30  ;;  %818 = vrot.lane.b32.xlu0 %v808_v11, %s1242_s30  ;;  %v413_v27 = vadd.f32 %v407_v45, %v373_v21  ;;  %v914_v10 = vmul.f32 %v1301_v13, %v1396_v56  ;;  %v891_v11 = vmul.f32 %v1350_v33, %v1370_v43 }
 0x11a   : > { %v940_v56 = vmul.f32 %v1410_v62, %v1348_v32 }
 0x11b   : > { %v405_v16 = vpop.permute.xlu1 %404  ;;  %v403_v18 = vpop.permute.xlu0 %402 }
 0x11c   : > { %v408_v53 = vsel %vm406_vm1, %v403_v18, %v405_v16  ;;  %v416_v52 = vadd.f32 %v405_v16, %v376_v26 }
 0x11d   : > { %842 = vrot.lane.b32.xlu1 %v833_v19, %s1242_s30  ;;  %840 = vrot.lane.b32.xlu0 %v832_v41, %s1242_s30  ;;  %v415_v59 = vadd.f32 %v408_v53, %v375_v49  ;;  %v916_v41 = vmul.f32 %v1301_v13, %v1394_v55  ;;  %v499_v53 = vmul.f32 %v1344_v30, %v1372_v44 }
 0x11f   : > { %v441_v38 = vpop.permute.xlu1 %440  ;;  %v439_v42 = vpop.permute.xlu0 %438 }
 0x120   : > { %v453_v39 = vadd.f32 %v441_v38, %v414_v25  ;;  %v446_v48 = vsel %vm406_vm1, %v439_v42, %v441_v38  ;;  %v917_v42 = vmul.f32 %v1299_v12, %v1394_v55  ;;  %v941_v55 = vmul.f32 %v1410_v62, %v1344_v30 }
 0x121   : > { %v452_v51 = vadd.f32 %v446_v48, %v413_v27  ;;  %896 = vrot.lane.b32.xlu1 %v888_v46, %s1241_s25  ;;  %844 = vrot.lane.b32.xlu0 %v834_v47, %s1242_s30  ;;  %v496_v27 = vmul.f32 %v1348_v32, %v1354_v35  ;;  %v498_v48 = vmul.f32 %v1348_v32, %v1372_v44 }
 0x123   : > { %v445_v60 = vpop.permute.xlu1 %444  ;;  %v443_v0 = vpop.permute.xlu0 %442 }
 0x124   : > { %v455_v63 = vadd.f32 %v445_v60, %v416_v52  ;;  %v447_v5 = vsel %vm406_vm1, %v443_v0, %v445_v60 }
 0x125   : > { %v454_v7 = vadd.f32 %v447_v5, %v415_v59  ;;  %900 = vrot.lane.b32.xlu1 %v890_v4, %s1241_s25  ;;  %898 = vrot.lane.b32.xlu0 %v889_v57, %s1241_s25  ;;  %v966_v57 = vmul.f32 %v1420_v2, %v1346_v31 }
 0x127   : > { %v480_v50 = vpop.permute.xlu1 %479  ;;  %v478_v8 = vpop.permute.xlu0 %477 }
 0x128   : > { %v1692_v15 = vadd.f32 %v480_v50, %v453_v39  ;;  %v486_v34 = vsel %vm485_vm2, %v478_v8, %v480_v50  ;;  %v553_v50 = vmul.f32 %v1299_v12, %v1410_v62 }
 0x129   : > { %v1695_v16 = vadd.f32 %v486_v34, %v452_v51  ;;  %922 = vrot.lane.b32.xlu1 %v914_v10, %s1241_s25  ;;  %902 = vrot.lane.b32.xlu0 %v891_v11, %s1241_s25  ;;  %v942_v51 = vmul.f32 %v1408_v61, %v1348_v32  ;;  %v552_v10 = vmul.f32 %v1301_v13, %v1410_v62 }
 0x12a   : > { %v554_v62 = vmul.f32 %v1301_v13, %v1408_v61 }
 0x12b   : > { %v484_v18 = vpop.permute.xlu1 %483  ;;  %v482_v19 = vpop.permute.xlu0 %481 }
 0x12c   : > { %v1703_v45 = vadd.f32 %v484_v18, %v455_v63  ;;  %v487_v43 = vsel %vm485_vm2, %v482_v19, %v484_v18  ;;  %v943_v63 = vmul.f32 %v1408_v61, %v1344_v30  ;;  %v968_v19 = vmul.f32 %v1418_v1, %v1346_v31 }
 0x12d   : > { %v1706_v21 = vadd.f32 %v487_v43, %v454_v7  ;;  %926 = vrot.lane.b32.xlu1 %v916_v41, %s1241_s25  ;;  %924 = vrot.lane.b32.xlu0 %v915_v20, %s1241_s25  ;;  %v967_v41 = vmul.f32 %v1420_v2, %v1342_v29  ;;  %v992_v2 = vmul.f32 %v1422_v3, %v1348_v32 }
 0x12f   : > { %v511_v25 = vpop.permute.xlu1 %510  ;;  %v509_v38 = vpop.permute.xlu0 %508 }
 0x130   : > { %v523_v46 = vadd.f32 %v511_v25, %v497_v24  ;;  %v516_v47 = vsel %vm263_vm0, %v509_v38, %v511_v25  ;;  %v555_v25 = vmul.f32 %v1299_v12, %v1408_v61 }
 0x131   : > { %v522_v26 = vadd.f32 %v516_v47, %v496_v27  ;;  %948 = vrot.lane.b32.xlu1 %v940_v56, %s1242_s30  ;;  %928 = vrot.lane.b32.xlu0 %v917_v42, %s1241_s25  ;;  %v969_v42 = vmul.f32 %v1418_v1, %v1342_v29 }
 0x133   : > { %v515_v39 = vpop.permute.xlu1 %514  ;;  %v513_v49 = vpop.permute.xlu0 %512 }
 0x134   : > { %v525_v52 = vadd.f32 %v515_v39, %v499_v53  ;;  %v517_v59 = vsel %vm263_vm0, %v513_v49, %v515_v39  ;;  %v993_v49 = vmul.f32 %v1422_v3, %v1344_v30 }
 0x135   : > { %v524_v60 = vadd.f32 %v517_v59, %v498_v48  ;;  %952 = vrot.lane.b32.xlu1 %v942_v51, %s1242_s30  ;;  %950 = vrot.lane.b32.xlu0 %v941_v55, %s1242_s30  ;;  %v994_v48 = vmul.f32 %v1428_v6, %v1348_v32  ;;  %v1018_v59 = vmul.f32 %v1436_v9, %v1301_v13 }
 0x137   : > { %v537_v0 = vpop.permute.xlu1 %536  ;;  %v535_v4 = vpop.permute.xlu0 %534 }
 0x138   : > { %v549_v5 = vadd.f32 %v537_v0, %v523_v46  ;;  %v542_v7 = vsel %vm263_vm0, %v535_v4, %v537_v0 }
 0x139   : > { %v548_v8 = vadd.f32 %v542_v7, %v522_v26  ;;  %974 = vrot.lane.b32.xlu1 %v966_v57, %s1243_s4  ;;  %954 = vrot.lane.b32.xlu0 %v943_v63, %s1242_s30  ;;  %v1020_v63 = vmul.f32 %v1444_v14, %v1301_v13 }
 0x13a   : > { %v557_v11 = vadd.f32 %v553_v50, %v549_v5  ;;  %v1019_v5 = vmul.f32 %v1436_v9, %v1299_v12 }
 0x13b   : > { %v541_v34 = vpop.permute.xlu1 %540  ;;  %v539_v18 = vpop.permute.xlu0 %538  ;;  %v556_v20 = vadd.f32 %v552_v10, %v548_v8  ;;  %v835_v10 = vmul.f32 %v1464_v22, %v1299_v12 }
 0x13c   : > { %v551_v43 = vadd.f32 %v541_v34, %v525_v52  ;;  %v543_v24 = vsel %vm263_vm0, %v539_v18, %v541_v34 }
 0x13d   : > { %v550_v27 = vadd.f32 %v543_v24, %v524_v60  ;;  %978 = vrot.lane.b32.xlu1 %v968_v19, %s1243_s4  ;;  %976 = vrot.lane.b32.xlu0 %v967_v41, %s1243_s4  ;;  %v995_v60 = vmul.f32 %v1428_v6, %v1344_v30 }
 0x13e   : > { %v559_v38 = vadd.f32 %v555_v25, %v551_v43  ;;  %v1044_v43 = vmul.f32 %v1452_v17, %v1356_v36 }
 0x13f   : > { %v571_v31 = vpop.permute.xlu1 %570  ;;  %v569_v56 = vpop.permute.xlu0 %568  ;;  %v558_v46 = vadd.f32 %v554_v62, %v550_v27 }
 0x140   : > { %v583_v47 = vadd.f32 %v571_v31, %v557_v11  ;;  %v576_v26 = vsel %vm263_vm0, %v569_v56, %v571_v31  ;;  %v1021_v11 = vmul.f32 %v1444_v14, %v1299_v12  ;;  %v1046_v31 = vmul.f32 %v1464_v22, %v1356_v36 }
 0x141   : > { %v582_v53 = vadd.f32 %v576_v26, %v556_v20  ;;  %1000 = vrot.lane.b32.xlu1 %v992_v2, %s1243_s4  ;;  %980 = vrot.lane.b32.xlu0 %v969_v42, %s1243_s4  ;;  %v1045_v20 = vmul.f32 %v1452_v17, %v1350_v33  ;;  %v858_v26 = vmul.f32 %v1480_v37, %v1356_v36 }
 0x143   : > { %v575_v39 = vpop.permute.xlu1 %574  ;;  %v573_v61 = vpop.permute.xlu0 %572 }
 0x144   : > { %v585_v51 = vadd.f32 %v575_v39, %v559_v38  ;;  %v577_v29 = vsel %vm263_vm0, %v573_v61, %v575_v39  ;;  %v1047_v38 = vmul.f32 %v1464_v22, %v1350_v33 }
 0x145   : > { %v584_v1 = vadd.f32 %v577_v29, %v558_v46  ;;  %1004 = vrot.lane.b32.xlu1 %v994_v48, %s1243_s4  ;;  %1002 = vrot.lane.b32.xlu0 %v993_v49, %s1243_s4  ;;  %v861_v49 = vmul.f32 %v1488_v40, %v1350_v33 }
 0x147   : > { %v597_v55 = vpop.permute.xlu1 %596  ;;  %v595_v52 = vpop.permute.xlu0 %594 }
 0x148   : > { %v609_v32 = vadd.f32 %v597_v55, %v583_v47  ;;  %v602_v0 = vsel %vm263_vm0, %v595_v52, %v597_v55  ;;  %v859_v47 = vmul.f32 %v1480_v37, %v1350_v33  ;;  %v1071_v33 = vmul.f32 %v1480_v37, %v1299_v12 }
 0x149   : > { %v608_v3 = vadd.f32 %v602_v0, %v582_v53  ;;  %1026 = vrot.lane.b32.xlu1 %v1018_v59, %s1242_s30  ;;  %1006 = vrot.lane.b32.xlu0 %v995_v60, %s1243_s4 }
 0x14b   : > { %v601_v4 = vpop.permute.xlu1 %600  ;;  %v599_v57 = vpop.permute.xlu0 %598 }
 0x14c   : > { %v611_v7 = vadd.f32 %v601_v4, %v585_v51  ;;  %v603_v50 = vsel %vm263_vm0, %v599_v57, %v601_v4  ;;  %v860_v51 = vmul.f32 %v1488_v40, %v1356_v36  ;;  %v1070_v36 = vmul.f32 %v1480_v37, %v1301_v13 }
 0x14d   : > { %v610_v30 = vadd.f32 %v603_v50, %v584_v1  ;;  %1030 = vrot.lane.b32.xlu1 %v1020_v63, %s1242_s30  ;;  %1028 = vrot.lane.b32.xlu0 %v1019_v5, %s1242_s30  ;;  %v1073_v37 = vmul.f32 %v1488_v40, %v1299_v12 }
 0x14f   : > { %v623_v6 = vpop.permute.xlu1 %622  ;;  %v621_v8 = vpop.permute.xlu0 %620 }
 0x150   : > { %v635_v34 = vadd.f32 %v623_v6, %v609_v32  ;;  %v628_v18 = vsel %vm406_vm1, %v621_v8, %v623_v6 }
 0x151   : > { %v634_v9 = vadd.f32 %v628_v18, %v608_v3  ;;  %846 = vrot.lane.b32.xlu1 %v835_v10, %s1242_s30  ;;  %1032 = vrot.lane.b32.xlu0 %v1021_v11, %s1242_s30  ;;  %v1109_v10 = vld [vmem:[%s1931_s2 + $0x8] sm:$0xff] }
 0x153   : > { %v627_v19 = vpop.permute.xlu1 %626  ;;  %v625_v41 = vpop.permute.xlu0 %624 }
 0x154   : > { %v637_v24 = vadd.f32 %v627_v19, %v611_v7  ;;  %v629_v25 = vsel %vm406_vm1, %v625_v41, %v627_v19  ;;  %v1072_v7 = vmul.f32 %v1488_v40, %v1301_v13  ;;  %v1108_v40 = vld [vmem:[%s1931_s2] sm:$0xff] }
 0x155   : > { %v636_v14 = vadd.f32 %v629_v25, %v610_v30  ;;  %1054 = vrot.lane.b32.xlu1 %v1045_v20, %s1243_s4  ;;  %1052 = vrot.lane.b32.xlu0 %v1044_v43, %s1243_s4 }
 0x157   : > { %v649_v27 = vpop.permute.xlu1 %648  ;;  %v647_v62 = vpop.permute.xlu0 %646 }
 0x158   : > { %v661_v56 = vadd.f32 %v649_v27, %v635_v34  ;;  %v654_v2 = vsel %vm485_vm2, %v647_v62, %v649_v27 }
 0x159   : > { %v660_v17 = vadd.f32 %v654_v2, %v634_v9  ;;  %1058 = vrot.lane.b32.xlu1 %v1047_v38, %s1243_s4  ;;  %1056 = vrot.lane.b32.xlu0 %v1046_v31, %s1243_s4 }
 0x15b   : > { %v653_v42 = vpop.permute.xlu1 %652  ;;  %v651_v46 = vpop.permute.xlu0 %650 }
 0x15c   : > { %v663_v53 = vadd.f32 %v653_v42, %v637_v24  ;;  %v655_v39 = vsel %vm485_vm2, %v651_v46, %v653_v42 }
 0x15d   : > { %v662_v22 = vadd.f32 %v655_v39, %v636_v14  ;;  %868 = vrot.lane.b32.xlu1 %v859_v47, %s1243_s4  ;;  %866 = vrot.lane.b32.xlu0 %v858_v26, %s1243_s4 }
 0x15f   : > { %v675_v61 = vpop.permute.xlu1 %674  ;;  %v673_v48 = vpop.permute.xlu0 %672 }
 0x160   : > { %v1814_v29 = vadd.f32 %v675_v61, %v661_v56  ;;  %v680_v1 = vsel %vm485_vm2, %v673_v48, %v675_v61 }
 0x161   : > { %v1817_v55 = vadd.f32 %v680_v1, %v660_v17  ;;  %872 = vrot.lane.b32.xlu1 %v861_v49, %s1243_s4  ;;  %870 = vrot.lane.b32.xlu0 %v860_v51, %s1243_s4 }
 0x162   : > { %v1097_v52 = vmax.f32 %v1692_v15, %v1814_v29 }
 0x163   : > { %v679_v59 = vpop.permute.xlu1 %678  ;;  %v677_v60 = vpop.permute.xlu0 %676  ;;  %v1096_v32 = vmax.f32 %v1695_v16, %v1817_v55 }
 0x164   : > { %v1829_v0 = vadd.f32 %v679_v59, %v663_v53  ;;  %v681_v3 = vsel %vm485_vm2, %v677_v60, %v679_v59 }
 0x165   : > { %v1832_v4 = vadd.f32 %v681_v3, %v662_v22  ;;  %1080 = vrot.lane.b32.xlu1 %v1071_v33, %s1243_s4  ;;  %1078 = vrot.lane.b32.xlu0 %v1070_v36, %s1243_s4 }
 0x166   : > { %v1099_v57 = vmax.f32 %v1703_v45, %v1829_v0 }
 0x167   : > { %v713_v63 = vpop.permute.xlu1 %712  ;;  %v711_v5 = vpop.permute.xlu0 %710  ;;  %v1098_v50 = vmax.f32 %v1706_v21, %v1832_v4 }
 0x168   : > { %v725_v30 = vadd.f32 %v713_v63, %v1392_v54  ;;  %v718_v6 = vsel %vm263_vm0, %v711_v5, %v713_v63 }
 0x169   : > { %v724_v8 = vadd.f32 %v718_v6, %v1400_v58  ;;  %1084 = vrot.lane.b32.xlu1 %v1073_v37, %s1243_s4  ;;  %1082 = vrot.lane.b32.xlu0 %v1072_v7, %s1243_s4 }
 0x16b   : > { %v717_v11 = vpop.permute.xlu1 %716  ;;  %v715_v34 = vpop.permute.xlu0 %714 }
 0x16c   : > { %v727_v54 = vadd.f32 %v717_v11, %v1466_v23  ;;  %v719_v18 = vsel %vm263_vm0, %v715_v34, %v717_v11 }
 0x16d   : > { %v726_v58 = vadd.f32 %v719_v18, %v1478_v28  ;;  %1117 = vperm.xlu1 %1231, %v1109_v10   ;;  %1112 = vperm.xlu0 %1230, %v1108_v40  }
 0x16f   : > { %v739_v9 = vpop.permute.xlu1 %738  ;;  %v737_v19 = vpop.permute.xlu0 %736 }
 0x170   : > { %v751_v41 = vadd.f32 %v739_v9, %v725_v30  ;;  %v744_v20 = vsel %vm406_vm1, %v737_v19, %v739_v9 }
 0x171   : > { %v750_v43 = vadd.f32 %v744_v20, %v724_v8 }
 0x173   : > { %v743_v24 = vpop.permute.xlu1 %742  ;;  %v741_v25 = vpop.permute.xlu0 %740 }
 0x174   : > { %v753_v14 = vadd.f32 %v743_v24, %v727_v54  ;;  %v745_v27 = vsel %vm406_vm1, %v741_v25, %v743_v24 }
 0x175   : > { %v752_v62 = vadd.f32 %v745_v27, %v726_v58 }
 0x177   : > { %v765_v38 = vpop.permute.xlu1 %764  ;;  %v763_v23 = vpop.permute.xlu0 %762 }
 0x178   : > { %v777_v31 = vadd.f32 %v765_v38, %v751_v41  ;;  %v770_v56 = vsel %vm406_vm1, %v763_v23, %v765_v38 }
 0x179   : > { %v776_v28 = vadd.f32 %v770_v56, %v750_v43 }
 0x17b   : > { %v769_v2 = vpop.permute.xlu1 %768  ;;  %v767_v17 = vpop.permute.xlu0 %766 }
 0x17c   : > { %v779_v42 = vadd.f32 %v769_v2, %v753_v14  ;;  %v771_v46 = vsel %vm406_vm1, %v767_v17, %v769_v2 }
 0x17d   : > { %v778_v47 = vadd.f32 %v771_v46, %v752_v62 }
 0x17f   : > { %v791_v26 = vpop.permute.xlu1 %790  ;;  %v789_v53 = vpop.permute.xlu0 %788 }
 0x180   : > { %v803_v39 = vadd.f32 %v791_v26, %v777_v31  ;;  %v796_v22 = vsel %vm485_vm2, %v789_v53, %v791_v26 }
 0x181   : > { %v802_v61 = vadd.f32 %v796_v22, %v776_v28 }
 0x183   : > { %v795_v48 = vpop.permute.xlu1 %794  ;;  %v793_v49 = vpop.permute.xlu0 %792 }
 0x184   : > { %v805_v51 = vadd.f32 %v795_v48, %v779_v42  ;;  %v797_v1 = vsel %vm485_vm2, %v793_v49, %v795_v48 }
 0x185   : > { %v804_v59 = vadd.f32 %v797_v1, %v778_v47 }
 0x187   : > { %v817_v60 = vpop.permute.xlu1 %816  ;;  %v815_v33 = vpop.permute.xlu0 %814 }
 0x188   : > { %v829_v36 = vadd.f32 %v817_v60, %v803_v39  ;;  %v822_v3 = vsel %vm406_vm1, %v815_v33, %v817_v60 }
 0x189   : > { %v828_v63 = vadd.f32 %v822_v3, %v802_v61  ;;  %v887_v3 = vmul.f32 %v1299_v12, %v1372_v44 }
 0x18b   : > { %v821_v5 = vpop.permute.xlu1 %820  ;;  %v819_v37 = vpop.permute.xlu0 %818 }
 0x18c   : > { %v1865_v7 = vadd.f32 %v821_v5, %v805_v51  ;;  %v823_v30 = vsel %vm406_vm1, %v819_v37, %v821_v5  ;;  %v885_v51 = vmul.f32 %v1299_v12, %v1354_v35 }
 0x18d   : > { %v830_v6 = vadd.f32 %v823_v30, %v804_v59  ;;  %v884_v59 = vmul.f32 %v1301_v13, %v1354_v35 }
 0x18f   : > { %v843_v8 = vpop.permute.xlu1 %842  ;;  %v841_v10 = vpop.permute.xlu0 %840 }
 0x190   : > { %v1868_v40 = vadd.f32 %v843_v8, %v829_v36  ;;  %v848_v11 = vsel %vm406_vm1, %v841_v10, %v843_v8  ;;  %v886_v8 = vmul.f32 %v1301_v13, %v1372_v44 }
 0x191   : > { %v1871_v34 = vadd.f32 %v848_v11, %v828_v63 }
 0x193   : > { %v897_v54 = vpop.permute.xlu1 %896  ;;  %v845_v18 = vpop.permute.xlu0 %844 }
 0x197   : > { %v901_v58 = vpop.permute.xlu1 %900  ;;  %v899_v9 = vpop.permute.xlu0 %898 }
 0x198   : > { %v904_v1 = vsel %vm263_vm0, %v897_v54, %v899_v9  ;;  %v911_v60 = vadd.f32 %v899_v9, %v885_v51 }
 0x199   : > { %v910_v36 = vadd.f32 %v904_v1, %v884_v59 }
 0x19b   : > { %v923_v19 = vpop.permute.xlu1 %922  ;;  %v903_v41 = vpop.permute.xlu0 %902 }
 0x19c   : > { %v905_v37 = vsel %vm263_vm0, %v901_v58, %v903_v41  ;;  %v913_v10 = vadd.f32 %v903_v41, %v887_v3 }
 0x19d   : > { %v912_v9 = vadd.f32 %v905_v37, %v886_v8 }
 0x19f   : > { %v927_v20 = vpop.permute.xlu1 %926  ;;  %v925_v43 = vpop.permute.xlu0 %924 }
 0x1a0   : > { %v930_v33 = vsel %vm263_vm0, %v923_v19, %v925_v43  ;;  %v937_v30 = vadd.f32 %v925_v43, %v911_v60 }
 0x1a1   : > { %v936_v11 = vadd.f32 %v930_v33, %v910_v36 }
 0x1a3   : > { %v949_v24 = vpop.permute.xlu1 %948  ;;  %v929_v25 = vpop.permute.xlu0 %928 }
 0x1a4   : > { %v931_v35 = vsel %vm263_vm0, %v927_v20, %v929_v25  ;;  %v939_v19 = vadd.f32 %v929_v25, %v913_v10 }
 0x1a5   : > { %v938_v1 = vadd.f32 %v931_v35, %v912_v9 }
 0x1a7   : > { %v953_v14 = vpop.permute.xlu1 %952  ;;  %v951_v27 = vpop.permute.xlu0 %950 }
 0x1a8   : > { %v963_v54 = vadd.f32 %v951_v27, %v937_v30 }
 0x1ab   : > { %v975_v62 = vpop.permute.xlu1 %974  ;;  %v955_v38 = vpop.permute.xlu0 %954 }
 0x1ac   : > { %v957_v58 = vsel %vm406_vm1, %v953_v14, %v955_v38  ;;  %v965_v59 = vadd.f32 %v955_v38, %v939_v19 }
 0x1af   : > { %v979_v23 = vpop.permute.xlu1 %978  ;;  %v977_v31 = vpop.permute.xlu0 %976 }
 0x1b0   : > { %v989_v43 = vadd.f32 %v977_v31, %v963_v54 }
 0x1b3   : > { %v1001_v56 = vpop.permute.xlu1 %1000  ;;  %v981_v28 = vpop.permute.xlu0 %980 }
 0x1b4   : > { %v983_v44 = vsel %vm485_vm2, %v979_v23, %v981_v28 }
 0x1b7   : > { %v1005_v2 = vpop.permute.xlu1 %1004  ;;  %v1003_v17 = vpop.permute.xlu0 %1002 }
 0x1b8   : > { %v1015_v41 = vadd.f32 %v1003_v17, %v989_v43 }
 0x1bb   : > { %v1027_v42 = vpop.permute.xlu1 %1026  ;;  %v1007_v46 = vpop.permute.xlu0 %1006 }
 0x1bc   : > { %v1009_v36 = vsel %vm485_vm2, %v1005_v2, %v1007_v46 }
 0x1bf   : > { %v1031_v47 = vpop.permute.xlu1 %1030  ;;  %v1029_v26 = vpop.permute.xlu0 %1028 }
 0x1c0   : > { %v1034_v20 = vsel %vm406_vm1, %v1027_v42, %v1029_v26  ;;  %v1041_v3 = vadd.f32 %v1029_v26, %v1015_v41 }
 0x1c3   : > { %v1873_v53 = vpop.permute.xlu1 %846  ;;  %v1033_v39 = vpop.permute.xlu0 %1032 }
 0x1c4   : > { %v849_v22 = vsel %vm406_vm1, %v845_v18, %v1873_v53  ;;  %v982_v18 = vsel %vm485_vm2, %v975_v62, %v977_v31  ;;  %v991_v62 = vadd.f32 %v981_v28, %v965_v59  ;;  %v1035_v38 = vsel %vm406_vm1, %v1031_v47, %v1033_v39 }
 0x1c5   : > { %v1877_v61 = vadd.f32 %v849_v22, %v830_v6  ;;  %v956_v6 = vsel %vm406_vm1, %v949_v24, %v951_v27  ;;  %v1008_v24 = vsel %vm485_vm2, %v1001_v56, %v1003_v17  ;;  %v964_v27 = vadd.f32 %v957_v58, %v938_v1 }
 0x1c6   : > { %v962_v12 = vadd.f32 %v956_v6, %v936_v11  ;;  %v1017_v56 = vadd.f32 %v1007_v46, %v991_v62  ;;  %v857_v47 = vadd.f32 %v1873_v53, %v1865_v7 }
 0x1c7   : > { %v1055_v48 = vpop.permute.xlu1 %1054  ;;  %v1053_v49 = vpop.permute.xlu0 %1052  ;;  %v990_v31 = vadd.f32 %v983_v44, %v964_v27 }
 0x1c8   : > { %v988_v13 = vadd.f32 %v982_v18, %v962_v12  ;;  %v1060_v14 = vsel %vm485_vm2, %v1053_v49, %v1055_v48  ;;  %v1067_v30 = vadd.f32 %v1055_v48, %v1041_v3  ;;  %v1043_v42 = vadd.f32 %v1033_v39, %v1017_v56 }
 0x1c9   : > { %v1016_v17 = vadd.f32 %v1009_v36, %v990_v31 }
 0x1ca   : > { %v1014_v60 = vadd.f32 %v1008_v24, %v988_v13 }
 0x1cb   : > { %v1059_v63 = vpop.permute.xlu1 %1058  ;;  %v1057_v5 = vpop.permute.xlu0 %1056  ;;  %v1042_v11 = vadd.f32 %v1035_v38, %v1016_v17 }
 0x1cc   : > { %v1040_v37 = vadd.f32 %v1034_v20, %v1014_v60  ;;  %v1061_v10 = vsel %vm485_vm2, %v1057_v5, %v1059_v63  ;;  %v1069_v48 = vadd.f32 %v1059_v63, %v1043_v42 }
 0x1cd   : > { %v1068_v18 = vadd.f32 %v1061_v10, %v1042_v11 }
 0x1ce   : > { %v1066_v6 = vadd.f32 %v1060_v14, %v1040_v37 }
 0x1cf   : > { %v869_v22 = vpop.permute.xlu1 %868  ;;  %v867_v51 = vpop.permute.xlu0 %866 }
 0x1d0   : > { %v874_v23 = vsel %vm485_vm2, %v867_v51, %v869_v22  ;;  %v881_v2 = vadd.f32 %v869_v22, %v1868_v40 }
 0x1d1   : > { %v880_v46 = vadd.f32 %v874_v23, %v1871_v34 }
 0x1d3   : > { %v873_v25 = vpop.permute.xlu1 %872  ;;  %v871_v33 = vpop.permute.xlu0 %870 }
 0x1d4   : > { %v875_v39 = vsel %vm485_vm2, %v871_v33, %v873_v25  ;;  %v883_v40 = vadd.f32 %v873_v25, %v857_v47 }
 0x1d5   : > { %v882_v51 = vadd.f32 %v875_v39, %v1877_v61 }
 0x1d7   : > { %v1081_v28 = vpop.permute.xlu1 %1080  ;;  %v1079_v8 = vpop.permute.xlu0 %1078 }
 0x1d8   : > { %v1093_v26 = vadd.f32 %v1081_v28, %v1067_v30  ;;  %v1086_v49 = vsel %vm485_vm2, %v1079_v8, %v1081_v28 }
 0x1d9   : > { %v1092_v35 = vadd.f32 %v1086_v49, %v1066_v6 }
 0x1da   : > { %v1101_v54 = vmax.f32 %v881_v2, %v1093_v26 }
 0x1db   : > { %v1085_v9 = vpop.permute.xlu1 %1084  ;;  %v1083_v5 = vpop.permute.xlu0 %1082  ;;  %v1100_v19 = vmax.f32 %v880_v46, %v1092_v35 }
 0x1dc   : > { %v1095_v12 = vadd.f32 %v1085_v9, %v1069_v48  ;;  %v1087_v22 = vsel %vm485_vm2, %v1083_v5, %v1085_v9  ;;  %v1105_v34 = vmax.f32 %v1097_v52, %v1101_v54 }
 0x1dd   : > { %v1094_v7 = vadd.f32 %v1087_v22, %v1068_v18  ;;  %v1104_v53 = vmax.f32 %v1096_v32, %v1100_v19 }
 0x1de   : > { %v1103_v63 = vmax.f32 %v883_v40, %v1095_v12 }
 0x1df   : > { %v1102_v58 = vmax.f32 %v882_v51, %v1094_v7 }
 0x1e0   : > { %v1107_v43 = vmax.f32 %v1099_v57, %v1103_v63 }
 0x1e1   : > { %v1106_v24 = vmax.f32 %v1098_v50, %v1102_v58 }
 0x1ec   : > { %v1118_v15 = vpop.permute.xlu1 %1117  ;;  %v1113_v29 = vpop.permute.xlu0 %1112 }
 0x1ed   : > { %v1122_v52 = vadd.f32 %v1118_v15, %v1106_v24  ;;  %v1123_v61 = vadd.f32 %v1118_v15, %v1107_v43  ;;  %v1120_v1 = vadd.f32 %v1113_v29, %v1104_v53  ;;  %v1121_v59 = vadd.f32 %v1113_v29, %v1105_v34 }
 0x1ef   : > { %v1126_v16 = vmax.f32 %v1122_v52, 0.0  ;;  %v1127_v55 = vmax.f32 %v1123_v61, 0.0  ;;  %v1124_v45 = vmax.f32 %v1120_v1, 0.0  ;;  %v1125_v32 = vmax.f32 %v1121_v59, 0.0 }
 0x1f1   : > { %1131 = vst [vmem:[%s167_s14 + $0x10] sm:$0xff] %v1126_v16  ;;  %1132 = vst.msk [vmem:[%s167_s14 + $0x18] sm:$0xff] %vm1129_vm3, %v1127_v55 }
 0x1f2   : > { %1128 = vst [vmem:[%s167_s14] sm:$0xff] %v1124_v45  ;;  %1130 = vst.msk [vmem:[%s167_s14 + $0x8] sm:$0xff] %vm1129_vm3, %v1125_v32 }
 0x1f3 PF: > { %s13_s12 = sadd.s32 1, %s1238_s12  }
 0x1f4   : > { %p10_p4 = scmp.ge.s32.totalorder %s13_s12, 4  }
 0x1f6   :  { %12 = sbr.rel (!%p10_p4) target bundleno = 1 (0x1), region = 73 }

// kernel: cnn_forward.4
= control target key start
LH: loop header
LB: loop body
LE: loop exit
PB: predicated region body
PF: predicated region fallthrough
CT: control target
= control target key end

     0   :  { %s3077_s12 = smov 0   ;;  %s3411_s0 = inlined_call_operand.vmem [shape: bf16[2,4,16,73], index: 0, kind: input, shape index: {}]   ;;  %s3412_s1 = inlined_call_operand.vmem [shape: bf16[9,32,16], index: 1, kind: input, shape index: {}]   ;;  %s3413_s2 = inlined_call_operand.vmem [shape: f32[32,1], index: 2, kind: input, shape index: {}]   ;;  %s3414_s3 = inlined_call_operand.vmem [shape: f32[2,32,64], index: 3, kind: output, shape index: {}]  }
   0x1 LB: > { %s2412_s13 = sadd.s32 4294967295, %s3051_s12   ;;  %p2416_p0 = scmp.ge.s32.totalorder %s3051_s12, 1  ;;  %s3051_s12 = sphi %s3077_s12, %s13_s12  }
   0x2   : > { %p137_p1 = scmp.lt.s32.totalorder %s3051_s12, 3 }
   0x4   : > { %p138_p2 = pnand %p2416_p0, %p137_p1 }
   0x5   : > { %p161_p3 = scmp.lt.s32.totalorder (!%p138_p2), %s2412_s13, 1  ;;  %v3088_v0 = vld [vmem:[%s3412_s1 + $0x10] sm:$0xff] (!%p138_p2)   ;;  %vm208_vm0 = vcmask (!%p138_p2), 130048   ;;  %s3053_s20 = smov (!%p138_p2), 127   ;;  %v3107_v4 = vld [vmem:[%s3412_s1 + $0x18] sm:$0xff] (!%p138_p2)   ;;  %v3115_v6 = vld [vmem:[%s3412_s1] sm:$0xff] (!%p138_p2)  }
   0x6   : > { %141 = sbr.rel (%p138_p2) target bundleno = 560 (0x230), region = 32  ;;  %2667 = vmatprep.mubr.msk.bf16.mxu0 (!%p138_p2), %vm208_vm0, %v3088_v0  ;;  %2721 = vmatprep.mubr.msk.bf16.mxu1 (!%p138_p2), %vm208_vm0, %v3088_v0  ;;  %s3054_s25 = smov (!%p138_p2), 120   ;;  %v3125_v7 = vld [vmem:[%s3412_s1 + $0x8] sm:$0xff] (!%p138_p2)   ;;  %v3130_v8 = vld [vmem:[%s3412_s1 + $0x20] sm:$0xff] (!%p138_p2)   ;;  %v3149_v11 = vld [vmem:[%s3412_s1 + $0x30] sm:$0xff] (!%p138_p2)   ;;  %v3056_v30 = vmov (!%p138_p2), 0  }
   0x7   : > { %s3055_s26 = smov (!%p138_p2), 119   ;;  %v3143_v10 = vld [vmem:[%s3412_s1 + $0x28] sm:$0xff] (!%p138_p2)   ;;  %v3164_v13 = vld [vmem:[%s3412_s1 + $0x38] sm:$0xff] (!%p138_p2)   ;;  %v3169_v14 = vld [vmem:[%s3412_s1 + $0x40] sm:$0xff] (!%p138_p2)   ;;  %3022 = vset.pattern.permute.xlu1 (!%p138_p2), %v3056_v30  ;;  %3021 = vset.pattern.permute.xlu0 (!%p138_p2), %v3056_v30  ;;  %vm2352_vm1 = vcmask (!%p138_p2), 523264  }
   0x8   : > { %v3187_v16 = vld [vmem:[%s3412_s1 + $0x48] sm:$0xff] (!%p138_p2)   ;;  %v3192_v17 = vld [vmem:[%s3412_s1 + $0x50] sm:$0xff] (!%p138_p2)   ;;  %v3213_v20 = vld [vmem:[%s3412_s1 + $0x58] sm:$0xff] (!%p138_p2)  }
   0x9   : > { %v3218_v21 = vld [vmem:[%s3412_s1 + $0x60] sm:$0xff] (!%p138_p2)   ;;  %v3237_v23 = vld [vmem:[%s3412_s1 + $0x68] sm:$0xff] (!%p138_p2)   ;;  %v3242_v24 = vld [vmem:[%s3412_s1 + $0x70] sm:$0xff] (!%p138_p2)  }
   0xa   : > { %v3261_v26 = vld [vmem:[%s3412_s1 + $0x78] sm:$0xff] (!%p138_p2)   ;;  %v3266_v27 = vld [vmem:[%s3412_s1 + $0x80] sm:$0xff] (!%p138_p2)   ;;  %v3283_v28 = vld [vmem:[%s3412_s1 + $0x88] sm:$0xff] (!%p138_p2)  }
   0xb   : > { %v2321_v34 = vld [vmem:[%s3413_s2 + $0x8] sm:$0xff] (!%p138_p2)  ;;  %v2320_v35 = vld [vmem:[%s3413_s2] sm:$0xff] (!%p138_p2)  ;;  %v2322_v36 = vld [vmem:[%s3413_s2 + $0x10] sm:$0xff] (!%p138_p2) }
   0xc   : > { %v2323_v37 = vld [vmem:[%s3413_s2 + $0x18] sm:$0xff] (!%p138_p2) }
   0xd   : > { %s3416_s13 = smov (!%p161_p3, %s2412_s13), 1 }
   0xe   : > { %s2555_s16 = sshll.u32 %s3416_s13, 5 }
   0xf   : > { %s165_s19 = scalar_lea.vmem %s3411_s0, %s2555_s16 }
  0x10   : > { %v3023_v1 = vld [vmem:[%s165_s19] sm:$0xff]   ;;  %v3025_v2 = vld [vmem:[%s165_s19 + $0x8] sm:$0xff]   ;;  %v3102_v3 = vld [vmem:[%s165_s19 + $0x10] sm:$0xff]  }
  0x11   : > { %350 = vrot.lane.b32.xlu0 %v3023_v1, %s3053_s20  ;;  %2665 = vmatprep.subr.bf16.mxu0 %v3025_v2  ;;  %v3109_v5 = vld [vmem:[%s165_s19 + $0x18] sm:$0xff]   ;;  %s170_s19 = scalar_lea.vmem %s3414_s3, %s2555_s16 }
  0x12   : > { %587 = vrot.lane.b32.xlu1 %v3102_v3, %s3053_s20  ;;  %2666 = vmatpush3.bf16.msra.mxu0 %v3025_v2 }
  0x13   : > { %2671 = vmatprep.subr.bf16.mxu0 %v3023_v1 }
  0x15   : > { %978 = vrot.lane.b32.xlu0 %v3025_v2, %s3053_s20  ;;  %2668 = vmatmul.mubr.msk.bf16.vlgmr.msra.gmra.mrb[0].mxu0 %vm208_vm0, %v3107_v4 }
  0x16   : > { %1140 = vrot.lane.b32.xlu1 %v3109_v5, %s3053_s20  ;;  %2672 = vmatpush3.bf16.msra.mxu0 %v3023_v1 }
  0x17   : > { %2673 = vmatprep.mubr.msk.bf16.mxu0 %vm208_vm0, %v3115_v6 }
  0x19   : > { %664 = vrot.lane.b32.xlu0 %v3023_v1, %s3054_s25 }
  0x1a   : > { %741 = vrot.lane.b32.xlu1 %v3025_v2, %s3054_s25 }
  0x1d   : > { %818 = vrot.lane.b32.xlu0 %v3023_v1, %s3055_s26 }
  0x1e   : > { %1302 = vrot.lane.b32.xlu1 %v3025_v2, %s3055_s26 }
  0x21   : > { %1668 = vrot.lane.b32.xlu0 %v3102_v3, %s3054_s25  ;;  %2674 = vmatmul.mubr.msk.bf16.vlgmr.msra.gmra.mrb[0].mxu0 %vm208_vm0, %v3125_v7 }
  0x22   : > { %2679 = vmatprep.mubr.msk.bf16.mxu0 %vm208_vm0, %v3130_v8  ;;  %1724 = vrot.lane.b32.xlu1 %v3109_v5, %s3054_s25 }
  0x25   : > { %1780 = vrot.lane.b32.xlu0 %v3102_v3, %s3055_s26 }
  0x26   : > { %2252 = vrot.lane.b32.xlu1 %v3109_v5, %s3055_s26 }
  0x29   : > { %2326 = vperm.xlu0 %3021, %v2320_v35  }
  0x2a   : > { %2331 = vperm.xlu1 %3022, %v2321_v34  }
  0x2d   : > { %2341 = vperm.xlu0 %3021, %v2323_v37  }
  0x2e   : > { %2336 = vperm.xlu1 %3022, %v2322_v36  }
  0x83   : > { %v351_v9 = vpop.permute.xlu0 %350 }
  0x84   : > { %2677 = vmatprep.subr.bf16.mxu0 %v351_v9  ;;  %2719 = vmatprep.subr.bf16.mxu1 %v351_v9  ;;  %v3175_v15 = vpop.permute.xlu1 %587 }
  0x85   : > { %2678 = vmatpush3.bf16.msra.mxu0 %v351_v9  ;;  %2720 = vmatpush3.bf16.msra.mxu1 %v351_v9 }
  0x86   : > { %2725 = vmatprep.subr.bf16.mxu1 %v3025_v2  ;;  %2683 = vmatprep.subr.bf16.mxu0 %v3102_v3 }
  0x87   : > { %v979_v12 = vpop.permute.xlu0 %978 }
  0x88   : > { %2680 = vmatmul.mubr.msk.bf16.vlgmr.msra.gmra.mrb[0].mxu0 %vm208_vm0, %v3143_v10  ;;  %2722 = vmatmul.mubr.msk.bf16.vlgmr.msra.gmra.mrb[0].mxu1 %vm208_vm0, %v3107_v4  ;;  %v3208_v19 = vpop.permute.xlu1 %1140 }
  0x89   : > { %2726 = vmatpush3.bf16.msra.mxu1 %v3025_v2  ;;  %2684 = vmatpush3.bf16.msra.mxu0 %v3102_v3 }
  0x8a   : > { %2685 = vmatprep.mubr.msk.bf16.mxu0 %vm208_vm0, %v3149_v11  ;;  %2727 = vmatprep.mubr.msk.bf16.mxu1 %vm208_vm0, %v3115_v6 }
  0x8b   : > { %2731 = vmatprep.subr.bf16.mxu1 %v979_v12  ;;  %2689 = vmatprep.subr.bf16.mxu0 %v3109_v5  ;;  %v3198_v18 = vpop.permute.xlu0 %664 }
  0x8c   : > { %v3224_v22 = vpop.permute.xlu1 %741 }
  0x8f   : > { %v3248_v25 = vpop.permute.xlu0 %818 }
  0x90   : > { %v1303_v29 = vpop.permute.xlu1 %1302 }
  0x93   : > { %v1669_v31 = vpop.permute.xlu0 %1668 }
  0x94   : > { %2686 = vmatmul.mubr.msk.bf16.vlgmr.msra.gmra.mrb[0].mxu0 %vm208_vm0, %v3164_v13  ;;  %2728 = vmatmul.mubr.msk.bf16.vlgmr.msra.gmra.mrb[0].mxu1 %vm208_vm0, %v3125_v7  ;;  %v1725_v32 = vpop.permute.xlu1 %1724 }
  0x95   : > { %2732 = vmatpush3.bf16.msra.mxu1 %v979_v12  ;;  %2690 = vmatpush3.bf16.msra.mxu0 %v3109_v5 }
  0x96   : > { %2691 = vmatprep.mubr.msk.bf16.mxu0 %vm208_vm0, %v3169_v14  ;;  %2733 = vmatprep.mubr.msk.bf16.mxu1 %vm208_vm0, %v3130_v8 }
  0x97   : > { %2737 = vmatprep.subr.bf16.mxu1 %v3109_v5  ;;  %2695 = vmatprep.subr.bf16.mxu0 %v3175_v15  ;;  %v1781_v33 = vpop.permute.xlu0 %1780 }
  0x98   : > { %v2253_v38 = vpop.permute.xlu1 %2252 }
  0xa0   : > { %2692 = vmatmul.mubr.msk.bf16.vlgmr.msra.gmra.mrb[0].mxu0 %vm208_vm0, %v3187_v16  ;;  %2734 = vmatmul.mubr.msk.bf16.vlgmr.msra.gmra.mrb[0].mxu1 %vm208_vm0, %v3143_v10 }
  0xa1   : > { %2738 = vmatpush3.bf16.msra.mxu1 %v3109_v5  ;;  %2696 = vmatpush3.bf16.msra.mxu0 %v3175_v15 }
  0xa2   : > { %2697 = vmatprep.mubr.msk.bf16.mxu0 %vm208_vm0, %v3192_v17  ;;  %2739 = vmatprep.mubr.msk.bf16.mxu1 %vm208_vm0, %v3149_v11 }
  0xa3   : > { %2743 = vmatprep.subr.bf16.mxu1 %v3175_v15  ;;  %2701 = vmatprep.subr.bf16.mxu0 %v3198_v18 }
  0xa8   : > { %v2327_v57 = vpop.permute.xlu0 %2326 }
  0xa9   : > { %v2332_v55 = vpop.permute.xlu1 %2331 }
  0xac   : > { %2698 = vmatmul.mubr.msk.bf16.vlgmr.msra.gmra.mrb[0].mxu0 %vm208_vm0, %v3213_v20  ;;  %2740 = vmatmul.mubr.msk.bf16.vlgmr.msra.gmra.mrb[0].mxu1 %vm208_vm0, %v3164_v13 }
  0xad   : > { %2744 = vmatpush3.bf16.msra.mxu1 %v3175_v15  ;;  %2702 = vmatpush3.bf16.msra.mxu0 %v3198_v18  ;;  %v2337_v62 = vpop.permute.xlu1 %2336 }
  0xae   : > { %2703 = vmatprep.mubr.msk.bf16.mxu0 %vm208_vm0, %v3218_v21  ;;  %2745 = vmatprep.mubr.msk.bf16.mxu1 %vm208_vm0, %v3169_v14 }
  0xaf   : > { %2749 = vmatprep.subr.bf16.mxu1 %v3208_v19  ;;  %2707 = vmatprep.subr.bf16.mxu0 %v3224_v22 }
  0xb8   : > { %2704 = vmatmul.mubr.msk.bf16.vlgmr.msra.gmra.mrb[0].mxu0 %vm208_vm0, %v3237_v23  ;;  %2746 = vmatmul.mubr.msk.bf16.vlgmr.msra.gmra.mrb[0].mxu1 %vm208_vm0, %v3187_v16 }
  0xb9   : > { %2750 = vmatpush3.bf16.msra.mxu1 %v3208_v19  ;;  %2708 = vmatpush3.bf16.msra.mxu0 %v3224_v22 }
  0xba   : > { %2709 = vmatprep.mubr.msk.bf16.mxu0 %vm208_vm0, %v3242_v24  ;;  %2751 = vmatprep.mubr.msk.bf16.mxu1 %vm208_vm0, %v3192_v17 }
  0xbb   : > { %2755 = vmatprep.subr.bf16.mxu1 %v3224_v22  ;;  %2713 = vmatprep.subr.bf16.mxu0 %v3248_v25 }
  0xc4   : > { %2710 = vmatmul.mubr.msk.bf16.vlgmr.msra.gmra.mrb[0].mxu0 %vm208_vm0, %v3261_v26  ;;  %2752 = vmatmul.mubr.msk.bf16.vlgmr.msra.gmra.mrb[0].mxu1 %vm208_vm0, %v3213_v20 }
  0xc5   : > { %2756 = vmatpush3.bf16.msra.mxu1 %v3224_v22  ;;  %2714 = vmatpush3.bf16.msra.mxu0 %v3248_v25 }
  0xc6   : > { %2715 = vmatprep.mubr.msk.bf16.mxu0 %vm208_vm0, %v3266_v27  ;;  %2757 = vmatprep.mubr.msk.bf16.mxu1 %vm208_vm0, %v3218_v21 }
  0xc7   : > { %2761 = vmatprep.subr.bf16.mxu1 %v3248_v25  ;;  %2773 = vmatprep.subr.bf16.mxu0 %v3109_v5 }
  0xd0   : > { %2716 = vmatmul.mubr.msk.bf16.vlgmr.msra.gmra.mrb[0].mxu0 %vm208_vm0, %v3283_v28  ;;  %2758 = vmatmul.mubr.msk.bf16.vlgmr.msra.gmra.mrb[0].mxu1 %vm208_vm0, %v3237_v23 }
  0xd1   : > { %2762 = vmatpush3.bf16.msra.mxu1 %v3248_v25  ;;  %2774 = vmatpush3.bf16.msra.mxu0 %v3109_v5 }
  0xd2   : > { %2775 = vmatprep.mubr.msk.bf16.mxu0 %vm208_vm0, %v3088_v0  ;;  %2779 = vmatprep.subr.bf16.mxu0 %v3102_v3 }
  0xd3   : > { %2763 = vmatprep.mubr.msk.bf16.mxu1 %vm208_vm0, %v3242_v24  ;;  %2767 = vmatprep.subr.bf16.mxu1 %v1303_v29 }
  0xd8   : > { %2776 = vmatmul.mubr.msk.bf16.vlgmr.msra.gmra.mrb[4].mxu0 %vm208_vm0, %v3107_v4 }
  0xd9   : > { %2780 = vmatpush3.bf16.msra.mxu0 %v3102_v3  ;;  %2781 = vmatprep.mubr.msk.bf16.mxu0 %vm208_vm0, %v3115_v6 }
  0xda   : > { %2785 = vmatprep.subr.bf16.mxu0 %v3175_v15 }
  0xdc   : > { %2764 = vmatmul.mubr.msk.bf16.vlgmr.msra.gmra.mrb[0].mxu1 %vm208_vm0, %v3261_v26 }
  0xdd   : > { %2768 = vmatpush3.bf16.msra.mxu1 %v1303_v29  ;;  %2769 = vmatprep.mubr.msk.bf16.mxu1 %vm208_vm0, %v3266_v27 }
  0xde   : > { %2827 = vmatprep.subr.bf16.mxu1 %v3175_v15 }
  0xe4   : > { %2782 = vmatmul.mubr.msk.bf16.vlgmr.msra.gmra.mrb[4].mxu0 %vm208_vm0, %v3125_v7 }
  0xe5   : > { %2786 = vmatpush3.bf16.msra.mxu0 %v3175_v15  ;;  %2787 = vmatprep.mubr.msk.bf16.mxu0 %vm208_vm0, %v3130_v8 }
  0xe6   : > { %2791 = vmatprep.subr.bf16.mxu0 %v3198_v18 }
  0xe8   : > { %2770 = vmatmul.mubr.msk.bf16.vlgmr.msra.gmra.mrb[0].mxu1 %vm208_vm0, %v3283_v28 }
  0xe9   : > { %2828 = vmatpush3.bf16.msra.mxu1 %v3175_v15  ;;  %2829 = vmatprep.mubr.msk.bf16.mxu1 %vm208_vm0, %v3088_v0 }
  0xea   : > { %2833 = vmatprep.subr.bf16.mxu1 %v3109_v5 }
  0xf0   : > { %2788 = vmatmul.mubr.msk.bf16.vlgmr.msra.gmra.mrb[4].mxu0 %vm208_vm0, %v3143_v10  ;;  %2830 = vmatmul.mubr.msk.bf16.vlgmr.msra.gmra.mrb[4].mxu1 %vm208_vm0, %v3107_v4 }
  0xf1   : > { %2792 = vmatpush3.bf16.msra.mxu0 %v3198_v18  ;;  %2834 = vmatpush3.bf16.msra.mxu1 %v3109_v5 }
  0xf2   : > { %2797 = vmatprep.subr.bf16.mxu0 %v3224_v22  ;;  %2839 = vmatprep.subr.bf16.mxu1 %v3208_v19 }
  0xf3   : > { %2793 = vmatprep.mubr.msk.bf16.mxu0 %vm208_vm0, %v3149_v11  ;;  %2835 = vmatprep.mubr.msk.bf16.mxu1 %vm208_vm0, %v3115_v6 }
  0xfc   : > { %2794 = vmatmul.mubr.msk.bf16.vlgmr.msra.gmra.mrb[4].mxu0 %vm208_vm0, %v3164_v13  ;;  %2836 = vmatmul.mubr.msk.bf16.vlgmr.msra.gmra.mrb[4].mxu1 %vm208_vm0, %v3125_v7 }
  0xfd   : > { %2798 = vmatpush3.bf16.msra.mxu0 %v3224_v22  ;;  %2840 = vmatpush3.bf16.msra.mxu1 %v3208_v19 }
  0xfe   : > { %2803 = vmatprep.subr.bf16.mxu0 %v3248_v25  ;;  %2845 = vmatprep.subr.bf16.mxu1 %v3224_v22 }
  0xff   : > { %2799 = vmatprep.mubr.msk.bf16.mxu0 %vm208_vm0, %v3169_v14  ;;  %2841 = vmatprep.mubr.msk.bf16.mxu1 %vm208_vm0, %v3130_v8  ;;  %v2342_v8 = vpop.permute.xlu0 %2341 }
 0x108   : > { %2800 = vmatmul.mubr.msk.bf16.vlgmr.msra.gmra.mrb[4].mxu0 %vm208_vm0, %v3187_v16  ;;  %2842 = vmatmul.mubr.msk.bf16.vlgmr.msra.gmra.mrb[4].mxu1 %vm208_vm0, %v3143_v10 }
 0x109   : > { %2804 = vmatpush3.bf16.msra.mxu0 %v3248_v25  ;;  %2846 = vmatpush3.bf16.msra.mxu1 %v3224_v22 }
 0x10a   : > { %2851 = vmatprep.subr.bf16.mxu1 %v3248_v25  ;;  %2805 = vmatprep.mubr.msk.bf16.mxu0 %vm208_vm0, %v3192_v17 }
 0x10b   : > { %2847 = vmatprep.mubr.msk.bf16.mxu1 %vm208_vm0, %v3149_v11  ;;  %2809 = vmatprep.subr.bf16.mxu0 %v1669_v31 }
 0x114   : > { %2806 = vmatmul.mubr.msk.bf16.vlgmr.msra.gmra.mrb[4].mxu0 %vm208_vm0, %v3213_v20  ;;  %2848 = vmatmul.mubr.msk.bf16.vlgmr.msra.gmra.mrb[4].mxu1 %vm208_vm0, %v3164_v13 }
 0x115   : > { %2852 = vmatpush3.bf16.msra.mxu1 %v3248_v25  ;;  %2810 = vmatpush3.bf16.msra.mxu0 %v1669_v31 }
 0x116   : > { %2857 = vmatprep.subr.bf16.mxu1 %v1303_v29  ;;  %2811 = vmatprep.mubr.msk.bf16.mxu0 %vm208_vm0, %v3218_v21 }
 0x117   : > { %2853 = vmatprep.mubr.msk.bf16.mxu1 %vm208_vm0, %v3169_v14  ;;  %2815 = vmatprep.subr.bf16.mxu0 %v1725_v32 }
 0x120   : > { %2812 = vmatmul.mubr.msk.bf16.vlgmr.msra.gmra.mrb[4].mxu0 %vm208_vm0, %v3237_v23  ;;  %2854 = vmatmul.mubr.msk.bf16.vlgmr.msra.gmra.mrb[4].mxu1 %vm208_vm0, %v3187_v16 }
 0x121   : > { %2858 = vmatpush3.bf16.msra.mxu1 %v1303_v29  ;;  %2816 = vmatpush3.bf16.msra.mxu0 %v1725_v32 }
 0x122   : > { %2817 = vmatprep.mubr.msk.bf16.mxu0 %vm208_vm0, %v3242_v24  ;;  %2859 = vmatprep.mubr.msk.bf16.mxu1 %vm208_vm0, %v3192_v17 }
 0x123   : > { %2863 = vmatprep.subr.bf16.mxu1 %v1725_v32  ;;  %2821 = vmatprep.subr.bf16.mxu0 %v1781_v33 }
 0x12c   : > { %2818 = vmatmul.mubr.msk.bf16.vlgmr.msra.gmra.mrb[4].mxu0 %vm208_vm0, %v3261_v26  ;;  %2860 = vmatmul.mubr.msk.bf16.vlgmr.msra.gmra.mrb[4].mxu1 %vm208_vm0, %v3213_v20 }
 0x12d   : > { %2864 = vmatpush3.bf16.msra.mxu1 %v1725_v32  ;;  %2822 = vmatpush3.bf16.msra.mxu0 %v1781_v33 }
 0x12e   : > { %2823 = vmatprep.mubr.msk.bf16.mxu0 %vm208_vm0, %v3266_v27  ;;  %2865 = vmatprep.mubr.msk.bf16.mxu1 %vm208_vm0, %v3218_v21 }
 0x12f   : > { %2869 = vmatprep.subr.bf16.mxu1 %v1781_v33 }
 0x138   : > { %2824 = vmatmul.mubr.msk.bf16.vlgmr.msra.gmra.mrb[4].mxu0 %vm208_vm0, %v3283_v28  ;;  %2866 = vmatmul.mubr.msk.bf16.vlgmr.msra.gmra.mrb[4].mxu1 %vm208_vm0, %v3237_v23 }
 0x139   : > { %2870 = vmatpush3.bf16.msra.mxu1 %v1781_v33  ;;  %2871 = vmatprep.mubr.msk.bf16.mxu1 %vm208_vm0, %v3242_v24 }
 0x13a   : > { %2875 = vmatprep.subr.bf16.mxu1 %v2253_v38 }
 0x144   : > { %2872 = vmatmul.mubr.msk.bf16.vlgmr.msra.gmra.mrb[4].mxu1 %vm208_vm0, %v3261_v26 }
 0x145   : > { %2876 = vmatpush3.bf16.msra.mxu1 %v2253_v38  ;;  %2877 = vmatprep.mubr.msk.bf16.mxu1 %vm208_vm0, %v3266_v27 }
 0x150   : > { %2878 = vmatmul.mubr.msk.bf16.vlgmr.msra.gmra.mrb[4].mxu1 %vm208_vm0, %v3283_v28 }
 0x1a3   : > { %v2717_v39 = vpop.f32.mrb[0].mxu0 }
 0x1a4   : > { %v861_v40 = vpop.f32.mrb[1].mxu0 }
 0x1a5   : > { %v2718_v41 = vpop.f32.mrb[2].mxu0 }
 0x1a6   : > { %v864_v42 = vpop.f32.mrb[3].mxu0 }
 0x1bb   : > { %v2771_v43 = vpop.f32.mrb[0].mxu1 }
 0x1bc   : > { %v2310_v44 = vmax.f32 %v2717_v39, %v2771_v43  ;;  %v1339_v45 = vpop.f32.mrb[1].mxu1 }
 0x1bd   : > { %v2308_v46 = vmax.f32 %v861_v40, %v1339_v45  ;;  %v2772_v47 = vpop.f32.mrb[2].mxu1 }
 0x1be   : > { %v2311_v48 = vmax.f32 %v2718_v41, %v2772_v47  ;;  %v1342_v49 = vpop.f32.mrb[3].mxu1 }
 0x1bf   : > { %v2309_v50 = vmax.f32 %v864_v42, %v1342_v49 }
 0x20b   : > { %v2825_v51 = vpop.f32.mrb[4].mxu0 }
 0x20c   : > { %v1817_v52 = vpop.f32.mrb[5].mxu0 }
 0x20d   : > { %v2826_v53 = vpop.f32.mrb[6].mxu0 }
 0x20e   : > { %v1820_v54 = vpop.f32.mrb[7].mxu0 }
 0x223   : > { %v2879_v56 = vpop.f32.mrb[4].mxu1 }
 0x224   : > { %v2314_v58 = vmax.f32 %v2825_v51, %v2879_v56  ;;  %v2289_v59 = vpop.f32.mrb[5].mxu1 }
 0x225   : > { %v2312_v60 = vmax.f32 %v1817_v52, %v2289_v59  ;;  %v2880_v61 = vpop.f32.mrb[6].mxu1 }
 0x226   : > { %v2315_v63 = vmax.f32 %v2826_v53, %v2880_v61  ;;  %v2292_v0 = vpop.f32.mrb[7].mxu1  ;;  %v2318_v1 = vmax.f32 %v2310_v44, %v2314_v58 }
 0x227   : > { %v2316_v2 = vmax.f32 %v2308_v46, %v2312_v60  ;;  %v2313_v3 = vmax.f32 %v1820_v54, %v2292_v0 }
 0x228   : > { %v2346_v4 = vadd.f32 %v2337_v62, %v2318_v1  ;;  %v2319_v5 = vmax.f32 %v2311_v48, %v2315_v63 }
 0x229   : > { %v2344_v6 = vadd.f32 %v2327_v57, %v2316_v2  ;;  %v2317_v7 = vmax.f32 %v2309_v50, %v2313_v3 }
 0x22a   : > { %v2350_v9 = vmax.f32 %v2346_v4, 0.0  ;;  %v2347_v10 = vadd.f32 %v2342_v8, %v2319_v5 }
 0x22b   : > { %v2348_v11 = vmax.f32 %v2344_v6, 0.0  ;;  %v2345_v12 = vadd.f32 %v2332_v55, %v2317_v7 }
 0x22c   : > { %2355 = vst.msk [vmem:[%s170_s19 + $0x10] sm:$0xff] %vm2352_vm1, %v2350_v9  ;;  %v2351_v13 = vmax.f32 %v2347_v10, 0.0 }
 0x22d   : > { %2353 = vst.msk [vmem:[%s170_s19] sm:$0xff] %vm2352_vm1, %v2348_v11  ;;  %v2349_v14 = vmax.f32 %v2345_v12, 0.0 }
 0x22e   : > { %2356 = vst.msk [vmem:[%s170_s19 + $0x18] sm:$0xff] %vm2352_vm1, %v2351_v13 }
 0x22f   : > { %2354 = vst.msk [vmem:[%s170_s19 + $0x8] sm:$0xff] %vm2352_vm1, %v2349_v14 }
 0x230 PF: > { %s13_s12 = sadd.s32 1, %s3051_s12  }
 0x231   : > { %p10_p4 = scmp.ge.s32.totalorder %s13_s12, 4  }
 0x233   :  { %12 = sbr.rel (!%p10_p4) target bundleno = 1 (0x1), region = 73 }

// kernel: cnn_forward.5
= control target key start
LH: loop header
LB: loop body
LE: loop exit
PB: predicated region body
PF: predicated region fallthrough
CT: control target
= control target key end

     0   :  { %v287_v28 = vlaneseq  ;;  %v1962_v36 = vmov 1966171168   ;;  %s2413_s0 = inlined_call_operand.vmem [shape: bf16[2,2048], index: 0, kind: input, shape index: {}]   ;;  %s2414_s1 = inlined_call_operand.vmem [shape: bf16[2048,10], index: 1, kind: input, shape index: {}]   ;;  %s2415_s2 = inlined_call_operand.vmem [shape: f32[1,10], index: 2, kind: input, shape index: {}]   ;;  %s2416_s3 = inlined_call_operand.hbm [shape: f32[2,10], index: 3, kind: output, shape index: {}]  }
   0x1   :  { %v1808_v0 = vld [vmem:[%s2414_s1 + $0x40] sm:$0xff]   ;;  %v1812_v4 = vld [vmem:[%s2414_s1 + $0x48] sm:$0xff]   ;;  %v1816_v8 = vld [vmem:[%s2414_s1 + $0x50] sm:$0xff]   ;;  %v285_v37 = vunpack.c.l.s4 %v1962_v36 }
   0x2   :  { %v1809_v1 = vld [vmem:[%s2414_s1 + $0xc0] sm:$0xff]   ;;  %1630 = vmatprep.subr.bf16.mxu0 %v1808_v0  ;;  %v1813_v5 = vld [vmem:[%s2414_s1 + $0xc8] sm:$0xff]   ;;  %v1817_v9 = vld [vmem:[%s2414_s1 + $0xd0] sm:$0xff]   ;;  %v288_v33 = vshrl.u32 %v287_v28, 7 }
   0x3   :  { %v1810_v2 = vld [vmem:[%s2414_s1] sm:$0xff]   ;;  %1652 = vmatprep.subr.bf16.mxu1 %v1809_v1  ;;  %v1814_v6 = vld [vmem:[%s2414_s1 + $0x8] sm:$0xff]   ;;  %v1818_v10 = vld [vmem:[%s2414_s1 + $0x10] sm:$0xff]   ;;  %v286_v40 = vunpack.c.0.s8 %v285_v37 }
   0x4   :  { %v1811_v3 = vld [vmem:[%s2414_s1 + $0x80] sm:$0xff]   ;;  %1631 = vmatpush3.bf16.msra.mxu0 %v1810_v2  ;;  %v1815_v7 = vld [vmem:[%s2414_s1 + $0x88] sm:$0xff]   ;;  %v1819_v11 = vld [vmem:[%s2414_s1 + $0x90] sm:$0xff]  }
   0x5   :  { %1653 = vmatpush3.bf16.msra.mxu1 %v1811_v3  ;;  %1632 = vmatprep.subr.bf16.mxu0 %v1812_v4  ;;  %v1820_v12 = vld [vmem:[%s2414_s1 + $0x58] sm:$0xff]   ;;  %v1824_v16 = vld [vmem:[%s2414_s1 + $0x60] sm:$0xff]   ;;  %v1828_v20 = vld [vmem:[%s2414_s1 + $0x68] sm:$0xff]   ;;  %v2089_v41 = vsub.s32 %v286_v40, %v288_v33 }
   0x6   :  { %1654 = vmatprep.subr.bf16.mxu1 %v1813_v5  ;;  %v1821_v13 = vld [vmem:[%s2414_s1 + $0xd8] sm:$0xff]   ;;  %v1825_v17 = vld [vmem:[%s2414_s1 + $0xe0] sm:$0xff]   ;;  %v1829_v21 = vld [vmem:[%s2414_s1 + $0xe8] sm:$0xff]  }
   0x7   :  { %v1822_v14 = vld [vmem:[%s2414_s1 + $0x18] sm:$0xff]   ;;  %v1826_v18 = vld [vmem:[%s2414_s1 + $0x20] sm:$0xff]   ;;  %v1830_v22 = vld [vmem:[%s2414_s1 + $0x28] sm:$0xff]  }
   0x8   :  { %1633 = vmatpush3.bf16.msra.mxu0 %v1814_v6  ;;  %v1823_v15 = vld [vmem:[%s2414_s1 + $0x98] sm:$0xff]   ;;  %v1827_v19 = vld [vmem:[%s2414_s1 + $0xa0] sm:$0xff]   ;;  %v1831_v23 = vld [vmem:[%s2414_s1 + $0xa8] sm:$0xff]  }
   0x9   :  { %1655 = vmatpush3.bf16.msra.mxu1 %v1815_v7  ;;  %1634 = vmatprep.subr.bf16.mxu0 %v1816_v8  ;;  %v1832_v24 = vld [vmem:[%s2414_s1 + $0x70] sm:$0xff]   ;;  %v1836_v29 = vld [vmem:[%s2414_s1 + $0x78] sm:$0xff]   ;;  %v16_v34 = vld [vmem:[%s2413_s0] sm:$0xff] }
   0xa   :  { %1656 = vmatprep.subr.bf16.mxu1 %v1817_v9  ;;  %v1833_v25 = vld [vmem:[%s2414_s1 + $0xf0] sm:$0xff]   ;;  %v1837_v30 = vld [vmem:[%s2414_s1 + $0xf8] sm:$0xff]   ;;  %v1841_v35 = vld [vmem:[%s2414_s1 + $0x140] sm:$0xff]   ;;  %v283_v39 = vcombine.high %v16_v34, %v16_v34  ;;  %v290_v42 = vrot.slane %v16_v34, %v2089_v41 }
   0xb   :  { %v1834_v26 = vld [vmem:[%s2414_s1 + $0x30] sm:$0xff]   ;;  %v1838_v31 = vld [vmem:[%s2414_s1 + $0x38] sm:$0xff]   ;;  %v1842_v38 = vld [vmem:[%s2414_s1 + $0x1c0] sm:$0xff]  }
   0xc   :  { %1635 = vmatpush3.bf16.msra.mxu0 %v1818_v10  ;;  %v1835_v27 = vld [vmem:[%s2414_s1 + $0xb0] sm:$0xff]   ;;  %v1839_v32 = vld [vmem:[%s2414_s1 + $0xb8] sm:$0xff]   ;;  %v2093_v43 = vrot.slane %v283_v39, %v2089_v41  ;;  %v298_v44 = vcombine.high %v290_v42, %v290_v42  ;;  %v306_v45 = vrot.slane %v290_v42, %v2089_v41  ;;  %v1843_v48 = vld [vmem:[%s2414_s1 + $0x100] sm:$0xff]  }
   0xd   :  { %1657 = vmatpush3.bf16.msra.mxu1 %v1819_v11  ;;  %1636 = vmatprep.subr.bf16.mxu0 %v1820_v12  ;;  %v1845_v51 = vld [vmem:[%s2414_s1 + $0x148] sm:$0xff]   ;;  %v1844_v53 = vld [vmem:[%s2414_s1 + $0x180] sm:$0xff]   ;;  %v1849_v57 = vld [vmem:[%s2414_s1 + $0x150] sm:$0xff]  }
   0xe   :  { %1658 = vmatprep.subr.bf16.mxu1 %v1821_v13  ;;  %v299_v46 = vcombine.high %v2093_v43, %v2093_v43  ;;  %v320_v47 = vrot.slane %v298_v44, %v2089_v41  ;;  %v328_v50 = vcombine.high %v306_v45, %v306_v45  ;;  %v1846_v54 = vld [vmem:[%s2414_s1 + $0x1c8] sm:$0xff]   ;;  %v1850_v59 = vld [vmem:[%s2414_s1 + $0x1d0] sm:$0xff]   ;;  %v1853_v61 = vld [vmem:[%s2414_s1 + $0x158] sm:$0xff]  }
   0xf   :  { %v1847_v56 = vld [vmem:[%s2414_s1 + $0x108] sm:$0xff]   ;;  %v1851_v60 = vld [vmem:[%s2414_s1 + $0x110] sm:$0xff]   ;;  %v1854_v63 = vld [vmem:[%s2414_s1 + $0x1d8] sm:$0xff]  }
  0x10   :  { %1637 = vmatpush3.bf16.msra.mxu0 %v1822_v14  ;;  %v327_v49 = vrot.slane %v299_v46, %v2089_v41  ;;  %1197 = vmatprep.mubr.bf16.mxu0 %v320_v47  ;;  %v330_v52 = vcombine.high %v320_v47, %v320_v47  ;;  %v1848_v58 = vld [vmem:[%s2414_s1 + $0x188] sm:$0xff]   ;;  %v1852_v62 = vld [vmem:[%s2414_s1 + $0x190] sm:$0xff]   ;;  %v1855_v0 = vld [vmem:[%s2414_s1 + $0x118] sm:$0xff]  }
  0x11   :  { %1659 = vmatpush3.bf16.msra.mxu1 %v1823_v15  ;;  %1638 = vmatprep.subr.bf16.mxu0 %v1824_v16  ;;  %v1857_v1 = vld [vmem:[%s2414_s1 + $0x160] sm:$0xff]   ;;  %v1856_v2 = vld [vmem:[%s2414_s1 + $0x198] sm:$0xff]   ;;  %v1861_v5 = vld [vmem:[%s2414_s1 + $0x168] sm:$0xff]  }
  0x12   :  { %1660 = vmatprep.subr.bf16.mxu1 %v1825_v17  ;;  %v331_v55 = vcombine.high %v327_v49, %v327_v49  ;;  %1237 = vmatprep.mubr.bf16.mxu1 %v330_v52  ;;  %v1858_v3 = vld [vmem:[%s2414_s1 + $0x1e0] sm:$0xff]   ;;  %v1862_v7 = vld [vmem:[%s2414_s1 + $0x1e8] sm:$0xff]   ;;  %v1865_v9 = vld [vmem:[%s2414_s1 + $0x170] sm:$0xff]   ;;  %v313_v17 = vrot.slane %v2093_v43, %v2089_v41 }
  0x13   :  { %v1859_v4 = vld [vmem:[%s2414_s1 + $0x120] sm:$0xff]   ;;  %v1863_v8 = vld [vmem:[%s2414_s1 + $0x128] sm:$0xff]   ;;  %v1866_v11 = vld [vmem:[%s2414_s1 + $0x1f0] sm:$0xff]  }
  0x14   :  { %1639 = vmatpush3.bf16.msra.mxu0 %v1826_v18  ;;  %v1860_v6 = vld [vmem:[%s2414_s1 + $0x1a0] sm:$0xff]   ;;  %v1864_v10 = vld [vmem:[%s2414_s1 + $0x1a8] sm:$0xff]   ;;  %v1867_v12 = vld [vmem:[%s2414_s1 + $0x130] sm:$0xff]  }
  0x15   :  { %1661 = vmatpush3.bf16.msra.mxu1 %v1827_v19  ;;  %1640 = vmatprep.subr.bf16.mxu0 %v1828_v20  ;;  %v1869_v13 = vld [vmem:[%s2414_s1 + $0x178] sm:$0xff]   ;;  %v1868_v14 = vld [vmem:[%s2414_s1 + $0x1b0] sm:$0xff]   ;;  %v1873_v18 = vld [vmem:[%s2414_s1 + $0x240] sm:$0xff]  }
  0x16   :  { %1662 = vmatprep.subr.bf16.mxu1 %v1829_v21  ;;  %v1870_v15 = vld [vmem:[%s2414_s1 + $0x1f8] sm:$0xff]   ;;  %v1874_v20 = vld [vmem:[%s2414_s1 + $0x2c0] sm:$0xff]   ;;  %v1880_v28 = vld [vmem:[%s2414_s1 + $0x288] sm:$0xff]  }
  0x17   :  { %v1871_v16 = vld [vmem:[%s2414_s1 + $0x138] sm:$0xff]   ;;  %v1875_v21 = vld [vmem:[%s2414_s1 + $0x200] sm:$0xff]   ;;  %v1893_v39 = vld [vmem:[%s2414_s1 + $0x268] sm:$0xff]  }
  0x18   :  { %1641 = vmatpush3.bf16.msra.mxu0 %v1830_v22  ;;  %v1872_v19 = vld [vmem:[%s2414_s1 + $0x1b8] sm:$0xff]   ;;  %v329_v22 = vcombine.high %v313_v17, %v313_v17  ;;  %v1890_v37 = vld [vmem:[%s2414_s1 + $0x2e0] sm:$0xff]   ;;  %v1894_v42 = vld [vmem:[%s2414_s1 + $0x2e8] sm:$0xff]  }
  0x19   :  { %1663 = vmatpush3.bf16.msra.mxu1 %v1831_v23  ;;  %1642 = vmatprep.subr.bf16.mxu0 %v1832_v24  ;;  %v1877_v23 = vld [vmem:[%s2414_s1 + $0x248] sm:$0xff]   ;;  %v1876_v24 = vld [vmem:[%s2414_s1 + $0x280] sm:$0xff]   ;;  %v1886_v33 = vld [vmem:[%s2414_s1 + $0x2d8] sm:$0xff]  }
  0x1a   :  { %1664 = vmatprep.subr.bf16.mxu1 %v1833_v25  ;;  %v1878_v25 = vld [vmem:[%s2414_s1 + $0x2c8] sm:$0xff]   ;;  %v1887_v34 = vld [vmem:[%s2414_s1 + $0x218] sm:$0xff]   ;;  %v1892_v40 = vld [vmem:[%s2414_s1 + $0x2a0] sm:$0xff]  }
  0x1b   :  { %v1888_v36 = vld [vmem:[%s2414_s1 + $0x298] sm:$0xff]   ;;  %v1895_v43 = vld [vmem:[%s2414_s1 + $0x228] sm:$0xff]   ;;  %v1897_v44 = vld [vmem:[%s2414_s1 + $0x270] sm:$0xff]  }
  0x1c   :  { %1643 = vmatpush3.bf16.msra.mxu0 %v1834_v26  ;;  %v1879_v26 = vld [vmem:[%s2414_s1 + $0x208] sm:$0xff]  }
  0x1d   :  { %1665 = vmatpush3.bf16.msra.mxu1 %v1835_v27  ;;  %1644 = vmatprep.subr.bf16.mxu0 %v1836_v29  ;;  %v1881_v27 = vld [vmem:[%s2414_s1 + $0x250] sm:$0xff]   ;;  %v1896_v46 = vld [vmem:[%s2414_s1 + $0x2a8] sm:$0xff]  }
  0x1e   :  { %1666 = vmatprep.subr.bf16.mxu1 %v1837_v30  ;;  %v1882_v29 = vld [vmem:[%s2414_s1 + $0x2d0] sm:$0xff]  }
  0x1f   :  { %v1883_v30 = vld [vmem:[%s2414_s1 + $0x210] sm:$0xff]  }
  0x20   :  { %1645 = vmatpush3.bf16.msra.mxu0 %v1838_v31  ;;  %v1885_v31 = vld [vmem:[%s2414_s1 + $0x258] sm:$0xff]  }
  0x21   :  { %1667 = vmatpush3.bf16.msra.mxu1 %v1839_v32  ;;  %1674 = vmatprep.subr.bf16.mxu0 %v1841_v35  ;;  %v1884_v32 = vld [vmem:[%s2414_s1 + $0x290] sm:$0xff]   ;;  %v1889_v35 = vld [vmem:[%s2414_s1 + $0x260] sm:$0xff]  }
  0x22   :  { %1696 = vmatprep.subr.bf16.mxu1 %v1842_v38  ;;  %v1891_v38 = vld [vmem:[%s2414_s1 + $0x220] sm:$0xff]  }
  0x23   :  { %1198 = vmatmul.mubr.bf16.vlgmr.msra.gmra.mrb[0].mxu0 %v306_v45  ;;  %v17_v45 = vld [vmem:[%s2413_s0 + $0x8] sm:$0xff] }
  0x24   :  { %1675 = vmatpush3.bf16.msra.mxu0 %v1843_v48  ;;  %1238 = vmatmul.mubr.bf16.vlgmr.msra.gmra.mrb[0].mxu1 %v328_v50  ;;  %v339_v47 = vrot.slane %v17_v45, %v2089_v41  ;;  %v332_v48 = vcombine.high %v17_v45, %v17_v45  ;;  %v1899_v50 = vld [vmem:[%s2414_s1 + $0x230] sm:$0xff]  }
  0x25   :  { %1676 = vmatprep.subr.bf16.mxu0 %v1845_v51  ;;  %1697 = vmatpush3.bf16.msra.mxu1 %v1844_v53  ;;  %v1901_v53 = vld [vmem:[%s2414_s1 + $0x278] sm:$0xff]  }
  0x26   :  { %1277 = vmatprep.mubr.bf16.mxu0 %v327_v49  ;;  %1698 = vmatprep.subr.bf16.mxu1 %v1846_v54  ;;  %v1898_v49 = vld [vmem:[%s2414_s1 + $0x2f0] sm:$0xff]   ;;  %v347_v51 = vcombine.high %v339_v47, %v339_v47  ;;  %v2278_v52 = vrot.slane %v332_v48, %v2089_v41 }
  0x27   :  { %1317 = vmatprep.mubr.bf16.mxu1 %v331_v55  ;;  %v1900_v54 = vld [vmem:[%s2414_s1 + $0x2b0] sm:$0xff]  }
  0x28   :  { %1677 = vmatpush3.bf16.msra.mxu0 %v1847_v56  ;;  %v369_v55 = vrot.slane %v347_v51, %v2089_v41  ;;  %v348_v56 = vcombine.high %v2278_v52, %v2278_v52 }
  0x29   :  { %1678 = vmatprep.subr.bf16.mxu0 %v1849_v57  ;;  %1699 = vmatpush3.bf16.msra.mxu1 %v1848_v58  ;;  %v1902_v57 = vld [vmem:[%s2414_s1 + $0x2f8] sm:$0xff]  }
  0x2a   :  { %1700 = vmatprep.subr.bf16.mxu1 %v1850_v59  ;;  %v1903_v58 = vld [vmem:[%s2414_s1 + $0x238] sm:$0xff]   ;;  %v379_v59 = vcombine.high %v369_v55, %v369_v55 }
  0x2c   :  { %1679 = vmatpush3.bf16.msra.mxu0 %v1851_v60  ;;  %v355_v60 = vrot.slane %v339_v47, %v2089_v41 }
  0x2d   :  { %1680 = vmatprep.subr.bf16.mxu0 %v1853_v61  ;;  %1701 = vmatpush3.bf16.msra.mxu1 %v1852_v62  ;;  %v1905_v61 = vld [vmem:[%s2414_s1 + $0x340] sm:$0xff]   ;;  %v1904_v62 = vld [vmem:[%s2414_s1 + $0x2b8] sm:$0xff]  }
  0x2e   :  { %1702 = vmatprep.subr.bf16.mxu1 %v1854_v63  ;;  %v376_v63 = vrot.slane %v348_v56, %v2089_v41 }
  0x30   :  { %1681 = vmatpush3.bf16.msra.mxu0 %v1855_v0  ;;  %v1906_v0 = vld [vmem:[%s2414_s1 + $0x3c0] sm:$0xff]  }
  0x31   :  { %1682 = vmatprep.subr.bf16.mxu0 %v1857_v1  ;;  %1703 = vmatpush3.bf16.msra.mxu1 %v1856_v2  ;;  %v1907_v1 = vld [vmem:[%s2414_s1 + $0x300] sm:$0xff]   ;;  %v377_v2 = vcombine.high %v355_v60, %v355_v60 }
  0x32   :  { %1704 = vmatprep.subr.bf16.mxu1 %v1858_v3  ;;  %v1909_v3 = vld [vmem:[%s2414_s1 + $0x348] sm:$0xff]  }
  0x34   :  { %1683 = vmatpush3.bf16.msra.mxu0 %v1859_v4  ;;  %v1908_v4 = vld [vmem:[%s2414_s1 + $0x380] sm:$0xff]  }
  0x35   :  { %1684 = vmatprep.subr.bf16.mxu0 %v1861_v5  ;;  %1705 = vmatpush3.bf16.msra.mxu1 %v1860_v6  ;;  %v380_v5 = vcombine.high %v376_v63, %v376_v63  ;;  %v1910_v6 = vld [vmem:[%s2414_s1 + $0x3c8] sm:$0xff]  }
  0x36   :  { %1706 = vmatprep.subr.bf16.mxu1 %v1862_v7  ;;  %v1911_v7 = vld [vmem:[%s2414_s1 + $0x308] sm:$0xff]  }
  0x38   :  { %1685 = vmatpush3.bf16.msra.mxu0 %v1863_v8  ;;  %v1913_v8 = vld [vmem:[%s2414_s1 + $0x350] sm:$0xff]  }
  0x39   :  { %1686 = vmatprep.subr.bf16.mxu0 %v1865_v9  ;;  %1707 = vmatpush3.bf16.msra.mxu1 %v1864_v10  ;;  %v1912_v9 = vld [vmem:[%s2414_s1 + $0x388] sm:$0xff]   ;;  %v1914_v10 = vld [vmem:[%s2414_s1 + $0x3d0] sm:$0xff]  }
  0x3a   :  { %1708 = vmatprep.subr.bf16.mxu1 %v1866_v11  ;;  %v1915_v11 = vld [vmem:[%s2414_s1 + $0x310] sm:$0xff]  }
  0x3c   :  { %1687 = vmatpush3.bf16.msra.mxu0 %v1867_v12  ;;  %v1917_v12 = vld [vmem:[%s2414_s1 + $0x358] sm:$0xff]  }
  0x3d   :  { %1688 = vmatprep.subr.bf16.mxu0 %v1869_v13  ;;  %1709 = vmatpush3.bf16.msra.mxu1 %v1868_v14  ;;  %v1916_v13 = vld [vmem:[%s2414_s1 + $0x390] sm:$0xff]   ;;  %v1918_v14 = vld [vmem:[%s2414_s1 + $0x3d8] sm:$0xff]  }
  0x3e   :  { %1710 = vmatprep.subr.bf16.mxu1 %v1870_v15  ;;  %v1919_v15 = vld [vmem:[%s2414_s1 + $0x318] sm:$0xff]  }
  0x40   :  { %1689 = vmatpush3.bf16.msra.mxu0 %v1871_v16  ;;  %v1921_v16 = vld [vmem:[%s2414_s1 + $0x360] sm:$0xff]  }
  0x41   :  { %1718 = vmatprep.subr.bf16.mxu0 %v1873_v18  ;;  %1711 = vmatpush3.bf16.msra.mxu1 %v1872_v19  ;;  %v1922_v18 = vld [vmem:[%s2414_s1 + $0x3e0] sm:$0xff]  }
  0x42   :  { %1740 = vmatprep.subr.bf16.mxu1 %v1874_v20  ;;  %v1923_v19 = vld [vmem:[%s2414_s1 + $0x320] sm:$0xff]   ;;  %v1925_v20 = vld [vmem:[%s2414_s1 + $0x368] sm:$0xff]  }
  0x43   :  { %1278 = vmatmul.mubr.bf16.vlgmr.msra.gmra.mrb[4].mxu0 %v313_v17  ;;  %v1920_v17 = vld [vmem:[%s2414_s1 + $0x398] sm:$0xff]  }
  0x44   :  { %1719 = vmatpush3.bf16.msra.mxu0 %v1875_v21  ;;  %1318 = vmatmul.mubr.bf16.vlgmr.msra.gmra.mrb[4].mxu1 %v329_v22  ;;  %v1924_v21 = vld [vmem:[%s2414_s1 + $0x3a0] sm:$0xff]   ;;  %v1926_v22 = vld [vmem:[%s2414_s1 + $0x3e8] sm:$0xff]  }
  0x45   :  { %1720 = vmatprep.subr.bf16.mxu0 %v1877_v23  ;;  %1741 = vmatpush3.bf16.msra.mxu1 %v1876_v24  ;;  %v1927_v23 = vld [vmem:[%s2414_s1 + $0x328] sm:$0xff]   ;;  %v1929_v24 = vld [vmem:[%s2414_s1 + $0x370] sm:$0xff]  }
  0x46   :  { %1742 = vmatprep.subr.bf16.mxu1 %v1878_v25  ;;  %1357 = vmatprep.mubr.bf16.mxu0 %v369_v55 }
  0x47   :  { %1397 = vmatprep.mubr.bf16.mxu1 %v379_v59 }
  0x48   :  { %1721 = vmatpush3.bf16.msra.mxu0 %v1879_v26 }
  0x49   :  { %1722 = vmatprep.subr.bf16.mxu0 %v1881_v27  ;;  %1743 = vmatpush3.bf16.msra.mxu1 %v1880_v28 }
  0x4a   :  { %1744 = vmatprep.subr.bf16.mxu1 %v1882_v29 }
  0x4c   :  { %1723 = vmatpush3.bf16.msra.mxu0 %v1883_v30 }
  0x4d   :  { %1724 = vmatprep.subr.bf16.mxu0 %v1885_v31  ;;  %1745 = vmatpush3.bf16.msra.mxu1 %v1884_v32 }
  0x4e   :  { %1746 = vmatprep.subr.bf16.mxu1 %v1886_v33 }
  0x50   :  { %1725 = vmatpush3.bf16.msra.mxu0 %v1887_v34 }
  0x51   :  { %1726 = vmatprep.subr.bf16.mxu0 %v1889_v35  ;;  %1747 = vmatpush3.bf16.msra.mxu1 %v1888_v36 }
  0x52   :  { %1748 = vmatprep.subr.bf16.mxu1 %v1890_v37 }
  0x54   :  { %1727 = vmatpush3.bf16.msra.mxu0 %v1891_v38 }
  0x55   :  { %1728 = vmatprep.subr.bf16.mxu0 %v1893_v39  ;;  %1749 = vmatpush3.bf16.msra.mxu1 %v1892_v40 }
  0x56   :  { %1750 = vmatprep.subr.bf16.mxu1 %v1894_v42 }
  0x58   :  { %1729 = vmatpush3.bf16.msra.mxu0 %v1895_v43 }
  0x59   :  { %1730 = vmatprep.subr.bf16.mxu0 %v1897_v44  ;;  %1751 = vmatpush3.bf16.msra.mxu1 %v1896_v46 }
  0x5a   :  { %1752 = vmatprep.subr.bf16.mxu1 %v1898_v49 }
  0x5c   :  { %1731 = vmatpush3.bf16.msra.mxu0 %v1899_v50 }
  0x5d   :  { %1732 = vmatprep.subr.bf16.mxu0 %v1901_v53  ;;  %1753 = vmatpush3.bf16.msra.mxu1 %v1900_v54 }
  0x5e   :  { %1754 = vmatprep.subr.bf16.mxu1 %v1902_v57 }
  0x60   :  { %1733 = vmatpush3.bf16.msra.mxu0 %v1903_v58 }
  0x61   :  { %1762 = vmatprep.subr.bf16.mxu0 %v1905_v61  ;;  %1755 = vmatpush3.bf16.msra.mxu1 %v1904_v62 }
  0x62   :  { %1784 = vmatprep.subr.bf16.mxu1 %v1906_v0 }
  0x63   :  { %1358 = vmatmul.mubr.bf16.vlgmr.msra.gmra.mrb[8].mxu0 %v355_v60 }
  0x64   :  { %1763 = vmatpush3.bf16.msra.mxu0 %v1907_v1  ;;  %1437 = vmatprep.mubr.bf16.mxu0 %v376_v63 }
  0x65   :  { %1398 = vmatmul.mubr.bf16.vlgmr.msra.gmra.mrb[8].mxu1 %v377_v2  ;;  %1764 = vmatprep.subr.bf16.mxu0 %v1909_v3 }
  0x66   :  { %1785 = vmatpush3.bf16.msra.mxu1 %v1908_v4  ;;  %1477 = vmatprep.mubr.bf16.mxu1 %v380_v5 }
  0x67   :  { %1786 = vmatprep.subr.bf16.mxu1 %v1910_v6 }
  0x68   :  { %1765 = vmatpush3.bf16.msra.mxu0 %v1911_v7 }
  0x69   :  { %1766 = vmatprep.subr.bf16.mxu0 %v1913_v8 }
  0x6a   :  { %1787 = vmatpush3.bf16.msra.mxu1 %v1912_v9 }
  0x6b   :  { %1788 = vmatprep.subr.bf16.mxu1 %v1914_v10 }
  0x6c   :  { %1767 = vmatpush3.bf16.msra.mxu0 %v1915_v11 }
  0x6d   :  { %1768 = vmatprep.subr.bf16.mxu0 %v1917_v12 }
  0x6e   :  { %1789 = vmatpush3.bf16.msra.mxu1 %v1916_v13 }
  0x6f   :  { %1790 = vmatprep.subr.bf16.mxu1 %v1918_v14 }
  0x70   :  { %1769 = vmatpush3.bf16.msra.mxu0 %v1919_v15 }
  0x71   :  { %1770 = vmatprep.subr.bf16.mxu0 %v1921_v16 }
  0x72   :  { %1791 = vmatpush3.bf16.msra.mxu1 %v1920_v17 }
  0x73   :  { %1792 = vmatprep.subr.bf16.mxu1 %v1922_v18 }
  0x74   :  { %1771 = vmatpush3.bf16.msra.mxu0 %v1923_v19 }
  0x75   :  { %1772 = vmatprep.subr.bf16.mxu0 %v1925_v20 }
  0x76   :  { %8 = vsyncpa [#allocation3], 0  ;;  %1793 = vmatpush3.bf16.msra.mxu1 %v1924_v21  ;;  %v1928_v25 = vld [vmem:[%s2414_s1 + $0x3a8] sm:$0xff]   ;;  %v1930_v26 = vld [vmem:[%s2414_s1 + $0x3f0] sm:$0xff]   ;;  %v362_v32 = vrot.slane %v2278_v52, %v2089_v41  ;;  %vm1485_vm0 = vcmask 74752  }
  0x77   :  { %1794 = vmatprep.subr.bf16.mxu1 %v1926_v22  ;;  %v1931_v27 = vld [vmem:[%s2414_s1 + $0x330] sm:$0xff]   ;;  %v1933_v28 = vld [vmem:[%s2414_s1 + $0x378] sm:$0xff]   ;;  %v1501_v36 = vld [vmem:[%s2415_s2] ss:$0 sm:$0xff] }
  0x78   :  { %1773 = vmatpush3.bf16.msra.mxu0 %v1927_v23  ;;  %v1932_v29 = vld [vmem:[%s2414_s1 + $0x3b0] sm:$0xff]   ;;  %v1934_v30 = vld [vmem:[%s2414_s1 + $0x3f8] sm:$0xff]   ;;  %v378_v34 = vcombine.high %v362_v32, %v362_v32 }
  0x79   :  { %1774 = vmatprep.subr.bf16.mxu0 %v1929_v24  ;;  %v1935_v31 = vld [vmem:[%s2414_s1 + $0x338] sm:$0xff]  }
  0x7a   :  { %1795 = vmatpush3.bf16.msra.mxu1 %v1928_v25  ;;  %v1936_v33 = vld [vmem:[%s2414_s1 + $0x3b8] sm:$0xff]   ;;  %s1963_s1 = smov [#allocation2]  }
  0x7b   :  { %1796 = vmatprep.subr.bf16.mxu1 %v1930_v26  ;;  %s1493_s2 = sshll.u32 %s1963_s1, 4  ;;  %s1494_s2 = int_to_ptr.vmem [resolvable:$true] %s1493_s2 }
  0x7c   :  { %1775 = vmatpush3.bf16.msra.mxu0 %v1931_v27  ;;  %s1938_s28 = scalar_lea.vmem %s1494_s2, 32  ;;  %p1943_p1 = scmp.lt.s32.totalorder %s1494_s2, %s1494_s2 }
  0x7d   :  { %1776 = vmatprep.subr.bf16.mxu0 %v1933_v28  ;;  %p1939_p0 = scmp.ne.s32.totalorder %s1494_s2, %s1938_s28  ;;  %p1944_p2 = scmp.lt.s32.totalorder %s1938_s28, %s1938_s28 }
  0x7e   :  { %1797 = vmatpush3.bf16.msra.mxu1 %v1932_v29 }
  0x7f   :  { %1798 = vmatprep.subr.bf16.mxu1 %v1934_v30  ;;  %p1945_p3 = por %p1944_p2, %p1943_p1 }
  0x80   :  { %1777 = vmatpush3.bf16.msra.mxu0 %v1935_v31 }
  0x81   :  { %p1946_p4 = pnand %p1945_p3, %p1939_p0 }
  0x82   :  { %1799 = vmatpush3.bf16.msra.mxu1 %v1936_v33 }
  0x83   :  { %1438 = vmatmul.mubr.bf16.vlgmr.msra.gmra.mrb[12].mxu0 %v362_v32 }
  0x85   :  { %1478 = vmatmul.mubr.bf16.vlgmr.msra.gmra.mrb[12].mxu1 %v378_v34 }
  0xf6   :  { %v1646_v35 = vpop.f32.mrb[0].mxu0 }
  0xf7   :  { %v1647_v37 = vpop.f32.mrb[1].mxu0  ;;  %v1668_v38 = vpop.f32.mrb[0].mxu1 }
  0xf8   :  { %v1648_v39 = vadd.f32 %v1647_v37, %v1646_v35  ;;  %v1649_v41 = vpop.f32.mrb[2].mxu0  ;;  %v1669_v40 = vpop.f32.mrb[1].mxu1 }
  0xf9   :  { %v1650_v42 = vpop.f32.mrb[3].mxu0  ;;  %v1670_v44 = vadd.f32 %v1669_v40, %v1668_v38  ;;  %v1671_v45 = vpop.f32.mrb[2].mxu1 }
  0xfa   :  { %v1200_v43 = vadd.f32 %v1648_v39, %v1501_v36  ;;  %v1672_v46 = vpop.f32.mrb[3].mxu1 }
  0xfc   :  { %v1240_v47 = vadd.f32 %v1670_v44, %v1200_v43 }
 0x116   :  { %v1690_v48 = vpop.f32.mrb[4].mxu0 }
 0x117   :  { %v1691_v49 = vpop.f32.mrb[5].mxu0  ;;  %v1712_v50 = vpop.f32.mrb[4].mxu1 }
 0x118   :  { %v1692_v51 = vadd.f32 %v1691_v49, %v1690_v48  ;;  %v1693_v52 = vpop.f32.mrb[6].mxu0  ;;  %v1713_v53 = vpop.f32.mrb[5].mxu1 }
 0x119   :  { %v1694_v54 = vpop.f32.mrb[7].mxu0  ;;  %v1714_v56 = vadd.f32 %v1713_v53, %v1712_v50  ;;  %v1715_v57 = vpop.f32.mrb[6].mxu1 }
 0x11a   :  { %v1280_v55 = vadd.f32 %v1692_v51, %v1240_v47  ;;  %v1716_v58 = vpop.f32.mrb[7].mxu1 }
 0x11c   :  { %v1320_v59 = vadd.f32 %v1714_v56, %v1280_v55 }
 0x136   :  { %v1734_v60 = vpop.f32.mrb[8].mxu0 }
 0x137   :  { %v1735_v61 = vpop.f32.mrb[9].mxu0 }
 0x138   :  { %v1756_v62 = vpop.f32.mrb[8].mxu1  ;;  %v1736_v63 = vadd.f32 %v1735_v61, %v1734_v60  ;;  %v1737_v0 = vpop.f32.mrb[10].mxu0 }
 0x139   :  { %v1757_v1 = vpop.f32.mrb[9].mxu1  ;;  %v1738_v2 = vpop.f32.mrb[11].mxu0 }
 0x13a   :  { %v1360_v3 = vadd.f32 %v1736_v63, %v1320_v59  ;;  %v1758_v4 = vadd.f32 %v1757_v1, %v1756_v62  ;;  %v1759_v5 = vpop.f32.mrb[10].mxu1 }
 0x13b   :  { %v1760_v6 = vpop.f32.mrb[11].mxu1 }
 0x13c   :  { %v1400_v7 = vadd.f32 %v1758_v4, %v1360_v3 }
 0x156   :  { %v1778_v8 = vpop.f32.mrb[12].mxu0 }
 0x157   :  { %v1779_v9 = vpop.f32.mrb[13].mxu0 }
 0x158   :  { %v1800_v10 = vpop.f32.mrb[12].mxu1  ;;  %v1780_v11 = vadd.f32 %v1779_v9, %v1778_v8  ;;  %v1781_v12 = vpop.f32.mrb[14].mxu0 }
 0x159   :  { %v1801_v13 = vpop.f32.mrb[13].mxu1  ;;  %v1782_v14 = vpop.f32.mrb[15].mxu0 }
 0x15a   :  { %v1440_v15 = vadd.f32 %v1780_v11, %v1400_v7  ;;  %v1802_v16 = vadd.f32 %v1801_v13, %v1800_v10  ;;  %v1803_v17 = vpop.f32.mrb[14].mxu1 }
 0x15b   :  { %v1804_v18 = vpop.f32.mrb[15].mxu1 }
 0x15c   :  { %v1480_v19 = vadd.f32 %v1802_v16, %v1440_v15 }
 0x15e   :  { %1486 = vst.msk [vmem:[#allocation2] sm:$0x3] %vm1485_vm0, %v1480_v19 }
 0x15f   :  { %1949 = shalt.err (!%p1946_p4)
}
 0x160   :  { %s1950_s4 = scalar_lea.hbm %s2416_s3, 32 }
 0x161   :  { %p1951_p5 = scmp.ne.s32.totalorder %s2416_s3, %s1950_s4  ;;  %p1954_p6 = scmp.lt.u32.totalorder %s1950_s4, %s2416_s3 }
 0x163   :  { %p1956_p7 = pnand %p1954_p6, %p1951_p5 }
 0x165   :  { %1959 = shalt.err (!%p1956_p7)
}
 0x166   :  { %1496 = dma.vmem_to_hbm [thread:$0]  %s1494_s2, 32, %s2416_s3, [#allocation3]  }
 0x167   :  { %1960 = dma.done.wait [#allocation3], 32  }
 0x168   :  { %1961 = vsyncadd [#allocation3], 4294967264 }
 0x169   :  { %1500 = vsyncpa [#allocation3], 1 }

</bundles_post_ra>
